<compile_context>
chip_gen: v7x
topology: tpu7x:2x2x1
jax: 0.10.0
libtpu: 0.0.40
codegen_flags: <defaults>
</compile_context>

<pallas_src>
import functools

import numpy as np
import jax
import jax.numpy as jnp
from jax.experimental import pallas as pl
from jax.experimental.pallas import tpu as pltpu


def _round_up(x, m):
    return (x + m - 1) // m * m


def _vmem_limit_bytes():
    cap = 64 * 1024 * 1024
    try:
        info = pltpu.get_tpu_info()
        cap = int(getattr(info, "vmem_capacity_bytes", cap) or cap)
    except Exception:
        pass
    # leave headroom for compiler scratch; v5e/v6e (128 MiB) -> 96 MiB, v7x (64 MiB) -> 48 MiB
    return min(int(cap * 3 // 4), 112 * 1024 * 1024)


_VMEM_LIMIT_BYTES = _vmem_limit_bytes()
_BIG_VMEM = _VMEM_LIMIT_BYTES >= 80 * 1024 * 1024   # v5e / v6e class chips


# ----------------------- fused tiled linear (x @ w + b, activation) -----------------------

def _linear_kernel(x_ref, w_ref, b_ref, o_ref, *, activation):
    k = pl.program_id(2)

    @pl.when(k == 0)
    def _():
        o_ref[...] = jnp.broadcast_to(b_ref[...], o_ref.shape)

    o_ref[...] += jnp.dot(x_ref[...], w_ref[...],
                          preferred_element_type=jnp.float32)

    if activation is not None:
        @pl.when(k == pl.num_programs(2) - 1)
        def _():
            if activation == "relu":
                o_ref[...] = jnp.maximum(o_ref[...], 0.0)
            elif activation == "tanh":
                o_ref[...] = jnp.tanh(o_ref[...])


def pallas_linear(x, w, b, activation=None, tm=None, tn=None, tk=None):
    """x:[M,K] @ w:[K,N] + b:[N] -> f32 [M,N]; bf16 MXU operands, f32 resident accumulation."""
    M, K = x.shape
    N = w.shape[1]
    if tm is None:
        tm = 512 if _BIG_VMEM else 256
    if tn is None:
        tn = 512 if _BIG_VMEM else 256
    if tk is None:
        tk = 1024 if _BIG_VMEM else 512
    tm = min(tm, _round_up(M, 8))
    tk = min(tk, _round_up(K, 128))
    tn = min(tn, _round_up(N, 128))
    Mp, Kp, Np = _round_up(M, tm), _round_up(K, tk), _round_up(N, tn)

    xp = x.astype(jnp.bfloat16)
    if (Mp, Kp) != (M, K):
        xp = jnp.zeros((Mp, Kp), jnp.bfloat16).at[:M, :K].set(xp)
    wp = w.astype(jnp.bfloat16)
    if (Kp, Np) != (K, N):
        wp = jnp.zeros((Kp, Np), jnp.bfloat16).at[:K, :N].set(wp)
    bp = jnp.zeros((1, Np), jnp.float32).at[0, :N].set(b.astype(jnp.float32))

    out = pl.pallas_call(
        functools.partial(_linear_kernel, activation=activation),
        out_shape=jax.ShapeDtypeStruct((Mp, Np), jnp.float32),
        grid_spec=pltpu.PrefetchScalarGridSpec(
            num_scalar_prefetch=0,
            grid=(Mp // tm, Np // tn, Kp // tk),
            in_specs=[
                pl.BlockSpec((tm, tk), lambda i, j, k: (i, k)),
                pl.BlockSpec((tk, tn), lambda i, j, k: (k, j)),
                pl.BlockSpec((1, tn), lambda i, j, k: (0, j)),
            ],
            out_specs=pl.BlockSpec((tm, tn), lambda i, j, k: (i, j)),
        ),
        compiler_params=pltpu.CompilerParams(
            dimension_semantics=("parallel", "parallel", "arbitrary"),
            vmem_limit_bytes=_VMEM_LIMIT_BYTES),
    )(xp, wp, bp)
    return out[:M, :N]


# ----------------------- fused, chunked GRU scan (input projection inside) -----------------------

def _gru_kernel(h0_ref, start_ref, stop_ref, x_ref, wih_ref, bih_ref,
                whh_ref, bhh_ref, out_ref, h_ref, *, tchunk, return_sequence):
    c = pl.program_id(1)

    @pl.when(c == 0)
    def _():
        h_ref[...] = h0_ref[...]

    Hp = h_ref.shape[1]
    wih = wih_ref[...]                     # [Ep, 3Hp] bf16, VMEM-resident per direction
    whh = whh_ref[...]                     # [Hp, 3Hp] bf16
    bih = bih_ref[...]                     # [1, 3Hp] f32
    bhh = bhh_ref[...]
    start = start_ref[...]                 # [Np, 1] int32
    stop = stop_ref[...]

    h = h_ref[...]                         # [Np, Hp] f32, never leaves VMEM between steps
    for s in range(tchunk):                # static unroll over the timestep chunk
        t = c * tchunk + s
        gx = jnp.dot(x_ref[s], wih, preferred_element_type=jnp.float32) + bih
        gh = jnp.dot(h.astype(jnp.bfloat16), whh,
                     preferred_element_type=jnp.float32) + bhh
        r = jax.nn.sigmoid(gx[:, :Hp] + gh[:, :Hp])
        z = jax.nn.sigmoid(gx[:, Hp:2 * Hp] + gh[:, Hp:2 * Hp])
        n = jnp.tanh(gx[:, 2 * Hp:] + r * gh[:, 2 * Hp:])
        h_new = (1.0 - z) * n + z * h
        # pack_padded_sequence emulation: row updates only for start <= t < stop.
        valid = jnp.logical_and(t >= start, t < stop)          # [Np, 1] bool
        h = jnp.where(valid, h_new, h)
        if return_sequence:
            out_ref[s] = h
    h_ref[...] = h

    if not return_sequence:
        @pl.when(c == pl.num_programs(1) - 1)
        def _():
            out_ref[...] = h


def pallas_gru(x, h0, w_ih, b_ih, w_hh, b_hh, start, stop, *,
               tchunk=8, return_sequence=True):
    """Masked multi-direction GRU scan; the input projection is fused into the kernel.

    x:      [D, T, N, E]  raw inputs (streamed per time-chunk as bf16)
    h0:     [D, N, H]     initial hidden state
    w_ih:   [D, E, 3H], b_ih: [D, 3H]   input->gate projection (computed in-kernel)
    w_hh:   [D, H, 3H], b_hh: [D, 3H]   recurrent weights / bias
    start, stop: [D, N] int32;  step t updates a row iff start <= t < stop
    Returns f32 [D, T, N, H] (return_sequence=True) or [D, N, H] (final state only).
    """
    D, T, N, E = x.shape
    H = h0.shape[-1]
    Np = _round_up(N, 8)
    Ep = _round_up(E, 128)
    Hp = _round_up(H, 128)
    tchunk = max(1, min(tchunk, T))
    Tp = _round_up(T, tchunk)

    xp = x.astype(jnp.bfloat16)
    if (Tp, Np, Ep) != (T, N, E):
        xp = jnp.zeros((D, Tp, Np, Ep), jnp.bfloat16).at[:, :T, :N, :E].set(xp)

    # Gate re-layout onto 128-aligned lanes is done on the SMALL weights only.
    w_ihp = jnp.zeros((D, Ep, 3 * Hp), jnp.bfloat16)
    w_hhp = jnp.zeros((D, Hp, 3 * Hp), jnp.bfloat16)
    b_ihp = jnp.zeros((D, 1, 3 * Hp), jnp.float32)
    b_hhp = jnp.zeros((D, 1, 3 * Hp), jnp.float32)
    for g in range(3):
        w_ihp = w_ihp.at[:, :E, g * Hp:g * Hp + H].set(
            w_ih[:, :, g * H:(g + 1) * H].astype(jnp.bfloat16))
        w_hhp = w_hhp.at[:, :H, g * Hp:g * Hp + H].set(
            w_hh[:, :, g * H:(g + 1) * H].astype(jnp.bfloat16))
        b_ihp = b_ihp.at[:, 0, g * Hp:g * Hp + H].set(b_ih[:, g * H:(g + 1) * H])
        b_hhp = b_hhp.at[:, 0, g * Hp:g * Hp + H].set(b_hh[:, g * H:(g + 1) * H])

    h0p = jnp.zeros((D, Np, Hp), jnp.float32).at[:, :N, :H].set(h0)
    # padded rows get start = Tp so they never update (stay zero through the scan)
    startp = jnp.full((D, Np, 1), Tp, jnp.int32).at[:, :N, 0].set(start.astype(jnp.int32))
    stopp = jnp.zeros((D, Np, 1), jnp.int32).at[:, :N, 0].set(stop.astype(jnp.int32))

    if return_sequence:
        out_shape = jax.ShapeDtypeStruct((D, Tp, Np, Hp), jnp.float32)
        out_spec = pl.BlockSpec((None, tchunk, Np, Hp), lambda d, c: (d, c, 0, 0))
    else:
        out_shape = jax.ShapeDtypeStruct((D, Np, Hp), jnp.float32)
        out_spec = pl.BlockSpec((None, Np, Hp), lambda d, c: (d, 0, 0))

    out = pl.pallas_call(
        functools.partial(_gru_kernel, tchunk=tchunk,
                          return_sequence=return_sequence),
        out_shape=out_shape,
        grid_spec=pltpu.PrefetchScalarGridSpec(
            num_scalar_prefetch=0,
            grid=(D, Tp // tchunk),
            in_specs=[
                pl.BlockSpec((None, Np, Hp), lambda d, c: (d, 0, 0)),               # h0
                pl.BlockSpec((None, Np, 1), lambda d, c: (d, 0, 0)),                # start
                pl.BlockSpec((None, Np, 1), lambda d, c: (d, 0, 0)),                # stop
                pl.BlockSpec((None, tchunk, Np, Ep), lambda d, c: (d, c, 0, 0)),    # x chunk
                pl.BlockSpec((None, Ep, 3 * Hp), lambda d, c: (d, 0, 0)),           # w_ih
                pl.BlockSpec((None, 1, 3 * Hp), lambda d, c: (d, 0, 0)),            # b_ih
                pl.BlockSpec((None, Hp, 3 * Hp), lambda d, c: (d, 0, 0)),           # w_hh
                pl.BlockSpec((None, 1, 3 * Hp), lambda d, c: (d, 0, 0)),            # b_hh
            ],
            out_specs=out_spec,
            scratch_shapes=[pltpu.VMEM((Np, Hp), jnp.float32)],
        ),
        compiler_params=pltpu.CompilerParams(
            dimension_semantics=("parallel", "arbitrary"),
            vmem_limit_bytes=_VMEM_LIMIT_BYTES),
    )(h0p, startp, stopp, xp, w_ihp, b_ihp, w_hhp, b_hhp)

    if return_sequence:
        return out[:, :T, :N, :H]
    return out[:, :N, :H]


# ----------------------- image encoder (patch matmul + relu + mean-pool fused) -----------------------

IMG_PATCH = 16
IMG_GRID = 224 // IMG_PATCH        # 14 -> 196 patches of 16*16*3 = 768
IMG_BLOCK = 8                      # images per grid step


def _patch_pool_kernel(x_ref, w_ref, b_ref, o_ref):
    w = w_ref[...]
    b = b_ref[...]
    rows = []
    for i in range(x_ref.shape[0]):            # static unroll over images in the block
        feat = jnp.dot(x_ref[i], w, preferred_element_type=jnp.float32)
        feat = jnp.maximum(feat + b, 0.0)
        rows.append(jnp.mean(feat, axis=0, keepdims=True))
    o_ref[...] = jnp.concatenate(rows, axis=0)


def image_encoder(images_nchw, p, img_feat):
    """[NI, 3, 224, 224] -> [NI, context_input_size]."""
    NI = images_nchw.shape[0]
    P, G = IMG_PATCH, IMG_GRID
    x = images_nchw.astype(jnp.bfloat16)                   # cast BEFORE the re-layout
    x = jnp.transpose(x, (0, 2, 3, 1))                     # NCHW -> NHWC
    x = x.reshape(NI, G, P, G, P, 3)
    x = jnp.transpose(x, (0, 1, 3, 2, 4, 5)).reshape(NI, G * G, P * P * 3)

    NIp = _round_up(NI, IMG_BLOCK)
    if NIp != NI:
        x = jnp.zeros((NIp, G * G, P * P * 3), jnp.bfloat16).at[:NI].set(x)

    Fp = _round_up(img_feat, 128)
    wp = jnp.zeros((P * P * 3, Fp), jnp.bfloat16).at[:, :img_feat].set(
        p["patch_w"].astype(jnp.bfloat16))
    bp = jnp.zeros((1, Fp), jnp.float32).at[0, :img_feat].set(p["patch_b"])

    pooled = pl.pallas_call(
        _patch_pool_kernel,
        out_shape=jax.ShapeDtypeStruct((NIp, Fp), jnp.float32),
        grid_spec=pltpu.PrefetchScalarGridSpec(
            num_scalar_prefetch=0,
            grid=(NIp // IMG_BLOCK,),
            in_specs=[
                pl.BlockSpec((IMG_BLOCK, G * G, P * P * 3), lambda b: (b, 0, 0)),
                pl.BlockSpec((P * P * 3, Fp), lambda b: (0, 0)),
                pl.BlockSpec((1, Fp), lambda b: (0, 0)),
            ],
            out_specs=pl.BlockSpec((IMG_BLOCK, Fp), lambda b: (b, 0)),
        ),
        compiler_params=pltpu.CompilerParams(
            dimension_semantics=("parallel",),
            vmem_limit_bytes=_VMEM_LIMIT_BYTES),
    )(x, wp, bp)

    feat = pooled[:NI, :img_feat]
    return pallas_linear(feat, p["proj_w"], p["proj_b"], activation="relu")


# ----------------------- parameters -----------------------

def _init(key, shape, scale=0.05):
    return scale * jax.random.normal(key, shape, dtype=jnp.float32)


def init_params(key, cfg):
    ks = iter(jax.random.split(key, 32))
    E, He, Hc, Hd, V = (cfg["emb"], cfg["enc_h"], cfg["ctx"],
                        cfg["dec_h"], cfg["vocab"])
    ctx_in = cfg["num_layers"] * He * 2   # bidirectional
    F = cfg["img_feat"]

    def gru(in_dim, hid):
        return dict(w_ih=_init(next(ks), (in_dim, 3 * hid)),
                    b_ih=_init(next(ks), (3 * hid,)),
                    w_hh=_init(next(ks), (hid, 3 * hid)),
                    b_hh=_init(next(ks), (3 * hid,)))

    return dict(
        embedding=_init(next(ks), (V, E)),   # tie_embedding: shared enc/dec
        enc_f=gru(E, He),
        enc_b=gru(E, He),
        img=dict(patch_w=_init(next(ks), (16 * 16 * 3, F)),
                 patch_b=_init(next(ks), (F,)),
                 proj_w=_init(next(ks), (F, ctx_in)),
                 proj_b=_init(next(ks), (ctx_in,))),
        ctx=gru(2 * ctx_in, Hc),
        c2d=dict(w=_init(next(ks), (Hc, cfg["num_layers"] * Hd)),
                 b=_init(next(ks), (cfg["num_layers"] * Hd,))),
        dec=gru(E, Hd),
        out=dict(w=_init(next(ks), (Hd, V)),
                 b=_init(next(ks), (V,))),
    )


# ----------------------- MHRED forward -----------------------

def mhred_forward(params, input_sentences, input_sentence_length,
                  input_conversation_length, target_sentences,
                  input_images, input_images_length, cfg):
    conv_len = np.asarray(input_conversation_length)   # static glue (pad/gather indices)
    batch_size = conv_len.shape[0]
    max_len = int(conv_len.max())
    num_sentences, seq_len = input_sentences.shape
    He, Hc, Hd, V = cfg["enc_h"], cfg["ctx"], cfg["dec_h"], cfg["vocab"]

    # ---- sentence encoder: both directions in ONE fused-projection GRU call,
    #      final hidden state only (no trajectory HBM writeback) ----
    emb = jnp.take(params["embedding"], input_sentences, axis=0)      # [S, T, E]
    emb_t = jnp.transpose(emb.astype(jnp.bfloat16), (1, 0, 2))        # [T, S, E] bf16
    x_bi = jnp.stack([emb_t, emb_t[::-1]], axis=0)                    # [2, T, S, E]
    sl = jnp.asarray(input_sentence_length, jnp.int32)
    start = jnp.stack([jnp.zeros_like(sl), seq_len - sl], axis=0)     # [2, S]
    stop = jnp.stack([sl, jnp.full_like(sl, seq_len)], axis=0)        # [2, S]
    h0 = jnp.zeros((2, num_sentences, He), jnp.float32)
    w_ih_bi = jnp.stack([params["enc_f"]["w_ih"], params["enc_b"]["w_ih"]], 0)
    b_ih_bi = jnp.stack([params["enc_f"]["b_ih"], params["enc_b"]["b_ih"]], 0)
    w_hh_bi = jnp.stack([params["enc_f"]["w_hh"], params["enc_b"]["w_hh"]], 0)
    b_hh_bi = jnp.stack([params["enc_f"]["b_hh"], params["enc_b"]["b_hh"]], 0)
    enc_final = pallas_gru(x_bi, h0, w_ih_bi, b_ih_bi, w_hh_bi, b_hh_bi,
                           start, stop, return_sequence=False)        # [2, S, He]
    encoder_hidden = jnp.concatenate([enc_final[0], enc_final[1]], axis=1)  # [S, 2He]

    # ---- image encoder ----
    imgs = input_images.reshape(batch_size, -1, 3, 224, 224)[:, :max_len]
    imgs = imgs.reshape(-1, 3, 224, 224)
    # TODO(synk): input_images_length is sliced and unused, matching the reference forward.
    img_enc = image_encoder(imgs, params["img"], cfg["img_feat"]
                            ).reshape(batch_size, max_len, -1)

    # ---- pad per-conversation encoder hidden to max_len (one static gather) ----
    starts = np.concatenate([[0], np.cumsum(conv_len)[:-1]])
    gather_idx = np.full((batch_size, max_len), num_sentences, dtype=np.int32)
    for i, (s0, l) in enumerate(zip(starts.tolist(), conv_len.tolist())):
        gather_idx[i, :l] = np.arange(s0, s0 + l)
    eh_ext = jnp.concatenate(
        [encoder_hidden, jnp.zeros((1, encoder_hidden.shape[1]), jnp.float32)], axis=0)
    enc_hidden_padded = jnp.take(eh_ext, jnp.asarray(gather_idx), axis=0)   # [B, L, 2He]

    comb = jnp.concatenate([enc_hidden_padded, img_enc], axis=2)      # [B, L, 2*ctx_in]

    # ---- context GRU (raw features streamed, input projection fused in-kernel) ----
    cl = jnp.asarray(conv_len, jnp.int32)
    ctx_x = jnp.transpose(comb, (1, 0, 2)).astype(jnp.bfloat16)[None]  # [1, L, B, 2*ctx_in]
    ctx_out = pallas_gru(ctx_x, jnp.zeros((1, batch_size, Hc), jnp.float32),
                         params["ctx"]["w_ih"][None], params["ctx"]["b_ih"][None],
                         params["ctx"]["w_hh"][None], params["ctx"]["b_hh"][None],
                         jnp.zeros((1, batch_size), jnp.int32), cl[None],
                         return_sequence=True)                        # [1, L, B, Hc]
    ctx_outputs = jnp.transpose(ctx_out[0], (1, 0, 2))                # [B, L, Hc]

    # ---- gather valid timesteps of each conversation (one static gather) ----
    flat_idx = np.concatenate(
        [i * max_len + np.arange(l) for i, l in enumerate(conv_len.tolist())]
    ).astype(np.int32)
    ctx_flat = jnp.take(ctx_outputs.reshape(batch_size * max_len, -1),
                        jnp.asarray(flat_idx), axis=0)                # [S, Hc]

    # ---- context2decoder (tanh fused into the linear epilogue) ----
    dec_init = pallas_linear(ctx_flat, params["c2d"]["w"], params["c2d"]["b"],
                             activation="tanh")
    dec_init = dec_init.reshape(cfg["num_layers"], num_sentences, Hd)

    # ---- decoder (teacher forcing; decode=False path) ----
    temb = jnp.take(params["embedding"], target_sentences, axis=0)    # [S, T, E]
    dec_x = jnp.transpose(temb.astype(jnp.bfloat16), (1, 0, 2))[None]  # [1, T, S, E]
    dec_out = pallas_gru(dec_x, dec_init[:1],
                         params["dec"]["w_ih"][None], params["dec"]["b_ih"][None],
                         params["dec"]["w_hh"][None], params["dec"]["b_hh"][None],
                         jnp.zeros((1, num_sentences), jnp.int32),
                         jnp.full((1, num_sentences), seq_len, jnp.int32),
                         return_sequence=True)                        # [1, T, S, Hd]
    dec_outs = jnp.transpose(dec_out[0], (1, 0, 2))                   # [S, T, Hd]
    logits = pallas_linear(dec_outs.reshape(num_sentences * seq_len, -1),
                           params["out"]["w"], params["out"]["b"])
    return logits.reshape(num_sentences, seq_len, V)


# ----------------------- main -----------------------

if __name__ == "__main__":
    cfg = dict(vocab=64, emb=32, enc_h=32, ctx=32, dec_h=32,
               num_layers=1, img_feat=64)

    key = jax.random.PRNGKey(0)
    k_par, k_sent, k_len, k_tgt, k_img = jax.random.split(key, 5)

    batch_size = 2
    conv_len = np.array([3, 2], dtype=np.int32)        # conversation lengths
    num_sentences = int(conv_len.sum())                 # 5
    max_len = int(conv_len.max())                       # 3
    seq_len = 8

    params = init_params(k_par, cfg)

    input_sentences = jax.random.randint(
        k_sent, (num_sentences, seq_len), 1, cfg["vocab"], dtype=jnp.int32)
    input_sentence_length = jax.random.randint(
        k_len, (num_sentences,), 3, seq_len + 1, dtype=jnp.int32)
    target_sentences = jax.random.randint(
        k_tgt, (num_sentences, seq_len), 1, cfg["vocab"], dtype=jnp.int32)
    input_images = jax.random.normal(
        k_img, (batch_size * max_len, 3, 224, 224), dtype=jnp.float32)
    input_images_length = jnp.ones((batch_size * max_len,), dtype=jnp.int32)

    out = mhred_forward(params, input_sentences, input_sentence_length,
                        conv_len, target_sentences, input_images,
                        input_images_length, cfg)
    out = jax.block_until_ready(out)
    assert out.shape == (num_sentences, seq_len, cfg["vocab"]), out.shape
    assert bool(jnp.all(jnp.isfinite(out)))
    print("KERNEL_OK")
</pallas_src>

<mosaic_0001>
module attributes {stable_mosaic.version = 11 : i64} {
  func.func @_gru_kernel(%arg0: i32, %arg1: i32, %arg2: memref<1x8x128xf32, #tpu.memory_space<vmem>>, %arg3: memref<1x8x1xi32, #tpu.memory_space<vmem>>, %arg4: memref<1x8x1xi32, #tpu.memory_space<vmem>>, %arg5: memref<1x8x8x128xbf16, #tpu.memory_space<vmem>>, %arg6: memref<1x128x384xbf16, #tpu.memory_space<vmem>>, %arg7: memref<1x1x384xf32, #tpu.memory_space<vmem>>, %arg8: memref<1x128x384xbf16, #tpu.memory_space<vmem>>, %arg9: memref<1x1x384xf32, #tpu.memory_space<vmem>>, %arg10: memref<1x8x128xf32, #tpu.memory_space<vmem>>, %arg11: memref<8x128xf32, #tpu.memory_space<vmem>>) attributes {dimension_semantics = [#tpu.dimension_semantics<parallel>, #tpu.dimension_semantics<arbitrary>], iteration_bounds = array<i64: 2, 1>, scalar_prefetch = 0 : i64, scratch_operands = 1 : i64, tpu.core_type = #tpu.core_type<tc>, window_params = [{transform_indices = @transform_0, window_bounds = array<i64: 1, 8, 128>}, {transform_indices = @transform_1, window_bounds = array<i64: 1, 8, 1>}, {transform_indices = @transform_2, window_bounds = array<i64: 1, 8, 1>}, {transform_indices = @transform_3, window_bounds = array<i64: 1, 8, 8, 128>}, {transform_indices = @transform_4, window_bounds = array<i64: 1, 128, 384>}, {transform_indices = @transform_5, window_bounds = array<i64: 1, 1, 384>}, {transform_indices = @transform_6, window_bounds = array<i64: 1, 128, 384>}, {transform_indices = @transform_7, window_bounds = array<i64: 1, 1, 384>}, {transform_indices = @transform_8, window_bounds = array<i64: 1, 8, 128>}]} {
    %c0_i32 = arith.constant 0 : i32
    %0 = arith.cmpi eq, %arg1, %c0_i32 : i32
    %1 = arith.extui %0 : i1 to i32
    %c0_i32_0 = arith.constant 0 : i32
    %2 = arith.cmpi ne, %1, %c0_i32_0 : i32
    scf.if %2 {
      %c0_96 = arith.constant 0 : index
      %c0_97 = arith.constant 0 : index
      %c0_98 = arith.constant 0 : index
      %380 = vector.load %arg2[%c0_96, %c0_97, %c0_98] : memref<1x8x128xf32, #tpu.memory_space<vmem>>, vector<1x8x128xf32>
      %381 = vector.shape_cast %380 : vector<1x8x128xf32> to vector<8x128xf32>
      %c0_99 = arith.constant 0 : index
      %c0_100 = arith.constant 0 : index
      %382 = vector.load %arg11[%c0_99, %c0_100] : memref<8x128xf32, #tpu.memory_space<vmem>>, vector<8x128xf32>
      tpu.vector_store %arg11[%c0_99, %c0_100], %381 {strides = array<i32>} : memref<8x128xf32, #tpu.memory_space<vmem>>, vector<8x128xf32>,
    } else {
    }
    %c0 = arith.constant 0 : index
    %c0_1 = arith.constant 0 : index
    %c0_2 = arith.constant 0 : index
    %3 = vector.load %arg6[%c0, %c0_1, %c0_2] : memref<1x128x384xbf16, #tpu.memory_space<vmem>>, vector<1x128x384xbf16>
    %4 = vector.shape_cast %3 : vector<1x128x384xbf16> to vector<128x384xbf16>
    %c0_3 = arith.constant 0 : index
    %c0_4 = arith.constant 0 : index
    %c0_5 = arith.constant 0 : index
    %5 = vector.load %arg8[%c0_3, %c0_4, %c0_5] : memref<1x128x384xbf16, #tpu.memory_space<vmem>>, vector<1x128x384xbf16>
    %6 = vector.shape_cast %5 : vector<1x128x384xbf16> to vector<128x384xbf16>
    %c0_6 = arith.constant 0 : index
    %c0_7 = arith.constant 0 : index
    %c0_8 = arith.constant 0 : index
    %7 = vector.load %arg7[%c0_6, %c0_7, %c0_8] : memref<1x1x384xf32, #tpu.memory_space<vmem>>, vector<1x1x384xf32>
    %8 = vector.shape_cast %7 : vector<1x1x384xf32> to vector<1x384xf32>
    %c0_9 = arith.constant 0 : index
    %c0_10 = arith.constant 0 : index
    %c0_11 = arith.constant 0 : index
    %9 = vector.load %arg9[%c0_9, %c0_10, %c0_11] : memref<1x1x384xf32, #tpu.memory_space<vmem>>, vector<1x1x384xf32>
    %10 = vector.shape_cast %9 : vector<1x1x384xf32> to vector<1x384xf32>
    %c0_12 = arith.constant 0 : index
    %c0_13 = arith.constant 0 : index
    %c0_14 = arith.constant 0 : index
    %11 = vector.load %arg3[%c0_12, %c0_13, %c0_14] : memref<1x8x1xi32, #tpu.memory_space<vmem>>, vector<1x8x1xi32>
    %12 = vector.shape_cast %11 : vector<1x8x1xi32> to vector<8x1xi32>
    %c0_15 = arith.constant 0 : index
    %c0_16 = arith.constant 0 : index
    %c0_17 = arith.constant 0 : index
    %13 = vector.load %arg4[%c0_15, %c0_16, %c0_17] : memref<1x8x1xi32, #tpu.memory_space<vmem>>, vector<1x8x1xi32>
    %14 = vector.shape_cast %13 : vector<1x8x1xi32> to vector<8x1xi32>
    %c0_18 = arith.constant 0 : index
    %c0_19 = arith.constant 0 : index
    %15 = vector.load %arg11[%c0_18, %c0_19] : memref<8x128xf32, #tpu.memory_space<vmem>>, vector<8x128xf32>
    %c8_i32 = arith.constant 8 : i32
    %16 = arith.muli %arg1, %c8_i32 : i32
    %c0_i32_20 = arith.constant 0 : i32
    %17 = arith.addi %16, %c0_i32_20 : i32
    %c0_21 = arith.constant 0 : index
    %c0_22 = arith.constant 0 : index
    %c0_23 = arith.constant 0 : index
    %c0_24 = arith.constant 0 : index
    %18 = vector.load %arg5[%c0_21, %c0_22, %c0_23, %c0_24] : memref<1x8x8x128xbf16, #tpu.memory_space<vmem>>, vector<1x1x8x128xbf16>
    %19 = vector.shape_cast %18 : vector<1x1x8x128xbf16> to vector<8x128xbf16>
    %cst = arith.constant dense<0.000000e+00> : vector<8x384xf32>
    %20 = tpu.matmul %19, %4, %cst {dimension_numbers = #tpu.dot_dimension_numbers<[1], [0], [0], [1], [0, 0, 1, 1], [], []>} : vector<8x128xbf16>, vector<128x384xbf16>, vector<8x384xf32> -> vector<8x384xf32>
    %21 = vector.broadcast %8 : vector<1x384xf32> to vector<8x384xf32>
    %22 = arith.addf %20, %21 : vector<8x384xf32>
    %23 = arith.truncf %15 : vector<8x128xf32> to vector<8x128xbf16>
    %cst_25 = arith.constant dense<0.000000e+00> : vector<8x384xf32>
    %24 = tpu.matmul %23, %6, %cst_25 {dimension_numbers = #tpu.dot_dimension_numbers<[1], [0], [0], [1], [0, 0, 1, 1], [], []>} : vector<8x128xbf16>, vector<128x384xbf16>, vector<8x384xf32> -> vector<8x384xf32>
    %25 = vector.broadcast %10 : vector<1x384xf32> to vector<8x384xf32>
    %26 = arith.addf %24, %25 : vector<8x384xf32>
    %27 = vector.extract_strided_slice %22 {offsets = [0, 0], sizes = [8, 128], strides = [1, 1]} : vector<8x384xf32> to vector<8x128xf32>
    %28 = vector.extract_strided_slice %26 {offsets = [0, 0], sizes = [8, 128], strides = [1, 1]} : vector<8x384xf32> to vector<8x128xf32>
    %29 = arith.addf %27, %28 : vector<8x128xf32>
    %30 = arith.negf %29 : vector<8x128xf32>
    %31 = math.exp %30 : vector<8x128xf32>
    %cst_26 = arith.constant 1.000000e+00 : f32
    %32 = vector.broadcast %cst_26 : f32 to vector<8x128xf32>
    %33 = arith.addf %32, %31 : vector<8x128xf32>
    %34 = arith.divf %32, %33 : vector<8x128xf32>
    %35 = vector.extract_strided_slice %22 {offsets = [0, 128], sizes = [8, 128], strides = [1, 1]} : vector<8x384xf32> to vector<8x128xf32>
    %36 = vector.extract_strided_slice %26 {offsets = [0, 128], sizes = [8, 128], strides = [1, 1]} : vector<8x384xf32> to vector<8x128xf32>
    %37 = arith.addf %35, %36 : vector<8x128xf32>
    %38 = arith.negf %37 : vector<8x128xf32>
    %39 = math.exp %38 : vector<8x128xf32>
    %cst_27 = arith.constant 1.000000e+00 : f32
    %40 = vector.broadcast %cst_27 : f32 to vector<8x128xf32>
    %41 = arith.addf %40, %39 : vector<8x128xf32>
    %42 = arith.divf %40, %41 : vector<8x128xf32>
    %43 = vector.extract_strided_slice %22 {offsets = [0, 256], sizes = [8, 128], strides = [1, 1]} : vector<8x384xf32> to vector<8x128xf32>
    %44 = vector.extract_strided_slice %26 {offsets = [0, 256], sizes = [8, 128], strides = [1, 1]} : vector<8x384xf32> to vector<8x128xf32>
    %45 = arith.mulf %34, %44 : vector<8x128xf32>
    %46 = arith.addf %43, %45 : vector<8x128xf32>
    %47 = math.tanh %46 : vector<8x128xf32>
    %cst_28 = arith.constant 1.000000e+00 : f32
    %48 = vector.broadcast %cst_28 : f32 to vector<8x128xf32>
    %49 = arith.subf %48, %42 : vector<8x128xf32>
    %50 = arith.mulf %49, %47 : vector<8x128xf32>
    %51 = arith.mulf %42, %15 : vector<8x128xf32>
    %52 = arith.addf %50, %51 : vector<8x128xf32>
    %53 = vector.broadcast %17 : i32 to vector<8x1xi32>
    %54 = arith.cmpi sge, %53, %12 : vector<8x1xi32>
    %55 = vector.broadcast %17 : i32 to vector<8x1xi32>
    %56 = arith.cmpi slt, %55, %14 : vector<8x1xi32>
    %57 = arith.andi %54, %56 : vector<8x1xi1>
    %58 = vector.shape_cast %57 : vector<8x1xi1> to vector<8x1xi1>
    %59 = vector.broadcast %58 : vector<8x1xi1> to vector<8x128xi1>
    %60 = arith.select %59, %52, %15 : vector<8x128xi1>, vector<8x128xf32>
    %c8_i32_29 = arith.constant 8 : i32
    %61 = arith.muli %arg1, %c8_i32_29 : i32
    %c1_i32 = arith.constant 1 : i32
    %62 = arith.addi %61, %c1_i32 : i32
    %c0_30 = arith.constant 0 : index
    %c1 = arith.constant 1 : index
    %c0_31 = arith.constant 0 : index
    %c0_32 = arith.constant 0 : index
    %63 = vector.load %arg5[%c0_30, %c1, %c0_31, %c0_32] : memref<1x8x8x128xbf16, #tpu.memory_space<vmem>>, vector<1x1x8x128xbf16>
    %64 = vector.shape_cast %63 : vector<1x1x8x128xbf16> to vector<8x128xbf16>
    %cst_33 = arith.constant dense<0.000000e+00> : vector<8x384xf32>
    %65 = tpu.matmul %64, %4, %cst_33 {dimension_numbers = #tpu.dot_dimension_numbers<[1], [0], [0], [1], [0, 0, 1, 1], [], []>} : vector<8x128xbf16>, vector<128x384xbf16>, vector<8x384xf32> -> vector<8x384xf32>
    %66 = vector.broadcast %8 : vector<1x384xf32> to vector<8x384xf32>
    %67 = arith.addf %65, %66 : vector<8x384xf32>
    %68 = arith.truncf %60 : vector<8x128xf32> to vector<8x128xbf16>
    %cst_34 = arith.constant dense<0.000000e+00> : vector<8x384xf32>
    %69 = tpu.matmul %68, %6, %cst_34 {dimension_numbers = #tpu.dot_dimension_numbers<[1], [0], [0], [1], [0, 0, 1, 1], [], []>} : vector<8x128xbf16>, vector<128x384xbf16>, vector<8x384xf32> -> vector<8x384xf32>
    %70 = vector.broadcast %10 : vector<1x384xf32> to vector<8x384xf32>
    %71 = arith.addf %69, %70 : vector<8x384xf32>
    %72 = vector.extract_strided_slice %67 {offsets = [0, 0], sizes = [8, 128], strides = [1, 1]} : vector<8x384xf32> to vector<8x128xf32>
    %73 = vector.extract_strided_slice %71 {offsets = [0, 0], sizes = [8, 128], strides = [1, 1]} : vector<8x384xf32> to vector<8x128xf32>
    %74 = arith.addf %72, %73 : vector<8x128xf32>
    %75 = arith.negf %74 : vector<8x128xf32>
    %76 = math.exp %75 : vector<8x128xf32>
    %cst_35 = arith.constant 1.000000e+00 : f32
    %77 = vector.broadcast %cst_35 : f32 to vector<8x128xf32>
    %78 = arith.addf %77, %76 : vector<8x128xf32>
    %79 = arith.divf %77, %78 : vector<8x128xf32>
    %80 = vector.extract_strided_slice %67 {offsets = [0, 128], sizes = [8, 128], strides = [1, 1]} : vector<8x384xf32> to vector<8x128xf32>
    %81 = vector.extract_strided_slice %71 {offsets = [0, 128], sizes = [8, 128], strides = [1, 1]} : vector<8x384xf32> to vector<8x128xf32>
    %82 = arith.addf %80, %81 : vector<8x128xf32>
    %83 = arith.negf %82 : vector<8x128xf32>
    %84 = math.exp %83 : vector<8x128xf32>
    %cst_36 = arith.constant 1.000000e+00 : f32
    %85 = vector.broadcast %cst_36 : f32 to vector<8x128xf32>
    %86 = arith.addf %85, %84 : vector<8x128xf32>
    %87 = arith.divf %85, %86 : vector<8x128xf32>
    %88 = vector.extract_strided_slice %67 {offsets = [0, 256], sizes = [8, 128], strides = [1, 1]} : vector<8x384xf32> to vector<8x128xf32>
    %89 = vector.extract_strided_slice %71 {offsets = [0, 256], sizes = [8, 128], strides = [1, 1]} : vector<8x384xf32> to vector<8x128xf32>
    %90 = arith.mulf %79, %89 : vector<8x128xf32>
    %91 = arith.addf %88, %90 : vector<8x128xf32>
    %92 = math.tanh %91 : vector<8x128xf32>
    %cst_37 = arith.constant 1.000000e+00 : f32
    %93 = vector.broadcast %cst_37 : f32 to vector<8x128xf32>
    %94 = arith.subf %93, %87 : vector<8x128xf32>
    %95 = arith.mulf %94, %92 : vector<8x128xf32>
    %96 = arith.mulf %87, %60 : vector<8x128xf32>
    %97 = arith.addf %95, %96 : vector<8x128xf32>
    %98 = vector.broadcast %62 : i32 to vector<8x1xi32>
    %99 = arith.cmpi sge, %98, %12 : vector<8x1xi32>
    %100 = vector.broadcast %62 : i32 to vector<8x1xi32>
    %101 = arith.cmpi slt, %100, %14 : vector<8x1xi32>
    %102 = arith.andi %99, %101 : vector<8x1xi1>
    %103 = vector.shape_cast %102 : vector<8x1xi1> to vector<8x1xi1>
    %104 = vector.broadcast %103 : vector<8x1xi1> to vector<8x128xi1>
    %105 = arith.select %104, %97, %60 : vector<8x128xi1>, vector<8x128xf32>
    %c8_i32_38 = arith.constant 8 : i32
    %106 = arith.muli %arg1, %c8_i32_38 : i32
    %c2_i32 = arith.constant 2 : i32
    %107 = arith.addi %106, %c2_i32 : i32
    %c0_39 = arith.constant 0 : index
    %c2 = arith.constant 2 : index
    %c0_40 = arith.constant 0 : index
    %c0_41 = arith.constant 0 : index
    %108 = vector.load %arg5[%c0_39, %c2, %c0_40, %c0_41] : memref<1x8x8x128xbf16, #tpu.memory_space<vmem>>, vector<1x1x8x128xbf16>
    %109 = vector.shape_cast %108 : vector<1x1x8x128xbf16> to vector<8x128xbf16>
    %cst_42 = arith.constant dense<0.000000e+00> : vector<8x384xf32>
    %110 = tpu.matmul %109, %4, %cst_42 {dimension_numbers = #tpu.dot_dimension_numbers<[1], [0], [0], [1], [0, 0, 1, 1], [], []>} : vector<8x128xbf16>, vector<128x384xbf16>, vector<8x384xf32> -> vector<8x384xf32>
    %111 = vector.broadcast %8 : vector<1x384xf32> to vector<8x384xf32>
    %112 = arith.addf %110, %111 : vector<8x384xf32>
    %113 = arith.truncf %105 : vector<8x128xf32> to vector<8x128xbf16>
    %cst_43 = arith.constant dense<0.000000e+00> : vector<8x384xf32>
    %114 = tpu.matmul %113, %6, %cst_43 {dimension_numbers = #tpu.dot_dimension_numbers<[1], [0], [0], [1], [0, 0, 1, 1], [], []>} : vector<8x128xbf16>, vector<128x384xbf16>, vector<8x384xf32> -> vector<8x384xf32>
    %115 = vector.broadcast %10 : vector<1x384xf32> to vector<8x384xf32>
    %116 = arith.addf %114, %115 : vector<8x384xf32>
    %117 = vector.extract_strided_slice %112 {offsets = [0, 0], sizes = [8, 128], strides = [1, 1]} : vector<8x384xf32> to vector<8x128xf32>
    %118 = vector.extract_strided_slice %116 {offsets = [0, 0], sizes = [8, 128], strides = [1, 1]} : vector<8x384xf32> to vector<8x128xf32>
    %119 = arith.addf %117, %118 : vector<8x128xf32>
    %120 = arith.negf %119 : vector<8x128xf32>
    %121 = math.exp %120 : vector<8x128xf32>
    %cst_44 = arith.constant 1.000000e+00 : f32
    %122 = vector.broadcast %cst_44 : f32 to vector<8x128xf32>
    %123 = arith.addf %122, %121 : vector<8x128xf32>
    %124 = arith.divf %122, %123 : vector<8x128xf32>
    %125 = vector.extract_strided_slice %112 {offsets = [0, 128], sizes = [8, 128], strides = [1, 1]} : vector<8x384xf32> to vector<8x128xf32>
    %126 = vector.extract_strided_slice %116 {offsets = [0, 128], sizes = [8, 128], strides = [1, 1]} : vector<8x384xf32> to vector<8x128xf32>
    %127 = arith.addf %125, %126 : vector<8x128xf32>
    %128 = arith.negf %127 : vector<8x128xf32>
    %129 = math.exp %128 : vector<8x128xf32>
    %cst_45 = arith.constant 1.000000e+00 : f32
    %130 = vector.broadcast %cst_45 : f32 to vector<8x128xf32>
    %131 = arith.addf %130, %129 : vector<8x128xf32>
    %132 = arith.divf %130, %131 : vector<8x128xf32>
    %133 = vector.extract_strided_slice %112 {offsets = [0, 256], sizes = [8, 128], strides = [1, 1]} : vector<8x384xf32> to vector<8x128xf32>
    %134 = vector.extract_strided_slice %116 {offsets = [0, 256], sizes = [8, 128], strides = [1, 1]} : vector<8x384xf32> to vector<8x128xf32>
    %135 = arith.mulf %124, %134 : vector<8x128xf32>
    %136 = arith.addf %133, %135 : vector<8x128xf32>
    %137 = math.tanh %136 : vector<8x128xf32>
    %cst_46 = arith.constant 1.000000e+00 : f32
    %138 = vector.broadcast %cst_46 : f32 to vector<8x128xf32>
    %139 = arith.subf %138, %132 : vector<8x128xf32>
    %140 = arith.mulf %139, %137 : vector<8x128xf32>
    %141 = arith.mulf %132, %105 : vector<8x128xf32>
    %142 = arith.addf %140, %141 : vector<8x128xf32>
    %143 = vector.broadcast %107 : i32 to vector<8x1xi32>
    %144 = arith.cmpi sge, %143, %12 : vector<8x1xi32>
    %145 = vector.broadcast %107 : i32 to vector<8x1xi32>
    %146 = arith.cmpi slt, %145, %14 : vector<8x1xi32>
    %147 = arith.andi %144, %146 : vector<8x1xi1>
    %148 = vector.shape_cast %147 : vector<8x1xi1> to vector<8x1xi1>
    %149 = vector.broadcast %148 : vector<8x1xi1> to vector<8x128xi1>
    %150 = arith.select %149, %142, %105 : vector<8x128xi1>, vector<8x128xf32>
    %c8_i32_47 = arith.constant 8 : i32
    %151 = arith.muli %arg1, %c8_i32_47 : i32
    %c3_i32 = arith.constant 3 : i32
    %152 = arith.addi %151, %c3_i32 : i32
    %c0_48 = arith.constant 0 : index
    %c3 = arith.constant 3 : index
    %c0_49 = arith.constant 0 : index
    %c0_50 = arith.constant 0 : index
    %153 = vector.load %arg5[%c0_48, %c3, %c0_49, %c0_50] : memref<1x8x8x128xbf16, #tpu.memory_space<vmem>>, vector<1x1x8x128xbf16>
    %154 = vector.shape_cast %153 : vector<1x1x8x128xbf16> to vector<8x128xbf16>
    %cst_51 = arith.constant dense<0.000000e+00> : vector<8x384xf32>
    %155 = tpu.matmul %154, %4, %cst_51 {dimension_numbers = #tpu.dot_dimension_numbers<[1], [0], [0], [1], [0, 0, 1, 1], [], []>} : vector<8x128xbf16>, vector<128x384xbf16>, vector<8x384xf32> -> vector<8x384xf32>
    %156 = vector.broadcast %8 : vector<1x384xf32> to vector<8x384xf32>
    %157 = arith.addf %155, %156 : vector<8x384xf32>
    %158 = arith.truncf %150 : vector<8x128xf32> to vector<8x128xbf16>
    %cst_52 = arith.constant dense<0.000000e+00> : vector<8x384xf32>
    %159 = tpu.matmul %158, %6, %cst_52 {dimension_numbers = #tpu.dot_dimension_numbers<[1], [0], [0], [1], [0, 0, 1, 1], [], []>} : vector<8x128xbf16>, vector<128x384xbf16>, vector<8x384xf32> -> vector<8x384xf32>
    %160 = vector.broadcast %10 : vector<1x384xf32> to vector<8x384xf32>
    %161 = arith.addf %159, %160 : vector<8x384xf32>
    %162 = vector.extract_strided_slice %157 {offsets = [0, 0], sizes = [8, 128], strides = [1, 1]} : vector<8x384xf32> to vector<8x128xf32>
    %163 = vector.extract_strided_slice %161 {offsets = [0, 0], sizes = [8, 128], strides = [1, 1]} : vector<8x384xf32> to vector<8x128xf32>
    %164 = arith.addf %162, %163 : vector<8x128xf32>
    %165 = arith.negf %164 : vector<8x128xf32>
    %166 = math.exp %165 : vector<8x128xf32>
    %cst_53 = arith.constant 1.000000e+00 : f32
    %167 = vector.broadcast %cst_53 : f32 to vector<8x128xf32>
    %168 = arith.addf %167, %166 : vector<8x128xf32>
    %169 = arith.divf %167, %168 : vector<8x128xf32>
    %170 = vector.extract_strided_slice %157 {offsets = [0, 128], sizes = [8, 128], strides = [1, 1]} : vector<8x384xf32> to vector<8x128xf32>
    %171 = vector.extract_strided_slice %161 {offsets = [0, 128], sizes = [8, 128], strides = [1, 1]} : vector<8x384xf32> to vector<8x128xf32>
    %172 = arith.addf %170, %171 : vector<8x128xf32>
    %173 = arith.negf %172 : vector<8x128xf32>
    %174 = math.exp %173 : vector<8x128xf32>
    %cst_54 = arith.constant 1.000000e+00 : f32
    %175 = vector.broadcast %cst_54 : f32 to vector<8x128xf32>
    %176 = arith.addf %175, %174 : vector<8x128xf32>
    %177 = arith.divf %175, %176 : vector<8x128xf32>
    %178 = vector.extract_strided_slice %157 {offsets = [0, 256], sizes = [8, 128], strides = [1, 1]} : vector<8x384xf32> to vector<8x128xf32>
    %179 = vector.extract_strided_slice %161 {offsets = [0, 256], sizes = [8, 128], strides = [1, 1]} : vector<8x384xf32> to vector<8x128xf32>
    %180 = arith.mulf %169, %179 : vector<8x128xf32>
    %181 = arith.addf %178, %180 : vector<8x128xf32>
    %182 = math.tanh %181 : vector<8x128xf32>
    %cst_55 = arith.constant 1.000000e+00 : f32
    %183 = vector.broadcast %cst_55 : f32 to vector<8x128xf32>
    %184 = arith.subf %183, %177 : vector<8x128xf32>
    %185 = arith.mulf %184, %182 : vector<8x128xf32>
    %186 = arith.mulf %177, %150 : vector<8x128xf32>
    %187 = arith.addf %185, %186 : vector<8x128xf32>
    %188 = vector.broadcast %152 : i32 to vector<8x1xi32>
    %189 = arith.cmpi sge, %188, %12 : vector<8x1xi32>
    %190 = vector.broadcast %152 : i32 to vector<8x1xi32>
    %191 = arith.cmpi slt, %190, %14 : vector<8x1xi32>
    %192 = arith.andi %189, %191 : vector<8x1xi1>
    %193 = vector.shape_cast %192 : vector<8x1xi1> to vector<8x1xi1>
    %194 = vector.broadcast %193 : vector<8x1xi1> to vector<8x128xi1>
    %195 = arith.select %194, %187, %150 : vector<8x128xi1>, vector<8x128xf32>
    %c8_i32_56 = arith.constant 8 : i32
    %196 = arith.muli %arg1, %c8_i32_56 : i32
    %c4_i32 = arith.constant 4 : i32
    %197 = arith.addi %196, %c4_i32 : i32
    %c0_57 = arith.constant 0 : index
    %c4 = arith.constant 4 : index
    %c0_58 = arith.constant 0 : index
    %c0_59 = arith.constant 0 : index
    %198 = vector.load %arg5[%c0_57, %c4, %c0_58, %c0_59] : memref<1x8x8x128xbf16, #tpu.memory_space<vmem>>, vector<1x1x8x128xbf16>
    %199 = vector.shape_cast %198 : vector<1x1x8x128xbf16> to vector<8x128xbf16>
    %cst_60 = arith.constant dense<0.000000e+00> : vector<8x384xf32>
    %200 = tpu.matmul %199, %4, %cst_60 {dimension_numbers = #tpu.dot_dimension_numbers<[1], [0], [0], [1], [0, 0, 1, 1], [], []>} : vector<8x128xbf16>, vector<128x384xbf16>, vector<8x384xf32> -> vector<8x384xf32>
    %201 = vector.broadcast %8 : vector<1x384xf32> to vector<8x384xf32>
    %202 = arith.addf %200, %201 : vector<8x384xf32>
    %203 = arith.truncf %195 : vector<8x128xf32> to vector<8x128xbf16>
    %cst_61 = arith.constant dense<0.000000e+00> : vector<8x384xf32>
    %204 = tpu.matmul %203, %6, %cst_61 {dimension_numbers = #tpu.dot_dimension_numbers<[1], [0], [0], [1], [0, 0, 1, 1], [], []>} : vector<8x128xbf16>, vector<128x384xbf16>, vector<8x384xf32> -> vector<8x384xf32>
    %205 = vector.broadcast %10 : vector<1x384xf32> to vector<8x384xf32>
    %206 = arith.addf %204, %205 : vector<8x384xf32>
    %207 = vector.extract_strided_slice %202 {offsets = [0, 0], sizes = [8, 128], strides = [1, 1]} : vector<8x384xf32> to vector<8x128xf32>
    %208 = vector.extract_strided_slice %206 {offsets = [0, 0], sizes = [8, 128], strides = [1, 1]} : vector<8x384xf32> to vector<8x128xf32>
    %209 = arith.addf %207, %208 : vector<8x128xf32>
    %210 = arith.negf %209 : vector<8x128xf32>
    %211 = math.exp %210 : vector<8x128xf32>
    %cst_62 = arith.constant 1.000000e+00 : f32
    %212 = vector.broadcast %cst_62 : f32 to vector<8x128xf32>
    %213 = arith.addf %212, %211 : vector<8x128xf32>
    %214 = arith.divf %212, %213 : vector<8x128xf32>
    %215 = vector.extract_strided_slice %202 {offsets = [0, 128], sizes = [8, 128], strides = [1, 1]} : vector<8x384xf32> to vector<8x128xf32>
    %216 = vector.extract_strided_slice %206 {offsets = [0, 128], sizes = [8, 128], strides = [1, 1]} : vector<8x384xf32> to vector<8x128xf32>
    %217 = arith.addf %215, %216 : vector<8x128xf32>
    %218 = arith.negf %217 : vector<8x128xf32>
    %219 = math.exp %218 : vector<8x128xf32>
    %cst_63 = arith.constant 1.000000e+00 : f32
    %220 = vector.broadcast %cst_63 : f32 to vector<8x128xf32>
    %221 = arith.addf %220, %219 : vector<8x128xf32>
    %222 = arith.divf %220, %221 : vector<8x128xf32>
    %223 = vector.extract_strided_slice %202 {offsets = [0, 256], sizes = [8, 128], strides = [1, 1]} : vector<8x384xf32> to vector<8x128xf32>
    %224 = vector.extract_strided_slice %206 {offsets = [0, 256], sizes = [8, 128], strides = [1, 1]} : vector<8x384xf32> to vector<8x128xf32>
    %225 = arith.mulf %214, %224 : vector<8x128xf32>
    %226 = arith.addf %223, %225 : vector<8x128xf32>
    %227 = math.tanh %226 : vector<8x128xf32>
    %cst_64 = arith.constant 1.000000e+00 : f32
    %228 = vector.broadcast %cst_64 : f32 to vector<8x128xf32>
    %229 = arith.subf %228, %222 : vector<8x128xf32>
    %230 = arith.mulf %229, %227 : vector<8x128xf32>
    %231 = arith.mulf %222, %195 : vector<8x128xf32>
    %232 = arith.addf %230, %231 : vector<8x128xf32>
    %233 = vector.broadcast %197 : i32 to vector<8x1xi32>
    %234 = arith.cmpi sge, %233, %12 : vector<8x1xi32>
    %235 = vector.broadcast %197 : i32 to vector<8x1xi32>
    %236 = arith.cmpi slt, %235, %14 : vector<8x1xi32>
    %237 = arith.andi %234, %236 : vector<8x1xi1>
    %238 = vector.shape_cast %237 : vector<8x1xi1> to vector<8x1xi1>
    %239 = vector.broadcast %238 : vector<8x1xi1> to vector<8x128xi1>
    %240 = arith.select %239, %232, %195 : vector<8x128xi1>, vector<8x128xf32>
    %c8_i32_65 = arith.constant 8 : i32
    %241 = arith.muli %arg1, %c8_i32_65 : i32
    %c5_i32 = arith.constant 5 : i32
    %242 = arith.addi %241, %c5_i32 : i32
    %c0_66 = arith.constant 0 : index
    %c5 = arith.constant 5 : index
    %c0_67 = arith.constant 0 : index
    %c0_68 = arith.constant 0 : index
    %243 = vector.load %arg5[%c0_66, %c5, %c0_67, %c0_68] : memref<1x8x8x128xbf16, #tpu.memory_space<vmem>>, vector<1x1x8x128xbf16>
    %244 = vector.shape_cast %243 : vector<1x1x8x128xbf16> to vector<8x128xbf16>
    %cst_69 = arith.constant dense<0.000000e+00> : vector<8x384xf32>
    %245 = tpu.matmul %244, %4, %cst_69 {dimension_numbers = #tpu.dot_dimension_numbers<[1], [0], [0], [1], [0, 0, 1, 1], [], []>} : vector<8x128xbf16>, vector<128x384xbf16>, vector<8x384xf32> -> vector<8x384xf32>
    %246 = vector.broadcast %8 : vector<1x384xf32> to vector<8x384xf32>
    %247 = arith.addf %245, %246 : vector<8x384xf32>
    %248 = arith.truncf %240 : vector<8x128xf32> to vector<8x128xbf16>
    %cst_70 = arith.constant dense<0.000000e+00> : vector<8x384xf32>
    %249 = tpu.matmul %248, %6, %cst_70 {dimension_numbers = #tpu.dot_dimension_numbers<[1], [0], [0], [1], [0, 0, 1, 1], [], []>} : vector<8x128xbf16>, vector<128x384xbf16>, vector<8x384xf32> -> vector<8x384xf32>
    %250 = vector.broadcast %10 : vector<1x384xf32> to vector<8x384xf32>
    %251 = arith.addf %249, %250 : vector<8x384xf32>
    %252 = vector.extract_strided_slice %247 {offsets = [0, 0], sizes = [8, 128], strides = [1, 1]} : vector<8x384xf32> to vector<8x128xf32>
    %253 = vector.extract_strided_slice %251 {offsets = [0, 0], sizes = [8, 128], strides = [1, 1]} : vector<8x384xf32> to vector<8x128xf32>
    %254 = arith.addf %252, %253 : vector<8x128xf32>
    %255 = arith.negf %254 : vector<8x128xf32>
    %256 = math.exp %255 : vector<8x128xf32>
    %cst_71 = arith.constant 1.000000e+00 : f32
    %257 = vector.broadcast %cst_71 : f32 to vector<8x128xf32>
    %258 = arith.addf %257, %256 : vector<8x128xf32>
    %259 = arith.divf %257, %258 : vector<8x128xf32>
    %260 = vector.extract_strided_slice %247 {offsets = [0, 128], sizes = [8, 128], strides = [1, 1]} : vector<8x384xf32> to vector<8x128xf32>
    %261 = vector.extract_strided_slice %251 {offsets = [0, 128], sizes = [8, 128], strides = [1, 1]} : vector<8x384xf32> to vector<8x128xf32>
    %262 = arith.addf %260, %261 : vector<8x128xf32>
    %263 = arith.negf %262 : vector<8x128xf32>
    %264 = math.exp %263 : vector<8x128xf32>
    %cst_72 = arith.constant 1.000000e+00 : f32
    %265 = vector.broadcast %cst_72 : f32 to vector<8x128xf32>
    %266 = arith.addf %265, %264 : vector<8x128xf32>
    %267 = arith.divf %265, %266 : vector<8x128xf32>
    %268 = vector.extract_strided_slice %247 {offsets = [0, 256], sizes = [8, 128], strides = [1, 1]} : vector<8x384xf32> to vector<8x128xf32>
    %269 = vector.extract_strided_slice %251 {offsets = [0, 256], sizes = [8, 128], strides = [1, 1]} : vector<8x384xf32> to vector<8x128xf32>
    %270 = arith.mulf %259, %269 : vector<8x128xf32>
    %271 = arith.addf %268, %270 : vector<8x128xf32>
    %272 = math.tanh %271 : vector<8x128xf32>
    %cst_73 = arith.constant 1.000000e+00 : f32
    %273 = vector.broadcast %cst_73 : f32 to vector<8x128xf32>
    %274 = arith.subf %273, %267 : vector<8x128xf32>
    %275 = arith.mulf %274, %272 : vector<8x128xf32>
    %276 = arith.mulf %267, %240 : vector<8x128xf32>
    %277 = arith.addf %275, %276 : vector<8x128xf32>
    %278 = vector.broadcast %242 : i32 to vector<8x1xi32>
    %279 = arith.cmpi sge, %278, %12 : vector<8x1xi32>
    %280 = vector.broadcast %242 : i32 to vector<8x1xi32>
    %281 = arith.cmpi slt, %280, %14 : vector<8x1xi32>
    %282 = arith.andi %279, %281 : vector<8x1xi1>
    %283 = vector.shape_cast %282 : vector<8x1xi1> to vector<8x1xi1>
    %284 = vector.broadcast %283 : vector<8x1xi1> to vector<8x128xi1>
    %285 = arith.select %284, %277, %240 : vector<8x128xi1>, vector<8x128xf32>
    %c8_i32_74 = arith.constant 8 : i32
    %286 = arith.muli %arg1, %c8_i32_74 : i32
    %c6_i32 = arith.constant 6 : i32
    %287 = arith.addi %286, %c6_i32 : i32
    %c0_75 = arith.constant 0 : index
    %c6 = arith.constant 6 : index
    %c0_76 = arith.constant 0 : index
    %c0_77 = arith.constant 0 : index
    %288 = vector.load %arg5[%c0_75, %c6, %c0_76, %c0_77] : memref<1x8x8x128xbf16, #tpu.memory_space<vmem>>, vector<1x1x8x128xbf16>
    %289 = vector.shape_cast %288 : vector<1x1x8x128xbf16> to vector<8x128xbf16>
    %cst_78 = arith.constant dense<0.000000e+00> : vector<8x384xf32>
    %290 = tpu.matmul %289, %4, %cst_78 {dimension_numbers = #tpu.dot_dimension_numbers<[1], [0], [0], [1], [0, 0, 1, 1], [], []>} : vector<8x128xbf16>, vector<128x384xbf16>, vector<8x384xf32> -> vector<8x384xf32>
    %291 = vector.broadcast %8 : vector<1x384xf32> to vector<8x384xf32>
    %292 = arith.addf %290, %291 : vector<8x384xf32>
    %293 = arith.truncf %285 : vector<8x128xf32> to vector<8x128xbf16>
    %cst_79 = arith.constant dense<0.000000e+00> : vector<8x384xf32>
    %294 = tpu.matmul %293, %6, %cst_79 {dimension_numbers = #tpu.dot_dimension_numbers<[1], [0], [0], [1], [0, 0, 1, 1], [], []>} : vector<8x128xbf16>, vector<128x384xbf16>, vector<8x384xf32> -> vector<8x384xf32>
    %295 = vector.broadcast %10 : vector<1x384xf32> to vector<8x384xf32>
    %296 = arith.addf %294, %295 : vector<8x384xf32>
    %297 = vector.extract_strided_slice %292 {offsets = [0, 0], sizes = [8, 128], strides = [1, 1]} : vector<8x384xf32> to vector<8x128xf32>
    %298 = vector.extract_strided_slice %296 {offsets = [0, 0], sizes = [8, 128], strides = [1, 1]} : vector<8x384xf32> to vector<8x128xf32>
    %299 = arith.addf %297, %298 : vector<8x128xf32>
    %300 = arith.negf %299 : vector<8x128xf32>
    %301 = math.exp %300 : vector<8x128xf32>
    %cst_80 = arith.constant 1.000000e+00 : f32
    %302 = vector.broadcast %cst_80 : f32 to vector<8x128xf32>
    %303 = arith.addf %302, %301 : vector<8x128xf32>
    %304 = arith.divf %302, %303 : vector<8x128xf32>
    %305 = vector.extract_strided_slice %292 {offsets = [0, 128], sizes = [8, 128], strides = [1, 1]} : vector<8x384xf32> to vector<8x128xf32>
    %306 = vector.extract_strided_slice %296 {offsets = [0, 128], sizes = [8, 128], strides = [1, 1]} : vector<8x384xf32> to vector<8x128xf32>
    %307 = arith.addf %305, %306 : vector<8x128xf32>
    %308 = arith.negf %307 : vector<8x128xf32>
    %309 = math.exp %308 : vector<8x128xf32>
    %cst_81 = arith.constant 1.000000e+00 : f32
    %310 = vector.broadcast %cst_81 : f32 to vector<8x128xf32>
    %311 = arith.addf %310, %309 : vector<8x128xf32>
    %312 = arith.divf %310, %311 : vector<8x128xf32>
    %313 = vector.extract_strided_slice %292 {offsets = [0, 256], sizes = [8, 128], strides = [1, 1]} : vector<8x384xf32> to vector<8x128xf32>
    %314 = vector.extract_strided_slice %296 {offsets = [0, 256], sizes = [8, 128], strides = [1, 1]} : vector<8x384xf32> to vector<8x128xf32>
    %315 = arith.mulf %304, %314 : vector<8x128xf32>
    %316 = arith.addf %313, %315 : vector<8x128xf32>
    %317 = math.tanh %316 : vector<8x128xf32>
    %cst_82 = arith.constant 1.000000e+00 : f32
    %318 = vector.broadcast %cst_82 : f32 to vector<8x128xf32>
    %319 = arith.subf %318, %312 : vector<8x128xf32>
    %320 = arith.mulf %319, %317 : vector<8x128xf32>
    %321 = arith.mulf %312, %285 : vector<8x128xf32>
    %322 = arith.addf %320, %321 : vector<8x128xf32>
    %323 = vector.broadcast %287 : i32 to vector<8x1xi32>
    %324 = arith.cmpi sge, %323, %12 : vector<8x1xi32>
    %325 = vector.broadcast %287 : i32 to vector<8x1xi32>
    %326 = arith.cmpi slt, %325, %14 : vector<8x1xi32>
    %327 = arith.andi %324, %326 : vector<8x1xi1>
    %328 = vector.shape_cast %327 : vector<8x1xi1> to vector<8x1xi1>
    %329 = vector.broadcast %328 : vector<8x1xi1> to vector<8x128xi1>
    %330 = arith.select %329, %322, %285 : vector<8x128xi1>, vector<8x128xf32>
    %c8_i32_83 = arith.constant 8 : i32
    %331 = arith.muli %arg1, %c8_i32_83 : i32
    %c7_i32 = arith.constant 7 : i32
    %332 = arith.addi %331, %c7_i32 : i32
    %c0_84 = arith.constant 0 : index
    %c7 = arith.constant 7 : index
    %c0_85 = arith.constant 0 : index
    %c0_86 = arith.constant 0 : index
    %333 = vector.load %arg5[%c0_84, %c7, %c0_85, %c0_86] : memref<1x8x8x128xbf16, #tpu.memory_space<vmem>>, vector<1x1x8x128xbf16>
    %334 = vector.shape_cast %333 : vector<1x1x8x128xbf16> to vector<8x128xbf16>
    %cst_87 = arith.constant dense<0.000000e+00> : vector<8x384xf32>
    %335 = tpu.matmul %334, %4, %cst_87 {dimension_numbers = #tpu.dot_dimension_numbers<[1], [0], [0], [1], [0, 0, 1, 1], [], []>} : vector<8x128xbf16>, vector<128x384xbf16>, vector<8x384xf32> -> vector<8x384xf32>
    %336 = vector.broadcast %8 : vector<1x384xf32> to vector<8x384xf32>
    %337 = arith.addf %335, %336 : vector<8x384xf32>
    %338 = arith.truncf %330 : vector<8x128xf32> to vector<8x128xbf16>
    %cst_88 = arith.constant dense<0.000000e+00> : vector<8x384xf32>
    %339 = tpu.matmul %338, %6, %cst_88 {dimension_numbers = #tpu.dot_dimension_numbers<[1], [0], [0], [1], [0, 0, 1, 1], [], []>} : vector<8x128xbf16>, vector<128x384xbf16>, vector<8x384xf32> -> vector<8x384xf32>
    %340 = vector.broadcast %10 : vector<1x384xf32> to vector<8x384xf32>
    %341 = arith.addf %339, %340 : vector<8x384xf32>
    %342 = vector.extract_strided_slice %337 {offsets = [0, 0], sizes = [8, 128], strides = [1, 1]} : vector<8x384xf32> to vector<8x128xf32>
    %343 = vector.extract_strided_slice %341 {offsets = [0, 0], sizes = [8, 128], strides = [1, 1]} : vector<8x384xf32> to vector<8x128xf32>
    %344 = arith.addf %342, %343 : vector<8x128xf32>
    %345 = arith.negf %344 : vector<8x128xf32>
    %346 = math.exp %345 : vector<8x128xf32>
    %cst_89 = arith.constant 1.000000e+00 : f32
    %347 = vector.broadcast %cst_89 : f32 to vector<8x128xf32>
    %348 = arith.addf %347, %346 : vector<8x128xf32>
    %349 = arith.divf %347, %348 : vector<8x128xf32>
    %350 = vector.extract_strided_slice %337 {offsets = [0, 128], sizes = [8, 128], strides = [1, 1]} : vector<8x384xf32> to vector<8x128xf32>
    %351 = vector.extract_strided_slice %341 {offsets = [0, 128], sizes = [8, 128], strides = [1, 1]} : vector<8x384xf32> to vector<8x128xf32>
    %352 = arith.addf %350, %351 : vector<8x128xf32>
    %353 = arith.negf %352 : vector<8x128xf32>
    %354 = math.exp %353 : vector<8x128xf32>
    %cst_90 = arith.constant 1.000000e+00 : f32
    %355 = vector.broadcast %cst_90 : f32 to vector<8x128xf32>
    %356 = arith.addf %355, %354 : vector<8x128xf32>
    %357 = arith.divf %355, %356 : vector<8x128xf32>
    %358 = vector.extract_strided_slice %337 {offsets = [0, 256], sizes = [8, 128], strides = [1, 1]} : vector<8x384xf32> to vector<8x128xf32>
    %359 = vector.extract_strided_slice %341 {offsets = [0, 256], sizes = [8, 128], strides = [1, 1]} : vector<8x384xf32> to vector<8x128xf32>
    %360 = arith.mulf %349, %359 : vector<8x128xf32>
    %361 = arith.addf %358, %360 : vector<8x128xf32>
    %362 = math.tanh %361 : vector<8x128xf32>
    %cst_91 = arith.constant 1.000000e+00 : f32
    %363 = vector.broadcast %cst_91 : f32 to vector<8x128xf32>
    %364 = arith.subf %363, %357 : vector<8x128xf32>
    %365 = arith.mulf %364, %362 : vector<8x128xf32>
    %366 = arith.mulf %357, %330 : vector<8x128xf32>
    %367 = arith.addf %365, %366 : vector<8x128xf32>
    %368 = vector.broadcast %332 : i32 to vector<8x1xi32>
    %369 = arith.cmpi sge, %368, %12 : vector<8x1xi32>
    %370 = vector.broadcast %332 : i32 to vector<8x1xi32>
    %371 = arith.cmpi slt, %370, %14 : vector<8x1xi32>
    %372 = arith.andi %369, %371 : vector<8x1xi1>
    %373 = vector.shape_cast %372 : vector<8x1xi1> to vector<8x1xi1>
    %374 = vector.broadcast %373 : vector<8x1xi1> to vector<8x128xi1>
    %375 = arith.select %374, %367, %330 : vector<8x128xi1>, vector<8x128xf32>
    %c0_92 = arith.constant 0 : index
    %c0_93 = arith.constant 0 : index
    %376 = vector.load %arg11[%c0_92, %c0_93] : memref<8x128xf32, #tpu.memory_space<vmem>>, vector<8x128xf32>
    tpu.vector_store %arg11[%c0_92, %c0_93], %375 {strides = array<i32>} : memref<8x128xf32, #tpu.memory_space<vmem>>, vector<8x128xf32>,
    %c0_i32_94 = arith.constant 0 : i32
    %377 = arith.cmpi eq, %arg1, %c0_i32_94 : i32
    %378 = arith.extui %377 : i1 to i32
    %c0_i32_95 = arith.constant 0 : i32
    %379 = arith.cmpi ne, %378, %c0_i32_95 : i32
    scf.if %379 {
      %c0_96 = arith.constant 0 : index
      %c0_97 = arith.constant 0 : index
      %c0_98 = arith.constant 0 : index
      %380 = vector.load %arg10[%c0_96, %c0_97, %c0_98] : memref<1x8x128xf32, #tpu.memory_space<vmem>>, vector<1x8x128xf32>
      %381 = vector.shape_cast %380 : vector<1x8x128xf32> to vector<8x128xf32>
      %382 = vector.shape_cast %375 : vector<8x128xf32> to vector<1x8x128xf32>
      tpu.vector_store %arg10[%c0_96, %c0_97, %c0_98], %382 {strides = array<i32>} : memref<1x8x128xf32, #tpu.memory_space<vmem>>, vector<1x8x128xf32>,
    } else {
    }
    return
  }
  func.func @transform_0(%arg0: i32, %arg1: i32) -> (i32, i32, i32) {
    %c0_i32 = arith.constant 0 : i32
    %c0_i32_0 = arith.constant 0 : i32
    %c0_i32_1 = arith.constant 0 : i32
    return %arg0, %c0_i32, %c0_i32_0 : i32, i32, i32
  }
  func.func @transform_1(%arg0: i32, %arg1: i32) -> (i32, i32, i32) {
    %c0_i32 = arith.constant 0 : i32
    %c0_i32_0 = arith.constant 0 : i32
    %c0_i32_1 = arith.constant 0 : i32
    return %arg0, %c0_i32, %c0_i32_0 : i32, i32, i32
  }
  func.func @transform_2(%arg0: i32, %arg1: i32) -> (i32, i32, i32) {
    %c0_i32 = arith.constant 0 : i32
    %c0_i32_0 = arith.constant 0 : i32
    %c0_i32_1 = arith.constant 0 : i32
    return %arg0, %c0_i32, %c0_i32_0 : i32, i32, i32
  }
  func.func @transform_3(%arg0: i32, %arg1: i32) -> (i32, i32, i32, i32) {
    %c0_i32 = arith.constant 0 : i32
    %c0_i32_0 = arith.constant 0 : i32
    %c0_i32_1 = arith.constant 0 : i32
    return %arg0, %arg1, %c0_i32, %c0_i32_0 : i32, i32, i32, i32
  }
  func.func @transform_4(%arg0: i32, %arg1: i32) -> (i32, i32, i32) {
    %c0_i32 = arith.constant 0 : i32
    %c0_i32_0 = arith.constant 0 : i32
    %c0_i32_1 = arith.constant 0 : i32
    return %arg0, %c0_i32, %c0_i32_0 : i32, i32, i32
  }
  func.func @transform_5(%arg0: i32, %arg1: i32) -> (i32, i32, i32) {
    %c0_i32 = arith.constant 0 : i32
    %c0_i32_0 = arith.constant 0 : i32
    %c0_i32_1 = arith.constant 0 : i32
    return %arg0, %c0_i32, %c0_i32_0 : i32, i32, i32
  }
  func.func @transform_6(%arg0: i32, %arg1: i32) -> (i32, i32, i32) {
    %c0_i32 = arith.constant 0 : i32
    %c0_i32_0 = arith.constant 0 : i32
    %c0_i32_1 = arith.constant 0 : i32
    return %arg0, %c0_i32, %c0_i32_0 : i32, i32, i32
  }
  func.func @transform_7(%arg0: i32, %arg1: i32) -> (i32, i32, i32) {
    %c0_i32 = arith.constant 0 : i32
    %c0_i32_0 = arith.constant 0 : i32
    %c0_i32_1 = arith.constant 0 : i32
    return %arg0, %c0_i32, %c0_i32_0 : i32, i32, i32
  }
  func.func @transform_8(%arg0: i32, %arg1: i32) -> (i32, i32, i32) {
    %c0_i32 = arith.constant 0 : i32
    %c0_i32_0 = arith.constant 0 : i32
    %c0_i32_1 = arith.constant 0 : i32
    return %arg0, %c0_i32, %c0_i32_0 : i32, i32, i32
  }
}

</mosaic_0001>

<bundles_post_ra>
// kernel: tpu_custom_call.1
= control target key start
LH: loop header
LB: loop body
LE: loop exit
PB: predicated region body
PF: predicated region fallthrough
CT: control target
= control target key end

     0   :  { %s5079_s0 = inlined_call_operand.vmem [shape: f32[2,8,128], index: 0, kind: input, shape index: {}]   ;;  %s5080_s1 = inlined_call_operand.vmem [shape: s32[2,8,1], index: 1, kind: input, shape index: {}]   ;;  %s5081_s2 = inlined_call_operand.vmem [shape: s32[2,8,1], index: 2, kind: input, shape index: {}]   ;;  %s5082_s3 = inlined_call_operand.hbm [shape: bf16[2,8,8,128], index: 3, kind: input, shape index: {}]   ;;  %s5083_s4 = inlined_call_operand.hbm [shape: bf16[2,128,384], index: 4, kind: input, shape index: {}]   ;;  %s5084_s5 = inlined_call_operand.vmem [shape: f32[2,1,384], index: 5, kind: input, shape index: {}]   ;;  %s5085_s6 = inlined_call_operand.hbm [shape: bf16[2,128,384], index: 6, kind: input, shape index: {}]   ;;  %s5086_s7 = inlined_call_operand.vmem [shape: f32[2,1,384], index: 7, kind: input, shape index: {}]   ;;  %s5087_s8 = inlined_call_operand.hbm [shape: f32[2,8,128], index: 8, kind: output, shape index: {}]  }
   0x1   :  { %5142 = sst [smem:[#allocation30_spill]] %s5082_s3 }
   0x2   :  { %5143 = sst [smem:[#allocation31_spill]] %s5083_s4 }
   0x3   :  { %13 = vsyncpa [#allocation4], 0 }
   0x4   :  { %15 = vsyncpa [#allocation4 + $0x1], 0 }
   0x5   :  { %16 = vsyncpa [#allocation7], 0 }
   0x6   :  { %18 = vsyncpa [#allocation7 + $0x1], 0 }
   0x7   :  { %19 = vsyncpa [#allocation5], 0 }
   0x8   :  { %21 = vsyncpa [#allocation5 + $0x1], 0  ;;  %s3793_s27 = smov 0   ;;  %s3795_s28 = smov 0  }
   0x9   :  { %s3797_s29 = smov 0   ;;  %s3799_s30 = smov 0  }
   0xa   :  { %s3801_s9 = smov 0   ;;  %s3803_s10 = smov 0  }
   0xb LB: > { %5144 = sst [smem:[#allocation13_spill]] %s3715_s27  ;;  %s3824_s11 = sadd.s32 4294967295, %s3735_s10   ;;  %s3735_s10 = sphi %s3803_s10, %s27_s10   ;;  %s3731_s9 = sphi %s3801_s9, %s5234_s9   ;;  %s3727_s30 = sphi %s3799_s30, %s5233_s30   ;;  %s3723_s29 = sphi %s3797_s29, %s5229_s29   ;;  %s3719_s28 = sphi %s3795_s28, %s5232_s28   ;;  %s3715_s27 = sphi %s3793_s27, %s5231_s27  }
   0xc   : > { %5145 = sst [smem:[#allocation14_spill]] %s3723_s29  ;;  %s2646_s12 = sadd.s32 4294967294, %s3735_s10  }
   0xd   : > { %5146 = sst [smem:[#allocation15_spill]] %s3735_s10  ;;  %s39_s13 = sadd.s32 1, %s3731_s9 }
   0xe   : > { %s126_s14 = sadd.s32 1, %s3723_s29  ;;  %p41_p0 = scmp.ge.s32.totalorder %s39_s13, 2 }
   0xf   : > { %p133_p1 = scmp.ne.s32.totalorder %s3723_s29, %s3719_s28  ;;  %p134_p2 = scmp.eq.s32.totalorder %s3735_s10, 0 }
  0x10   : > { %p139_p3 = scmp.ne.s32.totalorder %s3719_s28, %s3715_s27  ;;  %s5236_s13 = smov (%p41_p0, %s39_s13), 0 }
  0x11   : > { %5147 = sst [smem:[#allocation16_spill]] %s5236_s13  ;;  %p3836_p4 = por %p134_p2, %p133_p1 }
  0x12   : > { %p140_p5 = scmp.eq.s32.totalorder %s3824_s11, 0  ;;  %s121_s16 = ssub.s32 %s3731_s9, %s5236_s13 }
  0x13   : > { %p267_p6 = scmp.eq.s32.totalorder %s3824_s11, 1  ;;  %p124_p7 = scmp.eq.s32.totalorder %s121_s16, 0 }
  0x14   : > { %p3844_p8 = por %p140_p5, %p139_p3  ;;  %p273_p10 = scmp.eq.s32.totalorder %s2646_s12, 1 }
  0x15   : > { %p3848_p9 = por %p267_p6, %p133_p1  ;;  %p3308_p13 = scmp.lt.s32.totalorder %s3735_s10, 2 }
  0x16   : > { %s5149_s17 = scalar_select %p3844_p8, 1, 0 }
  0x17   : > { %s5150_s18 = scalar_select %p3848_p9, 1, 0 }
  0x18   : > { %s3853_s19 = scalar_select %p124_p7, %s3723_s29, %s126_s14  }
  0x19   : > { %p3855_p11 = por %p273_p10, %p139_p3  ;;  %s3862_s21 = sand.u32 1, %s3723_s29  }
  0x1a   : > { %5151 = sst [smem:[#allocation17_spill]] %s3853_s19  ;;  %s337_s22 = sand.u32 1, %s3735_s10  }
  0x1b   : > { %s5152_s20 = scalar_select %p3855_p11, 1, 0 }
  0x1c   : > { %s5089_s23 = smul.u32 192, %s3862_s21  ;;  %p3868_p0 = pnand %p3308_p13, %p3836_p4 }
  0x1d   : > { %5153 = sst [smem:[#allocation18_spill]] %s5152_s20  ;;  %s5090_s25 = smul.u32 3072, %s3731_s9 }
  0x1e   : > { %s341_s26 = scalar_lea.vmem [#allocation6], %s5089_s23  ;;  %s5155_s4 = sld [smem:[#allocation31_spill]] }
  0x1f   : > { %s348_s12 = sshll.u32 %s341_s26, 4  ;;  %s3884_s15 = scalar_lea.sflag [#allocation7], %s337_s22  ;;  %s3882_s12 = int_to_ptr.vmem [resolvable:$true] %s348_s12 }
  0x20   : > { %p3890_p2 = pneg %p3868_p0 }
  0x24   : > { %s3880_s13 = scalar_lea.hbm %s5155_s4, %s5090_s25  ;;  %s3564_s16 = scalar_lea.hbm %s5155_s4, 6144 }
  0x25   : > { %s3559_s19 = scalar_lea.hbm %s3880_s13, 3072  ;;  %p3565_p5 = scmp.lt.u32.totalorder %s3880_s13, %s5155_s4 }
  0x26   : > { %p3560_p1 = scmp.ne.s32.totalorder %s3880_s13, %s3559_s19  ;;  %p3566_p6 = scmp.lt.u32.totalorder %s3564_s16, %s3559_s19 }
  0x27   : > { %p3568_p10 = scmp.lt.u32.totalorder %s3559_s19, %s3880_s13 }
  0x28   : > { %p3562_p3 = pnand %p3890_p2, %p3560_p1  ;;  %p3567_p7 = por %p3566_p6, %p3565_p5 }
  0x2a   : > { %p3563_p4 = pneg %p3562_p3  ;;  %p3569_p13 = por %p3568_p10, %p3567_p7 }
  0x2c   : > { %p3570_p12 = pnand %p3569_p13, %p3563_p4 }
  0x2e   : > { %3573 = shalt.err (!%p3570_p12)
}
  0x2f   : > { %s3574_s22 = scalar_lea.vmem %s3882_s12, 3072  ;;  %s3737_s26 = smov [#allocation6]  }
  0x30   : > { %p3575_p1 = scmp.ne.s32.totalorder %s3882_s12, %s3574_s22  ;;  %s3579_s14 = sshll.u32 %s3737_s26, 4  ;;  %s3580_s14 = int_to_ptr.vmem [resolvable:$false] %s3579_s14 }
  0x31   : > { %s3581_s29 = scalar_lea.vmem %s3580_s14, 6144  ;;  %p3582_p9 = scmp.lt.s32.totalorder %s3882_s12, %s3580_s14 }
  0x32   : > { %p3577_p3 = pnand %p3575_p1, %p3890_p2  ;;  %p3583_p8 = scmp.lt.s32.totalorder %s3581_s29, %s3574_s22 }
  0x34   : > { %p3578_p11 = pneg %p3577_p3  ;;  %p3584_p5 = por %p3583_p8, %p3582_p9 }
  0x36   : > { %p3585_p6 = pnand %p3584_p5, %p3578_p11 }
  0x38   : > { %3588 = shalt.err (!%p3585_p6)
}
  0x39   : > { %s5096_s19 = smov 192   ;;  %s5097_s25 = smov 12  }
  0x3a   : > { %3300 = dma.hbm_to_vmem [thread:$0]  (!%p3868_p0), %s3880_s13, 3072, %s3882_s12, %s3884_s15, %s5096_s19, %s5096_s19, %s5097_s25  }
  0x3b   : > { %p2654_p8 = scmp.ge.s32.totalorder %s3735_s10, 1  ;;  %p391_p9 = scmp.lt.s32.totalorder %s3735_s10, 3 }
  0x3c   : > { %s2649_s22 = sshll.u32 %s3862_s21, 5  ;;  %s2751_s26 = sshll.u32 %s3731_s9, 9 }
  0x3d   : > { %p3919_p11 = pnand %p2654_p8, %p391_p9  ;;  %s5158_s3 = sld [smem:[#allocation30_spill]] }
  0x3e   : > { %s318_s20 = scalar_lea.vmem [#allocation3], %s2649_s22  ;;  %s315_s13 = scalar_lea.sflag [#allocation4], %s3862_s21 }
  0x3f   : > { %s5157_s16 = scalar_select %p3919_p11, 1, 0 }
  0x40   : > { %s327_s27 = sshll.u32 %s318_s20, 4  ;;  %s3930_s27 = int_to_ptr.vmem [resolvable:$true] %s327_s27 }
  0x43   : > { %s3928_s4 = scalar_lea.hbm %s5158_s3, %s2751_s26  ;;  %s3594_s14 = scalar_lea.hbm %s5158_s3, 1024 }
  0x44   : > { %s3589_s12 = scalar_lea.hbm %s3928_s4, 512  ;;  %p3595_p10 = scmp.lt.u32.totalorder %s3928_s4, %s5158_s3 }
  0x45   : > { %p3590_p12 = scmp.ne.s32.totalorder %s3928_s4, %s3589_s12  ;;  %p3596_p13 = scmp.lt.u32.totalorder %s3594_s14, %s3589_s12 }
  0x46   : > { %p3598_p3 = scmp.lt.u32.totalorder %s3589_s12, %s3928_s4 }
  0x47   : > { %p3592_p4 = pnand %p3590_p12, %p3890_p2  ;;  %p3597_p1 = por %p3596_p13, %p3595_p10 }
  0x49   : > { %p3593_p7 = pneg %p3592_p4  ;;  %p3599_p5 = por %p3598_p3, %p3597_p1 }
  0x4b   : > { %p3600_p6 = pnand %p3599_p5, %p3593_p7 }
  0x4d   : > { %3603 = shalt.err (!%p3600_p6)
}
  0x4e   : > { %s3604_s20 = scalar_lea.vmem %s3930_s27, 512  ;;  %s3740_s19 = smov [#allocation3]  }
  0x4f   : > { %p3605_p8 = scmp.ne.s32.totalorder %s3930_s27, %s3604_s20  ;;  %s3609_s25 = sshll.u32 %s3740_s19, 4  ;;  %s3610_s25 = int_to_ptr.vmem [resolvable:$false] %s3609_s25 }
  0x50   : > { %s3611_s22 = scalar_lea.vmem %s3610_s25, 1024  ;;  %p3612_p4 = scmp.lt.s32.totalorder %s3930_s27, %s3610_s25 }
  0x51   : > { %p3607_p9 = pnand %p3605_p8, %p3890_p2  ;;  %p3613_p11 = scmp.lt.s32.totalorder %s3611_s22, %s3604_s20 }
  0x53   : > { %p3608_p12 = pneg %p3607_p9  ;;  %p3614_p10 = por %p3613_p11, %p3612_p4 }
  0x55   : > { %p3615_p13 = pnand %p3614_p10, %p3608_p12 }
  0x57   : > { %3618 = shalt.err (!%p3615_p13)
}
  0x58   : > { %s3741_s12 = smov 64   ;;  %s3742_s14 = smov 4  }
  0x59   : > { %3297 = dma.hbm_to_vmem [thread:$0]  (!%p3868_p0), %s3928_s4, 512, %s3930_s27, %s315_s13, %s3741_s12, %s3741_s12, %s3742_s14  }
  0x5a   : > { %s5159_s26 = smul.u32 3072, %s3731_s9  ;;  %s3624_s13 = scalar_lea.hbm %s5085_s6, 6144 }
  0x5b   : > { %s5160_s25 = smul.u32 192, %s3862_s21 }
  0x5c   : > { %s3961_s20 = scalar_lea.hbm %s5085_s6, %s5159_s26 }
  0x5d   : > { %s369_s22 = scalar_lea.vmem [#allocation8], %s5160_s25  ;;  %s3619_s10 = scalar_lea.hbm %s3961_s20, 3072 }
  0x5e   : > { %s376_s3 = sshll.u32 %s369_s22, 4  ;;  %p3620_p11 = scmp.ne.s32.totalorder %s3961_s20, %s3619_s10  ;;  %s3965_s3 = int_to_ptr.vmem [resolvable:$true] %s376_s3 }
  0x5f   : > { %p3625_p3 = scmp.lt.u32.totalorder %s3961_s20, %s5085_s6  ;;  %p3626_p5 = scmp.lt.u32.totalorder %s3624_s13, %s3619_s10 }
  0x60   : > { %p3622_p7 = pnand %p3620_p11, %p3890_p2  ;;  %p3628_p8 = scmp.lt.u32.totalorder %s3619_s10, %s3961_s20 }
  0x61   : > { %p3627_p6 = por %p3626_p5, %p3625_p3 }
  0x62   : > { %p3623_p1 = pneg %p3622_p7 }
  0x63   : > { %p3629_p9 = por %p3628_p8, %p3627_p6 }
  0x65   : > { %p3630_p12 = pnand %p3629_p9, %p3623_p1 }
  0x67   : > { %3633 = shalt.err (!%p3630_p12)
}
  0x68   : > { %s3634_s21 = scalar_lea.vmem %s3965_s3, 3072  ;;  %s3743_s26 = smov [#allocation8]  }
  0x69   : > { %p3635_p4 = scmp.ne.s32.totalorder %s3965_s3, %s3634_s21  ;;  %s3639_s29 = sshll.u32 %s3743_s26, 4  ;;  %s3640_s29 = int_to_ptr.vmem [resolvable:$false] %s3639_s29 }
  0x6a   : > { %s3641_s19 = scalar_lea.vmem %s3640_s29, 6144  ;;  %p3642_p11 = scmp.lt.s32.totalorder %s3965_s3, %s3640_s29 }
  0x6b   : > { %p3637_p10 = pnand %p3635_p4, %p3890_p2  ;;  %p3643_p7 = scmp.lt.s32.totalorder %s3641_s19, %s3634_s21 }
  0x6d   : > { %p3638_p13 = pneg %p3637_p10  ;;  %p3644_p3 = por %p3643_p7, %p3642_p11 }
  0x6f   : > { %p3645_p5 = pnand %p3644_p3, %p3638_p13 }
  0x71   : > { %3648 = shalt.err (!%p3645_p5)
}
  0x72   : > { %s5161_s10 = smov 12   ;;  %s5162_s25 = smov 192  }
  0x73   : > { %3303 = dma.hbm_to_vmem [thread:$0]  (!%p3868_p0), %s3961_s20, 3072, %s3965_s3, %s3884_s15, %s5162_s25, %s5162_s25, %s5161_s10  }
  0x74   : > { %p5163_p2 = scmp.ne.s32.totalorder %s5157_s16, 0 }
  0x76   : > { %395 = sbr.rel (%p5163_p2) target bundleno = 2308 (0x904), region = 52 }
  0x7d   : > { %s3995_s23 = sand.u32 1, %s3719_s28   ;;  %p5164_p1 = scmp.ne.s32.totalorder %s5149_s17, 0 }
  0x7e   : > { %s2655_s22 = sshll.u32 %s3995_s23, 5  ;;  %s398_s4 = scalar_lea.sflag [#allocation4], %s3995_s23 }
  0x7f   : > { %s3999_s27 = scalar_lea.vmem [#allocation3], %s2655_s22 }
  0x80   : > { %3702 = dma.done.wait (%p5164_p1), %s398_s4, 512  }
  0x81   : > { %3704 = vsyncadd (%p5164_p1), %s398_s4, 4294966784  ;;  %s406_s3 = sand.u32 1, %s3824_s11   ;;  %s3284_s24 = smul.u32 192, %s3995_s23 }
  0x82   : > { %s407_s15 = scalar_lea.sflag [#allocation7], %s406_s3 }
  0x83   : > { %s4009_s16 = scalar_lea.vmem [#allocation6], %s3284_s24 }
  0x84   : > { %3706 = dma.done.wait (%p5164_p1), %s407_s15, 6144  }
  0x85   : > { %3708 = vsyncadd (%p5164_p1), %s407_s15, 4294961152  ;;  %v5102_v0 = vmov 0.0   ;;  %v5100_v1 = vmov 0   ;;  %vm3746_vm0 = vmmov 0   ;;  %v4022_v2 = vld [vmem:[%s4009_s16 + $0x4] ss:$12 sps:$4 sm:$0xff]  }
  0x86   : > { %2896 = vmatprep.subr.bf16.mxu1 %v5102_v0  ;;  %757 = vmatprep.mubr.bf16.mxu0 %v5100_v1  ;;  %5165 = vst [vmem:[#allocation19_spill] sm:$0xff] %v4022_v2  ;;  %v4025_v3 = vld [vmem:[%s4009_s16] ss:$12 sps:$4 sm:$0xff]   ;;  %v4029_v4 = vld [vmem:[%s4009_s16 + $0x1c] ss:$12 sps:$4 sm:$0xff]   ;;  %s4065_s11 = scalar_lea.vmem [#allocation8], %s3284_s24 }
  0x87   : > { %2912 = vmatprep.mubr.msk.bf16.mxu1 %vm3746_vm0, %v5102_v0  ;;  %3365 = vset.pattern.permute.xlu0 %v5100_v1  ;;  %v4033_v5 = vld [vmem:[%s4009_s16 + $0x18] ss:$12 sps:$4 sm:$0xff]   ;;  %v4037_v6 = vld [vmem:[%s4009_s16 + $0x34] ss:$12 sps:$4 sm:$0xff]   ;;  %v4041_v7 = vld [vmem:[%s4009_s16 + $0x30] ss:$12 sps:$4 sm:$0xff]  }
  0x88   : > { %3366 = vset.pattern.permute.xlu1 %v5100_v1  ;;  %725 = vmatprep.subr.bf16.mxu0 %v4022_v2  ;;  %v4045_v8 = vld [vmem:[%s4009_s16 + $0x4c] ss:$12 sps:$4 sm:$0xff]   ;;  %v4048_v9 = vld [vmem:[%s4009_s16 + $0x8] ss:$12 sps:$4 sm:$0xff]   ;;  %v4057_v11 = vld [vmem:[%s4009_s16 + $0x64] ss:$12 sps:$4 sm:$0xff]  }
  0x89   : > { %726 = vmatpush1.bf16.msra.mxu0 %v4025_v3  ;;  %v4052_v10 = vld [vmem:[%s4009_s16 + $0x48] ss:$12 sps:$4 sm:$0xff]   ;;  %2897 = vmatpush3.bf16.msra.mxu1 %v4048_v9  ;;  %v4061_v12 = vld [vmem:[%s4009_s16 + $0x20] ss:$12 sps:$4 sm:$0xff]   ;;  %v4073_v14 = vld [vmem:[%s4009_s16 + $0x38] ss:$12 sps:$4 sm:$0xff]  }
  0x8a   : > { %727 = vmatprep.subr.bf16.mxu0 %v4029_v4  ;;  %2898 = vmatprep.subr.bf16.mxu1 %v5102_v0  ;;  %v4068_v13 = vld [vmem:[%s4009_s16 + $0x60] ss:$12 sps:$4 sm:$0xff]   ;;  %v4077_v15 = vld [vmem:[%s4009_s16 + $0x7c] ss:$12 sps:$4 sm:$0xff]   ;;  %v4082_v16 = vld [vmem:[%s4009_s16 + $0x78] ss:$12 sps:$4 sm:$0xff]  }
  0x8b   : > { %v4086_v17 = vld [vmem:[%s4009_s16 + $0x50] ss:$12 sps:$4 sm:$0xff]   ;;  %v4090_v18 = vld [vmem:[%s4009_s16 + $0x94] ss:$12 sps:$4 sm:$0xff]   ;;  %p482_p0 = scmp.lt.s32.totalorder %s3727_s30, 1  ;;  %s2448_s26 = scalar_lea.sflag [#allocation5], %s3995_s23 }
  0x8c   : > { %v4095_v19 = vld [vmem:[%s4009_s16 + $0x90] ss:$12 sps:$4 sm:$0xff]   ;;  %v4100_v20 = vld [vmem:[%s4009_s16 + $0x68] ss:$12 sps:$4 sm:$0xff]   ;;  %v4104_v21 = vld [vmem:[%s4009_s16 + $0xac] ss:$12 sps:$4 sm:$0xff]  }
  0x8d   : > { %728 = vmatpush1.bf16.msra.mxu0 %v4033_v5  ;;  %2899 = vmatpush3.bf16.msra.mxu1 %v4061_v12  ;;  %v4108_v22 = vld [vmem:[%s4009_s16 + $0xa8] ss:$12 sps:$4 sm:$0xff]   ;;  %s4111_s17 = scalar_select %p482_p0, %s3727_s30, 1  ;;  %v4116_v23 = vld [vmem:[%s4009_s16 + $0x80] ss:$12 sps:$4 sm:$0xff]  }
  0x8e   : > { %729 = vmatprep.subr.bf16.mxu0 %v4037_v6  ;;  %2900 = vmatprep.subr.bf16.mxu1 %v5102_v0  ;;  %v4120_v24 = vld [vmem:[%s4065_s11 + $0x4] ss:$12 sps:$4 sm:$0xff]   ;;  %v580_v25 = vld [vmem:[%s3999_s27] sm:$0xf]  ;;  %v4137_v28 = vld [vmem:[%s4065_s11 + $0x1c] ss:$12 sps:$4 sm:$0xff]  }
  0x8f   : > { %s4124_s20 = sshll.u32 %s4111_s17, 3  ;;  %v4129_v26 = vld [vmem:[%s4065_s11] ss:$12 sps:$4 sm:$0xff]   ;;  %v4133_v27 = vld [vmem:[%s4009_s16 + $0x98] ss:$12 sps:$4 sm:$0xff]   ;;  %s3285_s22 = smul.u32 3, %s4111_s17 }
  0x90   : > { %s489_s14 = scalar_lea.vmem %s5080_s1, %s4124_s20  ;;  %v4145_v29 = vld [vmem:[%s4065_s11 + $0x18] ss:$12 sps:$4 sm:$0xff]   ;;  %s493_s29 = scalar_lea.vmem %s5081_s2, %s4124_s20  ;;  %v4152_v30 = vld [vmem:[%s4065_s11 + $0x34] ss:$12 sps:$4 sm:$0xff]   ;;  %v4155_v31 = vld [vmem:[%s4009_s16 + $0xb0] ss:$12 sps:$4 sm:$0xff]  }
  0x91   : > { %730 = vmatpush1.bf16.msra.mxu0 %v4041_v7  ;;  %2901 = vmatpush3.bf16.msra.mxu1 %v4073_v14  ;;  %v4159_v32 = vld [vmem:[%s489_s14] sm:$0xff]  ;;  %v4167_v34 = vld [vmem:[%s4065_s11 + $0x30] ss:$12 sps:$4 sm:$0xff]   ;;  %v4172_v35 = vld [vmem:[%s4065_s11 + $0x8] ss:$12 sps:$4 sm:$0xff]   ;;  %s485_s25 = scalar_lea.vmem %s5079_s0, %s4124_s20  ;;  %s502_s24 = scalar_lea.vmem %s5086_s7, %s3285_s22 }
  0x92   : > { %731 = vmatprep.subr.bf16.mxu0 %v4045_v8  ;;  %2902 = vmatprep.subr.bf16.mxu1 %v5102_v0  ;;  %5166 = vst [vmem:[#allocation20_spill] sm:$0xff] %v4159_v32  ;;  %v4163_v33 = vld [vmem:[%s493_s29] sm:$0xff]  ;;  %vm2710_vm1 = vcmp.le.s32.totalorder %v4159_v32, 0  ;;  %vm2715_vm3 = vcmp.le.s32.totalorder %v4159_v32, 1  ;;  %v4180_v36 = vld [vmem:[%s4065_s11 + $0x4c] ss:$12 sps:$4 sm:$0xff]   ;;  %s498_s13 = scalar_lea.vmem %s5084_s5, %s3285_s22 }
  0x93   : > { %5167 = vst [vmem:[#allocation21_spill] sm:$0xff] %v4163_v33  ;;  %vm2711_vm2 = vcmp.gt.s32.totalorder %v4163_v33, 0  ;;  %vm2716_vm4 = vcmp.gt.s32.totalorder %v4163_v33, 1  ;;  %vm2730_vm7 = vcmp.le.s32.totalorder %v4159_v32, 4  ;;  %vm2731_vm8 = vcmp.gt.s32.totalorder %v4163_v33, 4  ;;  %v4253_v54 = vld [vmem:[%s485_s25] sm:$0xff] }
  0x94   : > { %vm1056_vm5 = vmand %vm2710_vm1, %vm2711_vm2  ;;  %v4188_v38 = vld [vmem:[%s4065_s11 + $0x48] ss:$12 sps:$4 sm:$0xff]   ;;  %v4192_v39 = vld [vmem:[%s4065_s11 + $0x20] ss:$12 sps:$4 sm:$0xff]   ;;  %vm2740_vm10 = vcmp.le.s32.totalorder %v4159_v32, 6  ;;  %vm2741_vm11 = vcmp.gt.s32.totalorder %v4163_v33, 6  ;;  %v806_v56 = vpack.c.bf16 %v4253_v54, %v4253_v54 }
  0x95   : > { %732 = vmatpush1.bf16.msra.mxu0 %v4052_v10  ;;  %2903 = vmatpush3.bf16.msra.mxu1 %v4086_v17  ;;  %v1057_v37 = vsel %vm1056_vm5, 1, %v5100_v1  ;;  %vm1253_vm6 = vmand %vm2715_vm3, %vm2716_vm4  ;;  %v4197_v41 = vld [vmem:[%s4065_s11 + $0x64] ss:$12 sps:$4 sm:$0xff]   ;;  %v4206_v42 = vld [vmem:[%s4065_s11 + $0x60] ss:$12 sps:$4 sm:$0xff]   ;;  %p5222_p8 = scmp.ne.s32.totalorder %s5150_s18, 0 }
  0x96   : > { %733 = vmatprep.subr.bf16.mxu0 %v4057_v11  ;;  %2904 = vmatprep.subr.bf16.mxu1 %v5102_v0  ;;  %v1254_v40 = vsel %vm1253_vm6, 1, %v5100_v1  ;;  %vm1844_vm9 = vmand %vm2730_vm7, %vm2731_vm8  ;;  %v4210_v43 = vld [vmem:[%s4065_s11 + $0x38] ss:$12 sps:$4 sm:$0xff]   ;;  %v4215_v45 = vld [vmem:[%s4065_s11 + $0x7c] ss:$12 sps:$4 sm:$0xff]  }
  0x97   : > { %1059 = vperm.xlu0 %3365, %v1057_v37   ;;  %v1845_v44 = vsel %vm1844_vm9, 1, %v5100_v1  ;;  %vm2238_vm12 = vmand %vm2740_vm10, %vm2741_vm11  ;;  %v4220_v46 = vld [vmem:[%s4065_s11 + $0x78] ss:$12 sps:$4 sm:$0xff]   ;;  %v4224_v47 = vld [vmem:[%s4065_s11 + $0x50] ss:$12 sps:$4 sm:$0xff]  }
  0x98   : > { %5168 = vst [vmem:[#allocation22_spill] sm:$0xff] %v4220_v46  ;;  %v2239_v48 = vsel %vm2238_vm12, 1, %v5100_v1  ;;  %v4229_v49 = vld [vmem:[%s4065_s11 + $0x94] ss:$12 sps:$4 sm:$0xff]   ;;  %v4234_v50 = vld [vmem:[%s4065_s11 + $0x90] ss:$12 sps:$4 sm:$0xff]  }
  0x99   : > { %734 = vmatpush1.bf16.msra.mxu0 %v4068_v13  ;;  %2905 = vmatpush3.bf16.msra.mxu1 %v4100_v20  ;;  %5169 = vst [vmem:[#allocation23_spill] sm:$0xff] %v4229_v49  ;;  %5170 = vst [vmem:[#allocation24_spill] sm:$0xff] %v4234_v50  ;;  %v4238_v51 = vld [vmem:[%s4065_s11 + $0x68] ss:$12 sps:$4 sm:$0xff]   ;;  %v4242_v52 = vld [vmem:[%s4065_s11 + $0xac] ss:$12 sps:$4 sm:$0xff]  }
  0x9a   : > { %735 = vmatprep.subr.bf16.mxu0 %v4077_v15  ;;  %2906 = vmatprep.subr.bf16.mxu1 %v5102_v0  ;;  %5171 = vst [vmem:[#allocation25_spill] sm:$0xff] %v4242_v52  ;;  %v4251_v53 = vld [vmem:[%s4065_s11 + $0xa8] ss:$12 sps:$4 sm:$0xff]   ;;  %v4257_v55 = vld [vmem:[%s4065_s11 + $0x80] ss:$12 sps:$4 sm:$0xff]  }
  0x9b   : > { %1256 = vperm.xlu0 %3365, %v1254_v40   ;;  %5172 = vst [vmem:[#allocation26_spill] sm:$0xff] %v4251_v53  ;;  %5173 = vst [vmem:[#allocation27_spill] sm:$0xff] %v4257_v55  ;;  %v4266_v57 = vld [vmem:[%s4065_s11 + $0x98] ss:$12 sps:$4 sm:$0xff]   ;;  %v4272_v58 = vld [vmem:[%s4065_s11 + $0xb0] ss:$12 sps:$4 sm:$0xff]  }
  0x9c   : > { %5174 = vst [vmem:[#allocation28_spill] sm:$0xff] %v4266_v57  ;;  %5175 = vst [vmem:[#allocation29_spill] sm:$0xff] %v4272_v58  ;;  %v2712_v59 = vld [vmem:[%s3999_s27 + $0x4] sm:$0xf] }
  0x9d   : > { %736 = vmatpush1.bf16.msra.mxu0 %v4082_v16  ;;  %2907 = vmatpush3.bf16.msra.mxu1 %v4116_v23 }
  0x9e   : > { %737 = vmatprep.subr.bf16.mxu0 %v4090_v18  ;;  %2908 = vmatprep.subr.bf16.mxu1 %v5102_v0 }
  0x9f   : > { %1847 = vperm.xlu0 %3365, %v1845_v44   ;;  %v575_v44 = vld [vmem:[%s502_s24] sm:$0x7] }
  0xa1   : > { %738 = vmatpush1.bf16.msra.mxu0 %v4095_v19  ;;  %2909 = vmatpush3.bf16.msra.mxu1 %v4133_v27 }
  0xa2   : > { %739 = vmatprep.subr.bf16.mxu0 %v4104_v21  ;;  %2910 = vmatprep.subr.bf16.mxu1 %v5102_v0 }
  0xa3   : > { %2241 = vperm.xlu0 %3365, %v2239_v48   ;;  %v574_v48 = vld [vmem:[%s498_s13] sm:$0x7] }
  0xa5   : > { %740 = vmatpush1.bf16.msra.mxu0 %v4108_v22  ;;  %2911 = vmatpush3.bf16.msra.mxu1 %v4155_v31 }
  0xa6   : > { %951 = vmatprep.subr.bf16.mxu0 %v4120_v24  ;;  %2916 = vmatprep.subr.bf16.mxu1 %v5102_v0 }
  0xa8   : > { %758 = vmatmul.mubr.bf16.vlgmr.msra.gmra.mrb[0].mxu0 %v580_v25  ;;  %2913 = vmatmul.mubr.bf16.vlgmr.msra.gmra.mrb[0].mxu1 %v580_v25  ;;  %v582_v25 = vlaneseq }
  0xa9   : > { %952 = vmatpush1.bf16.msra.mxu0 %v4129_v26  ;;  %983 = vmatprep.mubr.bf16.mxu0 %v5100_v1 }
  0xaa   : > { %953 = vmatprep.subr.bf16.mxu0 %v4137_v28  ;;  %2917 = vmatpush3.bf16.msra.mxu1 %v4172_v35  ;;  %v583_v37 = vshrl.u32 %v582_v25, 7 }
  0xab   : > { %2918 = vmatprep.subr.bf16.mxu1 %v5102_v0  ;;  %2932 = vmatprep.mubr.msk.bf16.mxu1 %vm3746_vm0, %v5102_v0 }
  0xac   : > { %v584_v40 = vsub.s32 0, %v583_v37 }
  0xad   : > { %954 = vmatpush1.bf16.msra.mxu0 %v4145_v29 }
  0xae   : > { %955 = vmatprep.subr.bf16.mxu0 %v4152_v30  ;;  %2919 = vmatpush3.bf16.msra.mxu1 %v4192_v39 }
  0xaf   : > { %2920 = vmatprep.subr.bf16.mxu1 %v5102_v0 }
  0xb1   : > { %956 = vmatpush1.bf16.msra.mxu0 %v4167_v34 }
  0xb2   : > { %957 = vmatprep.subr.bf16.mxu0 %v4180_v36  ;;  %2921 = vmatpush3.bf16.msra.mxu1 %v4210_v43 }
  0xb3   : > { %2922 = vmatprep.subr.bf16.mxu1 %v5102_v0 }
  0xb5   : > { %958 = vmatpush1.bf16.msra.mxu0 %v4188_v38 }
  0xb6   : > { %959 = vmatprep.subr.bf16.mxu0 %v4197_v41  ;;  %2923 = vmatpush3.bf16.msra.mxu1 %v4224_v47 }
  0xb7   : > { %2924 = vmatprep.subr.bf16.mxu1 %v5102_v0 }
  0xb9   : > { %960 = vmatpush1.bf16.msra.mxu0 %v4206_v42 }
  0xba   : > { %961 = vmatprep.subr.bf16.mxu0 %v4215_v45  ;;  %2925 = vmatpush3.bf16.msra.mxu1 %v4238_v51 }
  0xbb   : > { %2926 = vmatprep.subr.bf16.mxu1 %v5102_v0 }
  0xbd   : > { %962 = vmatpush1.bf16.msra.mxu0 %v4220_v46 }
  0xbe   : > { %963 = vmatprep.subr.bf16.mxu0 %v4229_v49  ;;  %2927 = vmatpush3.bf16.msra.mxu1 %v4257_v55 }
  0xbf   : > { %2928 = vmatprep.subr.bf16.mxu1 %v5102_v0 }
  0xc1   : > { %964 = vmatpush1.bf16.msra.mxu0 %v4234_v50 }
  0xc2   : > { %965 = vmatprep.subr.bf16.mxu0 %v4242_v52  ;;  %2929 = vmatpush3.bf16.msra.mxu1 %v4266_v57 }
  0xc3   : > { %2930 = vmatprep.subr.bf16.mxu1 %v5102_v0 }
  0xc5   : > { %966 = vmatpush1.bf16.msra.mxu0 %v4251_v53 }
  0xc6   : > { %1066 = vmatprep.subr.bf16.mxu0 %v4022_v2  ;;  %2931 = vmatpush3.bf16.msra.mxu1 %v4272_v58 }
  0xc7   : > { %2936 = vmatprep.subr.bf16.mxu1 %v5102_v0 }
  0xc8   : > { %984 = vmatmul.mubr.bf16.vlgmr.msra.gmra.mrb[0].mxu0 %v806_v56 }
  0xc9   : > { %1067 = vmatpush1.bf16.msra.mxu0 %v4025_v3  ;;  %1098 = vmatprep.mubr.bf16.mxu0 %v5100_v1 }
  0xca   : > { %1068 = vmatprep.subr.bf16.mxu0 %v4029_v4  ;;  %2933 = vmatmul.mubr.bf16.vlgmr.msra.gmra.mrb[4].mxu1 %v806_v56  ;;  %v588_v56 = vsub.s32 1, %v583_v37 }
  0xcb   : > { %2937 = vmatpush3.bf16.msra.mxu1 %v4048_v9  ;;  %2952 = vmatprep.mubr.msk.bf16.mxu1 %vm3746_vm0, %v5102_v0 }
  0xcc   : > { %2938 = vmatprep.subr.bf16.mxu1 %v5102_v0 }
  0xcd   : > { %1069 = vmatpush1.bf16.msra.mxu0 %v4033_v5 }
  0xce   : > { %1070 = vmatprep.subr.bf16.mxu0 %v4037_v6 }
  0xcf   : > { %2939 = vmatpush3.bf16.msra.mxu1 %v4061_v12 }
  0xd0   : > { %2940 = vmatprep.subr.bf16.mxu1 %v5102_v0 }
  0xd1   : > { %1071 = vmatpush1.bf16.msra.mxu0 %v4041_v7 }
  0xd2   : > { %1072 = vmatprep.subr.bf16.mxu0 %v4045_v8 }
  0xd3   : > { %2941 = vmatpush3.bf16.msra.mxu1 %v4073_v14 }
  0xd4   : > { %2942 = vmatprep.subr.bf16.mxu1 %v5102_v0 }
  0xd5   : > { %1073 = vmatpush1.bf16.msra.mxu0 %v4052_v10 }
  0xd6   : > { %1074 = vmatprep.subr.bf16.mxu0 %v4057_v11 }
  0xd7   : > { %2943 = vmatpush3.bf16.msra.mxu1 %v4086_v17 }
  0xd8   : > { %2944 = vmatprep.subr.bf16.mxu1 %v5102_v0 }
  0xd9   : > { %1075 = vmatpush1.bf16.msra.mxu0 %v4068_v13 }
  0xda   : > { %1076 = vmatprep.subr.bf16.mxu0 %v4077_v15 }
  0xdb   : > { %2945 = vmatpush3.bf16.msra.mxu1 %v4100_v20 }
  0xdc   : > { %2946 = vmatprep.subr.bf16.mxu1 %v5102_v0 }
  0xdd   : > { %1077 = vmatpush1.bf16.msra.mxu0 %v4082_v16 }
  0xde   : > { %1078 = vmatprep.subr.bf16.mxu0 %v4090_v18 }
  0xdf   : > { %2947 = vmatpush3.bf16.msra.mxu1 %v4116_v23 }
  0xe0   : > { %2948 = vmatprep.subr.bf16.mxu1 %v5102_v0 }
  0xe1   : > { %1079 = vmatpush1.bf16.msra.mxu0 %v4095_v19 }
  0xe2   : > { %1080 = vmatprep.subr.bf16.mxu0 %v4104_v21 }
  0xe3   : > { %2949 = vmatpush3.bf16.msra.mxu1 %v4133_v27 }
  0xe4   : > { %2950 = vmatprep.subr.bf16.mxu1 %v5102_v0 }
  0xe5   : > { %1081 = vmatpush1.bf16.msra.mxu0 %v4108_v22 }
  0xe6   : > { %1148 = vmatprep.subr.bf16.mxu0 %v4120_v24 }
  0xe7   : > { %2951 = vmatpush3.bf16.msra.mxu1 %v4155_v31 }
  0xe8   : > { %2956 = vmatprep.subr.bf16.mxu1 %v5102_v0  ;;  %1099 = vmatmul.mubr.bf16.vlgmr.msra.gmra.mrb[4].mxu0 %v2712_v59 }
  0xe9   : > { %1149 = vmatpush1.bf16.msra.mxu0 %v4129_v26  ;;  %1180 = vmatprep.mubr.bf16.mxu0 %v5100_v1  ;;  %v811_v1 = vrot.slane %v575_v44, %v584_v40 }
  0xea   : > { %2953 = vmatmul.mubr.bf16.vlgmr.msra.gmra.mrb[8].mxu1 %v2712_v59  ;;  %1150 = vmatprep.subr.bf16.mxu0 %v4137_v28  ;;  %v585_v59 = vrot.slane %v574_v48, %v584_v40 }
  0xeb   : > { %2957 = vmatpush3.bf16.msra.mxu1 %v4172_v35  ;;  %2972 = vmatprep.mubr.msk.bf16.mxu1 %vm3746_vm0, %v5102_v0 }
  0xec   : > { %2958 = vmatprep.subr.bf16.mxu1 %v5102_v0 }
  0xed   : > { %1151 = vmatpush1.bf16.msra.mxu0 %v4145_v29 }
  0xee   : > { %1152 = vmatprep.subr.bf16.mxu0 %v4152_v30 }
  0xef   : > { %2959 = vmatpush3.bf16.msra.mxu1 %v4192_v39 }
  0xf0   : > { %2960 = vmatprep.subr.bf16.mxu1 %v5102_v0 }
  0xf1   : > { %1153 = vmatpush1.bf16.msra.mxu0 %v4167_v34 }
  0xf2   : > { %1154 = vmatprep.subr.bf16.mxu0 %v4180_v36 }
  0xf3   : > { %2961 = vmatpush3.bf16.msra.mxu1 %v4210_v43 }
  0xf4   : > { %2962 = vmatprep.subr.bf16.mxu1 %v5102_v0 }
  0xf5   : > { %1155 = vmatpush1.bf16.msra.mxu0 %v4188_v38 }
  0xf6   : > { %1156 = vmatprep.subr.bf16.mxu0 %v4197_v41 }
  0xf7   : > { %2963 = vmatpush3.bf16.msra.mxu1 %v4224_v47 }
  0xf8   : > { %2964 = vmatprep.subr.bf16.mxu1 %v5102_v0 }
  0xf9   : > { %1157 = vmatpush1.bf16.msra.mxu0 %v4206_v42 }
  0xfa   : > { %1158 = vmatprep.subr.bf16.mxu0 %v4215_v45 }
  0xfb   : > { %2965 = vmatpush3.bf16.msra.mxu1 %v4238_v51 }
  0xfc   : > { %2966 = vmatprep.subr.bf16.mxu1 %v5102_v0 }
  0xfd   : > { %1159 = vmatpush1.bf16.msra.mxu0 %v4220_v46 }
  0xfe   : > { %1160 = vmatprep.subr.bf16.mxu0 %v4229_v49 }
  0xff   : > { %2967 = vmatpush3.bf16.msra.mxu1 %v4257_v55 }
 0x100   : > { %2968 = vmatprep.subr.bf16.mxu1 %v5102_v0 }
 0x101   : > { %1161 = vmatpush1.bf16.msra.mxu0 %v4234_v50 }
 0x102   : > { %1162 = vmatprep.subr.bf16.mxu0 %v4242_v52 }
 0x103   : > { %2969 = vmatpush3.bf16.msra.mxu1 %v4266_v57 }
 0x104   : > { %2970 = vmatprep.subr.bf16.mxu1 %v5102_v0 }
 0x105   : > { %1163 = vmatpush1.bf16.msra.mxu0 %v4251_v53 }
 0x106   : > { %1263 = vmatprep.subr.bf16.mxu0 %v4022_v2 }
 0x107   : > { %2971 = vmatpush3.bf16.msra.mxu1 %v4272_v58 }
 0x108   : > { %2976 = vmatprep.subr.bf16.mxu1 %v5102_v0 }
 0x17b   : > { %v800_v60 = vpop.f32.mrb[0].mxu1 }
 0x17c   : > { %v2914_v61 = vpop.f32.mrb[1].mxu1 }
 0x17d   : > { %v803_v62 = vpop.f32.mrb[2].mxu1  ;;  %v589_v61 = vrot.slane %v574_v48, %v588_v56 }
 0x17e   : > { %v2915_v63 = vpop.f32.mrb[3].mxu1  ;;  %v815_v62 = vrot.slane %v575_v44, %v588_v56 }
 0x17f   : > { %v4355_v63 = vadd.f32 %v811_v1, %v585_v59  ;;  %v592_v59 = vsub.s32 2, %v583_v37 }
 0x180   : > { %v4357_v0 = vadd.f32 %v815_v62, %v589_v61 }
 0x181   : > { %v4361_v61 = vrot.slane %v575_v44, %v592_v59  ;;  %v4363_v62 = vrot.slane %v574_v48, %v592_v59 }
 0x19b   : > { %v985_v33 = vpop.f32.mrb[0].mxu0 }
 0x19c   : > { %v3217_v32 = vadd.f32 %v4355_v63, %v985_v33  ;;  %v987_v25 = vpop.f32.mrb[1].mxu0 }
 0x19d   : > { %v989_v2 = vpop.f32.mrb[2].mxu0  ;;  %v3219_v52 = vadd.f32 %v4357_v0, %v987_v25  ;;  %v1026_v50 = vpop.f32.mrb[4].mxu1 }
 0x19e   : > { %v2708_v58 = vmul.f32 -1.442695, %v3217_v32  ;;  %v990_v53 = vpop.f32.mrb[3].mxu0  ;;  %v2934_v49 = vpop.f32.mrb[5].mxu1  ;;  %v1027_v32 = vadd.f32 %v1026_v50, %v4361_v61 }
 0x19f   : > { %v2709_v57 = vmul.f32 -1.442695, %v3219_v52  ;;  %v1029_v40 = vpop.f32.mrb[6].mxu1  ;;  %v801_v52 = vadd.f32 %v800_v60, %v4363_v62  ;;  %v5176_v60 = vmov 0.0  }
 0x1a0   : > { %3431 = vpow2.f32 %v2708_v58  ;;  %v2935_v55 = vpop.f32.mrb[7].mxu1  ;;  %v1060_v40 = vpop.permute.xlu0 %1059 }
 0x1a1   : > { %3433 = vpow2.f32 %v2709_v57  ;;  %vm1061_vm13 = vcmp.eq.s32.totalorder %v1060_v40, 1  ;;  %v5185_v40 = vld [vmem:[#allocation19_spill] sm:$0xff] }
 0x1aa   : > { %v3432_v1 = vpop.eup %3431 }
 0x1ab   : > { %v1036_v56 = vadd.f32 1.0, %v3432_v1  ;;  %v3434_v33 = vpop.eup %3433 }
 0x1ac   : > { %v1043_v2 = vadd.f32 1.0, %v3434_v33 }
 0x1ad   : > { %3435 = vrcp.f32 %v1036_v56  ;;  %v5177_v56 = vmov 0  }
 0x1ae   : > { %3437 = vrcp.f32 %v1043_v2 }
 0x1b7   : > { %v3436_v53 = vpop.eup %3435 }
 0x1b8   : > { %v1046_v49 = vmul.f32 %v3436_v53, %v1027_v32  ;;  %v3438_v55 = vpop.eup %3437  ;;  %v2717_v32 = vld [vmem:[%s3999_s27 + $0x8] sm:$0xf]  ;;  %v5178_v53 = vld [vmem:[#allocation27_spill] sm:$0xff] }
 0x1b9   : > { %v1049_v57 = vsub.f32 1.0, %v3438_v55  ;;  %v1051_v44 = vmul.f32 %v3438_v55, %v4253_v54  ;;  %v5182_v55 = vld [vmem:[#allocation25_spill] sm:$0xff] }
 0x1ba   : > { %v1047_v58 = vadd.f32 %v1046_v49, %v801_v52  ;;  %v5179_v52 = vld [vmem:[#allocation23_spill] sm:$0xff]  ;;  %v5180_v49 = vld [vmem:[#allocation24_spill] sm:$0xff] }
 0x1bc   : > { %3439 = vtanh.f32 %v1047_v58  ;;  %v5181_v58 = vld [vmem:[#allocation28_spill] sm:$0xff] }
 0x1c6   : > { %v3440_v25 = vpop.eup %3439 }
 0x1c7   : > { %v1050_v37 = vmul.f32 %v3440_v25, %v1049_v57  ;;  %v5183_v57 = vld [vmem:[#allocation26_spill] sm:$0xff]  ;;  %v5184_v25 = vld [vmem:[#allocation29_spill] sm:$0xff] }
 0x1c9   : > { %v1052_v48 = vadd.f32 %v1051_v44, %v1050_v37  ;;  %v5186_v37 = vld [vmem:[#allocation20_spill] sm:$0xff]  ;;  %v5187_v44 = vld [vmem:[#allocation21_spill] sm:$0xff] }
 0x1ca   : > { %vm2720_vm14 = vcmp.le.s32.totalorder %v5186_v37, 2  ;;  %vm2721_vm15 = vcmp.gt.s32.totalorder %v5187_v44, 2  ;;  %vm2725_vm1 = vcmp.le.s32.totalorder %v5186_v37, 3  ;;  %vm2726_vm2 = vcmp.gt.s32.totalorder %v5187_v44, 3 }
 0x1cb   : > { %v4369_v1 = vsel %vm1061_vm13, %v1052_v48, %v4253_v54  ;;  %v4408_v54 = vpop.f32.mrb[8].mxu1  ;;  %vm1450_vm3 = vmand %vm2720_vm14, %vm2721_vm15  ;;  %vm2735_vm5 = vcmp.le.s32.totalorder %v5186_v37, 5  ;;  %vm2736_vm6 = vcmp.gt.s32.totalorder %v5187_v44, 5  ;;  %vm2745_vm8 = vcmp.le.s32.totalorder %v5186_v37, 7 }
 0x1cc   : > { %v1147_v50 = vpack.c.bf16 %v4369_v1, %v4369_v1  ;;  %v2954_v59 = vpop.f32.mrb[9].mxu1  ;;  %v1451_v48 = vsel %vm1450_vm3, 1, %v5177_v56  ;;  %vm1647_vm4 = vmand %vm2725_vm1, %vm2726_vm2  ;;  %vm2746_vm9 = vcmp.gt.s32.totalorder %v5187_v44, 7 }
 0x1cd   : > { %v1144_v33 = vpop.f32.mrb[10].mxu1  ;;  %1453 = vperm.xlu1 %3366, %v1451_v48   ;;  %vm2041_vm7 = vmand %vm2735_vm5, %vm2736_vm6 }
 0x1ce   : > { %1181 = vmatmul.mubr.bf16.vlgmr.msra.gmra.mrb[4].mxu0 %v1147_v50  ;;  %2973 = vmatmul.mubr.bf16.vlgmr.msra.gmra.mrb[12].mxu1 %v1147_v50  ;;  %v2955_v2 = vpop.f32.mrb[11].mxu1  ;;  %v1648_v50 = vsel %vm1647_vm4, 1, %v5177_v56  ;;  %v2042_v59 = vsel %vm2041_vm7, 1, %v5177_v56  ;;  %vm2435_vm10 = vmand %vm2745_vm8, %vm2746_vm9 }
 0x1cf   : > { %1264 = vmatpush1.bf16.msra.mxu0 %v4025_v3  ;;  %2977 = vmatpush3.bf16.msra.mxu1 %v4048_v9  ;;  %v2436_v33 = vsel %vm2435_vm10, 1, %v5177_v56 }
 0x1d0   : > { %1265 = vmatprep.subr.bf16.mxu0 %v4029_v4  ;;  %2978 = vmatprep.subr.bf16.mxu1 %v5176_v60 }
 0x1d1   : > { %1295 = vmatprep.mubr.bf16.mxu0 %v5177_v56  ;;  %2992 = vmatprep.mubr.msk.bf16.mxu1 %vm3746_vm0, %v5176_v60 }
 0x1d2   : > { %1650 = vperm.xlu1 %3366, %v1648_v50  }
 0x1d3   : > { %1266 = vmatpush1.bf16.msra.mxu0 %v4033_v5  ;;  %2979 = vmatpush3.bf16.msra.mxu1 %v4061_v12 }
 0x1d4   : > { %1267 = vmatprep.subr.bf16.mxu0 %v4037_v6  ;;  %2980 = vmatprep.subr.bf16.mxu1 %v5176_v60 }
 0x1d6   : > { %2044 = vperm.xlu1 %3366, %v2042_v59  }
 0x1d7   : > { %1268 = vmatpush1.bf16.msra.mxu0 %v4041_v7  ;;  %2981 = vmatpush3.bf16.msra.mxu1 %v4073_v14 }
 0x1d8   : > { %1269 = vmatprep.subr.bf16.mxu0 %v4045_v8  ;;  %2982 = vmatprep.subr.bf16.mxu1 %v5176_v60 }
 0x1da   : > { %2438 = vperm.xlu1 %3366, %v2436_v33  }
 0x1db   : > { %1270 = vmatpush1.bf16.msra.mxu0 %v4052_v10  ;;  %2983 = vmatpush3.bf16.msra.mxu1 %v4086_v17 }
 0x1dc   : > { %1271 = vmatprep.subr.bf16.mxu0 %v4057_v11  ;;  %2984 = vmatprep.subr.bf16.mxu1 %v5176_v60 }
 0x1df   : > { %1272 = vmatpush1.bf16.msra.mxu0 %v4068_v13  ;;  %2985 = vmatpush3.bf16.msra.mxu1 %v4100_v20 }
 0x1e0   : > { %1273 = vmatprep.subr.bf16.mxu0 %v4077_v15  ;;  %2986 = vmatprep.subr.bf16.mxu1 %v5176_v60 }
 0x1e3   : > { %1274 = vmatpush1.bf16.msra.mxu0 %v4082_v16  ;;  %2987 = vmatpush3.bf16.msra.mxu1 %v4116_v23 }
 0x1e4   : > { %1275 = vmatprep.subr.bf16.mxu0 %v4090_v18  ;;  %2988 = vmatprep.subr.bf16.mxu1 %v5176_v60 }
 0x1e7   : > { %1276 = vmatpush1.bf16.msra.mxu0 %v4095_v19  ;;  %2989 = vmatpush3.bf16.msra.mxu1 %v4133_v27 }
 0x1e8   : > { %1277 = vmatprep.subr.bf16.mxu0 %v4104_v21  ;;  %2990 = vmatprep.subr.bf16.mxu1 %v5176_v60 }
 0x1eb   : > { %1278 = vmatpush1.bf16.msra.mxu0 %v4108_v22  ;;  %2991 = vmatpush3.bf16.msra.mxu1 %v4155_v31 }
 0x1ec   : > { %1345 = vmatprep.subr.bf16.mxu0 %v4120_v24  ;;  %2996 = vmatprep.subr.bf16.mxu1 %v5176_v60 }
 0x1ee   : > { %1296 = vmatmul.mubr.bf16.vlgmr.msra.gmra.mrb[8].mxu0 %v2717_v32  ;;  %2993 = vmatmul.mubr.bf16.vlgmr.msra.gmra.mrb[16].mxu1 %v2717_v32 }
 0x1ef   : > { %1346 = vmatpush1.bf16.msra.mxu0 %v4129_v26  ;;  %2997 = vmatpush3.bf16.msra.mxu1 %v4172_v35 }
 0x1f0   : > { %1347 = vmatprep.subr.bf16.mxu0 %v4137_v28  ;;  %2998 = vmatprep.subr.bf16.mxu1 %v5176_v60 }
 0x1f1   : > { %1377 = vmatprep.mubr.bf16.mxu0 %v5177_v56  ;;  %3012 = vmatprep.mubr.msk.bf16.mxu1 %vm3746_vm0, %v5176_v60 }
 0x1f3   : > { %1348 = vmatpush1.bf16.msra.mxu0 %v4145_v29  ;;  %2999 = vmatpush3.bf16.msra.mxu1 %v4192_v39 }
 0x1f4   : > { %1349 = vmatprep.subr.bf16.mxu0 %v4152_v30  ;;  %3000 = vmatprep.subr.bf16.mxu1 %v5176_v60 }
 0x1f7   : > { %1350 = vmatpush1.bf16.msra.mxu0 %v4167_v34  ;;  %3001 = vmatpush3.bf16.msra.mxu1 %v4210_v43 }
 0x1f8   : > { %1351 = vmatprep.subr.bf16.mxu0 %v4180_v36  ;;  %3002 = vmatprep.subr.bf16.mxu1 %v5176_v60 }
 0x1fb   : > { %1352 = vmatpush1.bf16.msra.mxu0 %v4188_v38  ;;  %3003 = vmatpush3.bf16.msra.mxu1 %v4224_v47 }
 0x1fc   : > { %1353 = vmatprep.subr.bf16.mxu0 %v4197_v41  ;;  %3004 = vmatprep.subr.bf16.mxu1 %v5176_v60 }
 0x1ff   : > { %1354 = vmatpush1.bf16.msra.mxu0 %v4206_v42  ;;  %3005 = vmatpush3.bf16.msra.mxu1 %v4238_v51 }
 0x200   : > { %1355 = vmatprep.subr.bf16.mxu0 %v4215_v45  ;;  %3006 = vmatprep.subr.bf16.mxu1 %v5176_v60 }
 0x203   : > { %1356 = vmatpush1.bf16.msra.mxu0 %v4220_v46  ;;  %3007 = vmatpush3.bf16.msra.mxu1 %v5178_v53 }
 0x204   : > { %1357 = vmatprep.subr.bf16.mxu0 %v5179_v52  ;;  %3008 = vmatprep.subr.bf16.mxu1 %v5176_v60 }
 0x207   : > { %1358 = vmatpush1.bf16.msra.mxu0 %v5180_v49  ;;  %3009 = vmatpush3.bf16.msra.mxu1 %v5181_v58 }
 0x208   : > { %1359 = vmatprep.subr.bf16.mxu0 %v5182_v55  ;;  %3010 = vmatprep.subr.bf16.mxu1 %v5176_v60 }
 0x20b   : > { %1360 = vmatpush1.bf16.msra.mxu0 %v5183_v57  ;;  %3011 = vmatpush3.bf16.msra.mxu1 %v5184_v25 }
 0x20c   : > { %1460 = vmatprep.subr.bf16.mxu0 %v5185_v40  ;;  %3016 = vmatprep.subr.bf16.mxu1 %v5176_v60 }
 0x2a1   : > { %v1182_v2 = vpop.f32.mrb[4].mxu0  ;;  %v1223_v32 = vpop.f32.mrb[12].mxu1 }
 0x2a2   : > { %v3221_v40 = vadd.f32 %v4355_v63, %v1182_v2  ;;  %v1184_v48 = vpop.f32.mrb[5].mxu0  ;;  %v2974_v25 = vpop.f32.mrb[13].mxu1  ;;  %v1224_v46 = vadd.f32 %v1223_v32, %v4361_v61 }
 0x2a3   : > { %v1186_v57 = vpop.f32.mrb[6].mxu0  ;;  %v1226_v55 = vpop.f32.mrb[14].mxu1  ;;  %v3223_v44 = vadd.f32 %v4357_v0, %v1184_v48 }
 0x2a4   : > { %v2713_v58 = vmul.f32 -1.442695, %v3221_v40  ;;  %v1187_v37 = vpop.f32.mrb[7].mxu0  ;;  %v2975_v49 = vpop.f32.mrb[15].mxu1  ;;  %v1142_v57 = vadd.f32 %v4408_v54, %v4363_v62 }
 0x2a5   : > { %v2714_v50 = vmul.f32 -1.442695, %v3223_v44  ;;  %v1257_v44 = vpop.permute.xlu0 %1256 }
 0x2a6   : > { %3441 = vpow2.f32 %v2713_v58  ;;  %vm1258_vm11 = vcmp.eq.s32.totalorder %v1257_v44, 1 }
 0x2a7   : > { %3443 = vpow2.f32 %v2714_v50 }
 0x2b0   : > { %v3442_v59 = vpop.eup %3441 }
 0x2b1   : > { %v1233_v52 = vadd.f32 1.0, %v3442_v59  ;;  %v3444_v33 = vpop.eup %3443 }
 0x2b2   : > { %v1240_v53 = vadd.f32 1.0, %v3444_v33 }
 0x2b3   : > { %3445 = vrcp.f32 %v1233_v52 }
 0x2b4   : > { %3447 = vrcp.f32 %v1240_v53 }
 0x2bd   : > { %v3446_v2 = vpop.eup %3445 }
 0x2be   : > { %v1243_v55 = vmul.f32 %v3446_v2, %v1224_v46  ;;  %v3448_v49 = vpop.eup %3447 }
 0x2bf   : > { %v1246_v40 = vsub.f32 1.0, %v3448_v49  ;;  %v1248_v48 = vmul.f32 %v3448_v49, %v4369_v1 }
 0x2c0   : > { %v1244_v25 = vadd.f32 %v1243_v55, %v1142_v57 }
 0x2c2   : > { %3449 = vtanh.f32 %v1244_v25 }
 0x2cc   : > { %v3450_v58 = vpop.eup %3449 }
 0x2cd   : > { %v1247_v37 = vmul.f32 %v3450_v58, %v1246_v40  ;;  %v1454_v58 = vpop.permute.xlu1 %1453 }
 0x2ce   : > { %vm1455_vm12 = vcmp.eq.s32.totalorder %v1454_v58, 1 }
 0x2cf   : > { %v1249_v52 = vadd.f32 %v1248_v48, %v1247_v37 }
 0x2d1   : > { %v4465_v50 = vsel %vm1258_vm11, %v1249_v52, %v4369_v1 }
 0x2d2   : > { %v1344_v32 = vpack.c.bf16 %v4465_v50, %v4465_v50 }
 0x2d4   : > { %1378 = vmatmul.mubr.bf16.vlgmr.msra.gmra.mrb[8].mxu0 %v1344_v32  ;;  %3013 = vmatmul.mubr.bf16.vlgmr.msra.gmra.mrb[20].mxu1 %v1344_v32 }
 0x2d5   : > { %1461 = vmatpush1.bf16.msra.mxu0 %v4025_v3  ;;  %3017 = vmatpush3.bf16.msra.mxu1 %v4048_v9  ;;  %v4504_v3 = vpop.f32.mrb[16].mxu1  ;;  %v5189_v9 = vld [vmem:[#allocation27_spill] sm:$0xff] }
 0x2d6   : > { %1462 = vmatprep.subr.bf16.mxu0 %v4029_v4  ;;  %3018 = vmatprep.subr.bf16.mxu1 %v5176_v60  ;;  %v2994_v4 = vpop.f32.mrb[17].mxu1  ;;  %v1339_v2 = vadd.f32 %v4504_v3, %v4363_v62  ;;  %v4557_v3 = vld [vmem:[%s4009_s16] ss:$12 sps:$4 sm:$0xff]  }
 0x2d7   : > { %1492 = vmatprep.mubr.bf16.mxu0 %v5177_v56  ;;  %3032 = vmatprep.mubr.msk.bf16.mxu1 %vm3746_vm0, %v5176_v60  ;;  %v4561_v4 = vld [vmem:[%s4009_s16 + $0x8] ss:$12 sps:$4 sm:$0xff]  }
 0x2d9   : > { %1463 = vmatpush1.bf16.msra.mxu0 %v4033_v5  ;;  %3019 = vmatpush3.bf16.msra.mxu1 %v4061_v12  ;;  %v1341_v5 = vpop.f32.mrb[18].mxu1  ;;  %v5192_v12 = vld [vmem:[#allocation28_spill] sm:$0xff] }
 0x2da   : > { %1464 = vmatprep.subr.bf16.mxu0 %v4037_v6  ;;  %3020 = vmatprep.subr.bf16.mxu1 %v5176_v60  ;;  %v2995_v6 = vpop.f32.mrb[19].mxu1  ;;  %v4565_v5 = vld [vmem:[%s4009_s16 + $0x1c] ss:$12 sps:$4 sm:$0xff]  }
 0x2db   : > { %v4577_v6 = vld [vmem:[%s4009_s16 + $0x20] ss:$12 sps:$4 sm:$0xff]  }
 0x2dd   : > { %1465 = vmatpush1.bf16.msra.mxu0 %v4041_v7  ;;  %3021 = vmatpush3.bf16.msra.mxu1 %v4073_v14  ;;  %v2722_v7 = vld [vmem:[%s3999_s27 + $0xc] sm:$0xf] }
 0x2de   : > { %1466 = vmatprep.subr.bf16.mxu0 %v4045_v8  ;;  %3022 = vmatprep.subr.bf16.mxu1 %v5176_v60  ;;  %v5188_v8 = vld [vmem:[#allocation22_spill] sm:$0xff] }
 0x2df   : > { %v5194_v14 = vld [vmem:[#allocation26_spill] sm:$0xff] }
 0x2e1   : > { %1467 = vmatpush1.bf16.msra.mxu0 %v4052_v10  ;;  %3023 = vmatpush3.bf16.msra.mxu1 %v4086_v17  ;;  %v5190_v10 = vld [vmem:[#allocation23_spill] sm:$0xff] }
 0x2e2   : > { %1468 = vmatprep.subr.bf16.mxu0 %v4057_v11  ;;  %3024 = vmatprep.subr.bf16.mxu1 %v5176_v60  ;;  %v5191_v11 = vld [vmem:[#allocation24_spill] sm:$0xff] }
 0x2e5   : > { %1469 = vmatpush1.bf16.msra.mxu0 %v4068_v13  ;;  %3025 = vmatpush3.bf16.msra.mxu1 %v4100_v20  ;;  %v5193_v13 = vld [vmem:[#allocation25_spill] sm:$0xff] }
 0x2e6   : > { %1470 = vmatprep.subr.bf16.mxu0 %v4077_v15  ;;  %3026 = vmatprep.subr.bf16.mxu1 %v5176_v60  ;;  %v5195_v15 = vld [vmem:[#allocation29_spill] sm:$0xff] }
 0x2e9   : > { %1471 = vmatpush1.bf16.msra.mxu0 %v4082_v16  ;;  %3027 = vmatpush3.bf16.msra.mxu1 %v4116_v23  ;;  %v4541_v16 = vld [vmem:[%s4009_s16 + $0x4] ss:$12 sps:$4 sm:$0xff]  }
 0x2ea   : > { %1472 = vmatprep.subr.bf16.mxu0 %v4090_v18  ;;  %3028 = vmatprep.subr.bf16.mxu1 %v5176_v60  ;;  %5196 = vst [vmem:[#allocation19_spill] sm:$0xff] %v4541_v16 }
 0x2ed   : > { %1473 = vmatpush1.bf16.msra.mxu0 %v4095_v19  ;;  %3029 = vmatpush3.bf16.msra.mxu1 %v4133_v27 }
 0x2ee   : > { %1474 = vmatprep.subr.bf16.mxu0 %v4104_v21  ;;  %3030 = vmatprep.subr.bf16.mxu1 %v5176_v60 }
 0x2f1   : > { %1475 = vmatpush1.bf16.msra.mxu0 %v4108_v22  ;;  %3031 = vmatpush3.bf16.msra.mxu1 %v4155_v31 }
 0x2f2   : > { %1542 = vmatprep.subr.bf16.mxu0 %v4120_v24  ;;  %3036 = vmatprep.subr.bf16.mxu1 %v5176_v60 }
 0x2f4   : > { %1493 = vmatmul.mubr.bf16.vlgmr.msra.gmra.mrb[12].mxu0 %v2722_v7  ;;  %3033 = vmatmul.mubr.bf16.vlgmr.msra.gmra.mrb[24].mxu1 %v2722_v7  ;;  %v4581_v7 = vld [vmem:[%s4009_s16 + $0x34] ss:$12 sps:$4 sm:$0xff]  }
 0x2f5   : > { %1543 = vmatpush1.bf16.msra.mxu0 %v4129_v26  ;;  %3037 = vmatpush3.bf16.msra.mxu1 %v4172_v35 }
 0x2f6   : > { %1544 = vmatprep.subr.bf16.mxu0 %v4137_v28  ;;  %3038 = vmatprep.subr.bf16.mxu1 %v5176_v60 }
 0x2f7   : > { %1574 = vmatprep.mubr.bf16.mxu0 %v5177_v56  ;;  %3052 = vmatprep.mubr.msk.bf16.mxu1 %vm3746_vm0, %v5176_v60 }
 0x2f9   : > { %1545 = vmatpush1.bf16.msra.mxu0 %v4145_v29  ;;  %3039 = vmatpush3.bf16.msra.mxu1 %v4192_v39 }
 0x2fa   : > { %1546 = vmatprep.subr.bf16.mxu0 %v4152_v30  ;;  %3040 = vmatprep.subr.bf16.mxu1 %v5176_v60 }
 0x2fd   : > { %1547 = vmatpush1.bf16.msra.mxu0 %v4167_v34  ;;  %3041 = vmatpush3.bf16.msra.mxu1 %v4210_v43 }
 0x2fe   : > { %1548 = vmatprep.subr.bf16.mxu0 %v4180_v36  ;;  %3042 = vmatprep.subr.bf16.mxu1 %v5176_v60 }
 0x301   : > { %1549 = vmatpush1.bf16.msra.mxu0 %v4188_v38  ;;  %3043 = vmatpush3.bf16.msra.mxu1 %v4224_v47 }
 0x302   : > { %1550 = vmatprep.subr.bf16.mxu0 %v4197_v41  ;;  %3044 = vmatprep.subr.bf16.mxu1 %v5176_v60 }
 0x305   : > { %1551 = vmatpush1.bf16.msra.mxu0 %v4206_v42  ;;  %3045 = vmatpush3.bf16.msra.mxu1 %v4238_v51 }
 0x306   : > { %1552 = vmatprep.subr.bf16.mxu0 %v4215_v45  ;;  %3046 = vmatprep.subr.bf16.mxu1 %v5176_v60 }
 0x309   : > { %1553 = vmatpush1.bf16.msra.mxu0 %v5188_v8  ;;  %3047 = vmatpush3.bf16.msra.mxu1 %v5189_v9 }
 0x30a   : > { %1554 = vmatprep.subr.bf16.mxu0 %v5190_v10  ;;  %3048 = vmatprep.subr.bf16.mxu1 %v5176_v60 }
 0x30d   : > { %1555 = vmatpush1.bf16.msra.mxu0 %v5191_v11  ;;  %3049 = vmatpush3.bf16.msra.mxu1 %v5192_v12 }
 0x30e   : > { %1556 = vmatprep.subr.bf16.mxu0 %v5193_v13  ;;  %3050 = vmatprep.subr.bf16.mxu1 %v5176_v60 }
 0x311   : > { %1557 = vmatpush1.bf16.msra.mxu0 %v5194_v14  ;;  %3051 = vmatpush3.bf16.msra.mxu1 %v5195_v15 }
 0x312   : > { %1657 = vmatprep.subr.bf16.mxu0 %v4541_v16  ;;  %3056 = vmatprep.subr.bf16.mxu1 %v5176_v60 }
 0x3a7   : > { %v1379_v17 = vpop.f32.mrb[8].mxu0  ;;  %v1420_v18 = vpop.f32.mrb[20].mxu1 }
 0x3a8   : > { %v3225_v19 = vadd.f32 %v4355_v63, %v1379_v17  ;;  %v1381_v20 = vpop.f32.mrb[9].mxu0  ;;  %v3014_v21 = vpop.f32.mrb[21].mxu1  ;;  %v1421_v59 = vadd.f32 %v1420_v18, %v4361_v61  ;;  %v4586_v17 = vld [vmem:[%s4009_s16 + $0x30] ss:$12 sps:$4 sm:$0xff]   ;;  %v4590_v18 = vld [vmem:[%s4009_s16 + $0x38] ss:$12 sps:$4 sm:$0xff]  }
 0x3a9   : > { %v1383_v22 = vpop.f32.mrb[10].mxu0  ;;  %v1423_v23 = vpop.f32.mrb[22].mxu1  ;;  %v3227_v29 = vadd.f32 %v4357_v0, %v1381_v20  ;;  %v4599_v20 = vld [vmem:[%s4009_s16 + $0x48] ss:$12 sps:$4 sm:$0xff]   ;;  %v4603_v21 = vld [vmem:[%s4009_s16 + $0x50] ss:$12 sps:$4 sm:$0xff]  }
 0x3aa   : > { %v2718_v24 = vmul.f32 -1.442695, %v3225_v19  ;;  %v1384_v26 = vpop.f32.mrb[11].mxu0  ;;  %v3015_v28 = vpop.f32.mrb[23].mxu1  ;;  %v4594_v19 = vld [vmem:[%s4009_s16 + $0x4c] ss:$12 sps:$4 sm:$0xff]  }
 0x3ab   : > { %v2719_v30 = vmul.f32 -1.442695, %v3227_v29  ;;  %v4607_v22 = vld [vmem:[%s4009_s16 + $0x64] ss:$12 sps:$4 sm:$0xff]   ;;  %v4612_v23 = vld [vmem:[%s4009_s16 + $0x60] ss:$12 sps:$4 sm:$0xff]  }
 0x3ac   : > { %3451 = vpow2.f32 %v2718_v24  ;;  %v4616_v24 = vld [vmem:[%s4009_s16 + $0x68] ss:$12 sps:$4 sm:$0xff]   ;;  %v4625_v28 = vld [vmem:[%s4009_s16 + $0x78] ss:$12 sps:$4 sm:$0xff]   ;;  %v4629_v29 = vld [vmem:[%s4009_s16 + $0x80] ss:$12 sps:$4 sm:$0xff]  }
 0x3ad   : > { %3453 = vpow2.f32 %v2719_v30  ;;  %v4620_v26 = vld [vmem:[%s4009_s16 + $0x7c] ss:$12 sps:$4 sm:$0xff]   ;;  %v4633_v30 = vld [vmem:[%s4009_s16 + $0x94] ss:$12 sps:$4 sm:$0xff]  }
 0x3b6   : > { %v3452_v46 = vpop.eup %3451 }
 0x3b7   : > { %v1430_v1 = vadd.f32 1.0, %v3452_v46  ;;  %v3454_v54 = vpop.eup %3453  ;;  %v4638_v46 = vld [vmem:[%s4009_s16 + $0x90] ss:$12 sps:$4 sm:$0xff]  }
 0x3b8   : > { %v1437_v53 = vadd.f32 1.0, %v3454_v54  ;;  %v4648_v54 = vld [vmem:[%s4009_s16 + $0xa8] ss:$12 sps:$4 sm:$0xff]  }
 0x3b9   : > { %3455 = vrcp.f32 %v1430_v1  ;;  %v4643_v1 = vld [vmem:[%s4009_s16 + $0xac] ss:$12 sps:$4 sm:$0xff]  }
 0x3ba   : > { %3457 = vrcp.f32 %v1437_v53  ;;  %v4653_v53 = vld [vmem:[%s4065_s11 + $0x4] ss:$12 sps:$4 sm:$0xff]  }
 0x3c3   : > { %v3456_v33 = vpop.eup %3455 }
 0x3c4   : > { %v1440_v57 = vmul.f32 %v3456_v33, %v1421_v59  ;;  %v3458_v25 = vpop.eup %3457 }
 0x3c5   : > { %v1443_v49 = vsub.f32 1.0, %v3458_v25  ;;  %v1445_v37 = vmul.f32 %v3458_v25, %v4465_v50  ;;  %v4674_v25 = vld [vmem:[%s4065_s11 + $0x18] ss:$12 sps:$4 sm:$0xff]  }
 0x3c6   : > { %v1441_v55 = vadd.f32 %v1440_v57, %v1339_v2  ;;  %v2727_v57 = vld [vmem:[%s3999_s27 + $0x10] sm:$0xf] }
 0x3c8   : > { %3459 = vtanh.f32 %v1441_v55  ;;  %v4661_v55 = vld [vmem:[%s4065_s11] ss:$12 sps:$4 sm:$0xff]  }
 0x3d2   : > { %v3460_v40 = vpop.eup %3459 }
 0x3d3   : > { %v1444_v48 = vmul.f32 %v3460_v40, %v1443_v49  ;;  %v4679_v49 = vld [vmem:[%s4065_s11 + $0x34] ss:$12 sps:$4 sm:$0xff]  }
 0x3d5   : > { %v1446_v44 = vadd.f32 %v1445_v37, %v1444_v48 }
 0x3d7   : > { %v4552_v52 = vsel %vm1455_vm12, %v1446_v44, %v4465_v50  ;;  %v4573_v50 = vld [vmem:[%s4009_s16 + $0x18] ss:$12 sps:$4 sm:$0xff]  }
 0x3d8   : > { %v1541_v32 = vpack.c.bf16 %v4552_v52, %v4552_v52 }
 0x3da   : > { %1575 = vmatmul.mubr.bf16.vlgmr.msra.gmra.mrb[12].mxu0 %v1541_v32  ;;  %3053 = vmatmul.mubr.bf16.vlgmr.msra.gmra.mrb[28].mxu1 %v1541_v32 }
 0x3db   : > { %1658 = vmatpush1.bf16.msra.mxu0 %v4557_v3  ;;  %3057 = vmatpush3.bf16.msra.mxu1 %v4561_v4 }
 0x3dc   : > { %1659 = vmatprep.subr.bf16.mxu0 %v4565_v5  ;;  %3058 = vmatprep.subr.bf16.mxu1 %v5176_v60 }
 0x3dd   : > { %1689 = vmatprep.mubr.bf16.mxu0 %v5177_v56  ;;  %3072 = vmatprep.mubr.msk.bf16.mxu1 %vm3746_vm0, %v5176_v60 }
 0x3df   : > { %1660 = vmatpush1.bf16.msra.mxu0 %v4573_v50  ;;  %3059 = vmatpush3.bf16.msra.mxu1 %v4577_v6 }
 0x3e0   : > { %1661 = vmatprep.subr.bf16.mxu0 %v4581_v7  ;;  %3060 = vmatprep.subr.bf16.mxu1 %v5176_v60 }
 0x3e3   : > { %1662 = vmatpush1.bf16.msra.mxu0 %v4586_v17  ;;  %3061 = vmatpush3.bf16.msra.mxu1 %v4590_v18 }
 0x3e4   : > { %1663 = vmatprep.subr.bf16.mxu0 %v4594_v19  ;;  %3062 = vmatprep.subr.bf16.mxu1 %v5176_v60 }
 0x3e7   : > { %1664 = vmatpush1.bf16.msra.mxu0 %v4599_v20  ;;  %3063 = vmatpush3.bf16.msra.mxu1 %v4603_v21 }
 0x3e8   : > { %1665 = vmatprep.subr.bf16.mxu0 %v4607_v22  ;;  %3064 = vmatprep.subr.bf16.mxu1 %v5176_v60 }
 0x3eb   : > { %1666 = vmatpush1.bf16.msra.mxu0 %v4612_v23  ;;  %3065 = vmatpush3.bf16.msra.mxu1 %v4616_v24 }
 0x3ec   : > { %1667 = vmatprep.subr.bf16.mxu0 %v4620_v26  ;;  %3066 = vmatprep.subr.bf16.mxu1 %v5176_v60 }
 0x3ef   : > { %1668 = vmatpush1.bf16.msra.mxu0 %v4625_v28  ;;  %3067 = vmatpush3.bf16.msra.mxu1 %v4629_v29 }
 0x3f0   : > { %1669 = vmatprep.subr.bf16.mxu0 %v4633_v30  ;;  %3068 = vmatprep.subr.bf16.mxu1 %v5176_v60 }
 0x3f3   : > { %1670 = vmatpush1.bf16.msra.mxu0 %v4638_v46  ;;  %3069 = vmatpush3.bf16.msra.mxu1 %v4133_v27  ;;  %v4657_v27 = vpop.f32.mrb[24].mxu1 }
 0x3f4   : > { %1671 = vmatprep.subr.bf16.mxu0 %v4643_v1  ;;  %3070 = vmatprep.subr.bf16.mxu1 %v5176_v60  ;;  %v3034_v59 = vpop.f32.mrb[25].mxu1 }
 0x3f5   : > { %v1538_v33 = vpop.f32.mrb[26].mxu1 }
 0x3f6   : > { %v3035_v2 = vpop.f32.mrb[27].mxu1  ;;  %v1651_v33 = vpop.permute.xlu1 %1650 }
 0x3f7   : > { %1672 = vmatpush1.bf16.msra.mxu0 %v4648_v54  ;;  %3071 = vmatpush3.bf16.msra.mxu1 %v4155_v31  ;;  %v4666_v31 = vld [vmem:[%s4065_s11 + $0x1c] ss:$12 sps:$4 sm:$0xff]   ;;  %vm1652_vm13 = vcmp.eq.s32.totalorder %v1651_v33, 1 }
 0x3f8   : > { %1739 = vmatprep.subr.bf16.mxu0 %v4653_v53  ;;  %3076 = vmatprep.subr.bf16.mxu1 %v5176_v60 }
 0x3fa   : > { %1690 = vmatmul.mubr.bf16.vlgmr.msra.gmra.mrb[16].mxu0 %v2727_v57  ;;  %3073 = vmatmul.mubr.bf16.vlgmr.msra.gmra.mrb[32].mxu1 %v2727_v57 }
 0x3fb   : > { %1740 = vmatpush1.bf16.msra.mxu0 %v4661_v55  ;;  %3077 = vmatpush3.bf16.msra.mxu1 %v4172_v35 }
 0x3fc   : > { %1741 = vmatprep.subr.bf16.mxu0 %v4666_v31  ;;  %3078 = vmatprep.subr.bf16.mxu1 %v5176_v60 }
 0x3fd   : > { %1771 = vmatprep.mubr.bf16.mxu0 %v5177_v56  ;;  %3092 = vmatprep.mubr.msk.bf16.mxu1 %vm3746_vm0, %v5176_v60 }
 0x3ff   : > { %1742 = vmatpush1.bf16.msra.mxu0 %v4674_v25  ;;  %3079 = vmatpush3.bf16.msra.mxu1 %v4192_v39 }
 0x400   : > { %1743 = vmatprep.subr.bf16.mxu0 %v4679_v49  ;;  %3080 = vmatprep.subr.bf16.mxu1 %v5176_v60 }
 0x403   : > { %1744 = vmatpush1.bf16.msra.mxu0 %v4167_v34  ;;  %3081 = vmatpush3.bf16.msra.mxu1 %v4210_v43 }
 0x404   : > { %1745 = vmatprep.subr.bf16.mxu0 %v4180_v36  ;;  %3082 = vmatprep.subr.bf16.mxu1 %v5176_v60 }
 0x407   : > { %1746 = vmatpush1.bf16.msra.mxu0 %v4188_v38  ;;  %3083 = vmatpush3.bf16.msra.mxu1 %v4224_v47 }
 0x408   : > { %1747 = vmatprep.subr.bf16.mxu0 %v4197_v41  ;;  %3084 = vmatprep.subr.bf16.mxu1 %v5176_v60 }
 0x40b   : > { %1748 = vmatpush1.bf16.msra.mxu0 %v4206_v42  ;;  %3085 = vmatpush3.bf16.msra.mxu1 %v4238_v51 }
 0x40c   : > { %1749 = vmatprep.subr.bf16.mxu0 %v4215_v45  ;;  %3086 = vmatprep.subr.bf16.mxu1 %v5176_v60 }
 0x40f   : > { %1750 = vmatpush1.bf16.msra.mxu0 %v5188_v8  ;;  %3087 = vmatpush3.bf16.msra.mxu1 %v5189_v9 }
 0x410   : > { %1751 = vmatprep.subr.bf16.mxu0 %v5190_v10  ;;  %3088 = vmatprep.subr.bf16.mxu1 %v5176_v60 }
 0x413   : > { %1752 = vmatpush1.bf16.msra.mxu0 %v5191_v11  ;;  %3089 = vmatpush3.bf16.msra.mxu1 %v5192_v12 }
 0x414   : > { %1753 = vmatprep.subr.bf16.mxu0 %v5193_v13  ;;  %3090 = vmatprep.subr.bf16.mxu1 %v5176_v60 }
 0x417   : > { %1754 = vmatpush1.bf16.msra.mxu0 %v5194_v14  ;;  %3091 = vmatpush3.bf16.msra.mxu1 %v5195_v15  ;;  %v1536_v15 = vadd.f32 %v4657_v27, %v4363_v62  ;;  %v4754_v27 = vld [vmem:[%s4009_s16 + $0xb0] ss:$12 sps:$4 sm:$0xff]  }
 0x418   : > { %1854 = vmatprep.subr.bf16.mxu0 %v4541_v16  ;;  %3096 = vmatprep.subr.bf16.mxu1 %v5176_v60 }
 0x4ad   : > { %v1576_v34 = vpop.f32.mrb[12].mxu0  ;;  %v1617_v35 = vpop.f32.mrb[28].mxu1 }
 0x4ae   : > { %v3229_v36 = vadd.f32 %v4355_v63, %v1576_v34  ;;  %v1578_v38 = vpop.f32.mrb[13].mxu0  ;;  %v3054_v39 = vpop.f32.mrb[29].mxu1  ;;  %v1618_v13 = vadd.f32 %v1617_v35, %v4361_v61 }
 0x4af   : > { %v1580_v41 = vpop.f32.mrb[14].mxu0  ;;  %v1620_v42 = vpop.f32.mrb[30].mxu1  ;;  %v3231_v51 = vadd.f32 %v4357_v0, %v1578_v38 }
 0x4b0   : > { %v2723_v43 = vmul.f32 -1.442695, %v3229_v36  ;;  %v1581_v45 = vpop.f32.mrb[15].mxu0  ;;  %v3055_v47 = vpop.f32.mrb[31].mxu1  ;;  %v2732_v41 = vld [vmem:[%s3999_s27 + $0x14] sm:$0xf] }
 0x4b1   : > { %v2724_v8 = vmul.f32 -1.442695, %v3231_v51  ;;  %v4764_v42 = vld [vmem:[%s4065_s11 + $0x8] ss:$12 sps:$4 sm:$0xff]   ;;  %v4780_v45 = vld [vmem:[%s4065_s11 + $0x30] ss:$12 sps:$4 sm:$0xff]  }
 0x4b2   : > { %3461 = vpow2.f32 %v2723_v43  ;;  %v4774_v43 = vld [vmem:[%s4065_s11 + $0x20] ss:$12 sps:$4 sm:$0xff]   ;;  %v4784_v47 = vld [vmem:[%s4065_s11 + $0x38] ss:$12 sps:$4 sm:$0xff]  }
 0x4b3   : > { %3463 = vpow2.f32 %v2724_v8  ;;  %v4788_v51 = vld [vmem:[%s4065_s11 + $0x4c] ss:$12 sps:$4 sm:$0xff]   ;;  %v4793_v8 = vld [vmem:[%s4065_s11 + $0x48] ss:$12 sps:$4 sm:$0xff]  }
 0x4bc   : > { %v3462_v9 = vpop.eup %3461 }
 0x4bd   : > { %v1627_v10 = vadd.f32 1.0, %v3462_v9  ;;  %v3464_v11 = vpop.eup %3463  ;;  %v4797_v9 = vld [vmem:[%s4065_s11 + $0x50] ss:$12 sps:$4 sm:$0xff]  }
 0x4be   : > { %v1634_v12 = vadd.f32 1.0, %v3464_v11  ;;  %v4806_v11 = vld [vmem:[%s4065_s11 + $0x60] ss:$12 sps:$4 sm:$0xff]  }
 0x4bf   : > { %3465 = vrcp.f32 %v1627_v10  ;;  %v4801_v10 = vld [vmem:[%s4065_s11 + $0x64] ss:$12 sps:$4 sm:$0xff]  }
 0x4c0   : > { %3467 = vrcp.f32 %v1634_v12  ;;  %v4810_v12 = vld [vmem:[%s4065_s11 + $0x68] ss:$12 sps:$4 sm:$0xff]  }
 0x4c9   : > { %v3466_v14 = vpop.eup %3465 }
 0x4ca   : > { %v1637_v40 = vmul.f32 %v3466_v14, %v1618_v13  ;;  %v3468_v48 = vpop.eup %3467  ;;  %v4814_v13 = vld [vmem:[%s4065_s11 + $0x7c] ss:$12 sps:$4 sm:$0xff]   ;;  %v4819_v14 = vld [vmem:[%s4065_s11 + $0x78] ss:$12 sps:$4 sm:$0xff]  }
 0x4cb   : > { %v1640_v37 = vsub.f32 1.0, %v3468_v48  ;;  %v1642_v32 = vmul.f32 %v3468_v48, %v4552_v52  ;;  %5197 = vst [vmem:[#allocation20_spill] sm:$0xff] %v4819_v14  ;;  %v4836_v48 = vld [vmem:[%s4065_s11 + $0x98] ss:$12 sps:$4 sm:$0xff]  }
 0x4cc   : > { %v1638_v58 = vadd.f32 %v1637_v40, %v1536_v15  ;;  %v4823_v15 = vld [vmem:[%s4065_s11 + $0x80] ss:$12 sps:$4 sm:$0xff]   ;;  %5201 = vst [vmem:[#allocation23_spill] sm:$0xff] %v4836_v48 }
 0x4cd   : > { %v4759_v35 = vpop.f32.mrb[32].mxu1  ;;  %5198 = vst [vmem:[#allocation21_spill] sm:$0xff] %v4823_v15  ;;  %v4827_v40 = vld [vmem:[%s4065_s11 + $0x94] ss:$12 sps:$4 sm:$0xff]  }
 0x4ce   : > { %3469 = vtanh.f32 %v1638_v58  ;;  %v3074_v36 = vpop.f32.mrb[33].mxu1  ;;  %5199 = vst [vmem:[#allocation22_spill] sm:$0xff] %v4827_v40  ;;  %v4832_v58 = vld [vmem:[%s4065_s11 + $0x90] ss:$12 sps:$4 sm:$0xff]  }
 0x4cf   : > { %v1735_v38 = vpop.f32.mrb[34].mxu1  ;;  %5200 = vst [vmem:[#allocation27_spill] sm:$0xff] %v4832_v58 }
 0x4d0   : > { %v3075_v39 = vpop.f32.mrb[35].mxu1 }
 0x4d8   : > { %v3470_v44 = vpop.eup %3469 }
 0x4d9   : > { %v1641_v59 = vmul.f32 %v3470_v44, %v1640_v37  ;;  %v4840_v37 = vld [vmem:[%s4065_s11 + $0xac] ss:$12 sps:$4 sm:$0xff]   ;;  %v4845_v44 = vld [vmem:[%s4065_s11 + $0xa8] ss:$12 sps:$4 sm:$0xff]  }
 0x4da   : > { %5202 = vst [vmem:[#allocation24_spill] sm:$0xff] %v4840_v37  ;;  %5203 = vst [vmem:[#allocation28_spill] sm:$0xff] %v4845_v44 }
 0x4db   : > { %v1643_v2 = vadd.f32 %v1642_v32, %v1641_v59  ;;  %v4849_v32 = vld [vmem:[%s4065_s11 + $0xb0] ss:$12 sps:$4 sm:$0xff]  }
 0x4dc   : > { %5204 = vst [vmem:[#allocation25_spill] sm:$0xff] %v4849_v32 }
 0x4dd   : > { %v4714_v57 = vsel %vm1652_vm13, %v1643_v2, %v4552_v52  ;;  %v4747_v52 = vld [vmem:[%s4009_s16 + $0x98] ss:$12 sps:$4 sm:$0xff]   ;;  %s2748_s16 = sshll.u32 %s3727_s30, 7  ;;  %s3747_s30 = smov [#allocation9]  }
 0x4de   : > { %v1738_v34 = vpack.c.bf16 %v4714_v57, %v4714_v57  ;;  %s5030_s21 = scalar_lea.hbm %s5087_s8, %s2748_s16  ;;  %s3653_s19 = sshll.u32 %s3747_s30, 4  ;;  %s3654_s19 = int_to_ptr.vmem [resolvable:$false] %s3653_s19 }
 0x4df   : > { %s3655_s10 = scalar_lea.vmem %s3654_s19, 256 }
 0x4e0   : > { %1772 = vmatmul.mubr.bf16.vlgmr.msra.gmra.mrb[16].mxu0 %v1738_v34  ;;  %3093 = vmatmul.mubr.bf16.vlgmr.msra.gmra.mrb[36].mxu1 %v1738_v34 }
 0x4e1   : > { %1855 = vmatpush1.bf16.msra.mxu0 %v4557_v3  ;;  %3097 = vmatpush3.bf16.msra.mxu1 %v4561_v4 }
 0x4e2   : > { %1856 = vmatprep.subr.bf16.mxu0 %v4565_v5  ;;  %3098 = vmatprep.subr.bf16.mxu1 %v5176_v60 }
 0x4e3   : > { %1886 = vmatprep.mubr.bf16.mxu0 %v5177_v56  ;;  %3112 = vmatprep.mubr.msk.bf16.mxu1 %vm3746_vm0, %v5176_v60 }
 0x4e5   : > { %1857 = vmatpush1.bf16.msra.mxu0 %v4573_v50  ;;  %3099 = vmatpush3.bf16.msra.mxu1 %v4577_v6 }
 0x4e6   : > { %1858 = vmatprep.subr.bf16.mxu0 %v4581_v7  ;;  %3100 = vmatprep.subr.bf16.mxu1 %v5176_v60 }
 0x4e9   : > { %1859 = vmatpush1.bf16.msra.mxu0 %v4586_v17  ;;  %3101 = vmatpush3.bf16.msra.mxu1 %v4590_v18 }
 0x4ea   : > { %1860 = vmatprep.subr.bf16.mxu0 %v4594_v19  ;;  %3102 = vmatprep.subr.bf16.mxu1 %v5176_v60 }
 0x4ed   : > { %1861 = vmatpush1.bf16.msra.mxu0 %v4599_v20  ;;  %3103 = vmatpush3.bf16.msra.mxu1 %v4603_v21 }
 0x4ee   : > { %1862 = vmatprep.subr.bf16.mxu0 %v4607_v22  ;;  %3104 = vmatprep.subr.bf16.mxu1 %v5176_v60 }
 0x4f1   : > { %1863 = vmatpush1.bf16.msra.mxu0 %v4612_v23  ;;  %3105 = vmatpush3.bf16.msra.mxu1 %v4616_v24 }
 0x4f2   : > { %1864 = vmatprep.subr.bf16.mxu0 %v4620_v26  ;;  %3106 = vmatprep.subr.bf16.mxu1 %v5176_v60 }
 0x4f5   : > { %1865 = vmatpush1.bf16.msra.mxu0 %v4625_v28  ;;  %3107 = vmatpush3.bf16.msra.mxu1 %v4629_v29 }
 0x4f6   : > { %1866 = vmatprep.subr.bf16.mxu0 %v4633_v30  ;;  %3108 = vmatprep.subr.bf16.mxu1 %v5176_v60 }
 0x4f9   : > { %1867 = vmatpush1.bf16.msra.mxu0 %v4638_v46  ;;  %3109 = vmatpush3.bf16.msra.mxu1 %v4747_v52 }
 0x4fa   : > { %1868 = vmatprep.subr.bf16.mxu0 %v4643_v1  ;;  %3110 = vmatprep.subr.bf16.mxu1 %v5176_v60 }
 0x4fd   : > { %1869 = vmatpush1.bf16.msra.mxu0 %v4648_v54  ;;  %3111 = vmatpush3.bf16.msra.mxu1 %v4754_v27 }
 0x4fe   : > { %1936 = vmatprep.subr.bf16.mxu0 %v4653_v53  ;;  %3116 = vmatprep.subr.bf16.mxu1 %v5176_v60 }
 0x500   : > { %1887 = vmatmul.mubr.bf16.vlgmr.msra.gmra.mrb[20].mxu0 %v2732_v41  ;;  %3113 = vmatmul.mubr.bf16.vlgmr.msra.gmra.mrb[40].mxu1 %v2732_v41 }
 0x501   : > { %1937 = vmatpush1.bf16.msra.mxu0 %v4661_v55  ;;  %3117 = vmatpush3.bf16.msra.mxu1 %v4764_v42 }
 0x502   : > { %1938 = vmatprep.subr.bf16.mxu0 %v4666_v31  ;;  %3118 = vmatprep.subr.bf16.mxu1 %v5176_v60 }
 0x503   : > { %1968 = vmatprep.mubr.bf16.mxu0 %v5177_v56  ;;  %3132 = vmatprep.mubr.msk.bf16.mxu1 %vm3746_vm0, %v5176_v60 }
 0x505   : > { %1939 = vmatpush1.bf16.msra.mxu0 %v4674_v25  ;;  %3119 = vmatpush3.bf16.msra.mxu1 %v4774_v43 }
 0x506   : > { %1940 = vmatprep.subr.bf16.mxu0 %v4679_v49  ;;  %3120 = vmatprep.subr.bf16.mxu1 %v5176_v60 }
 0x509   : > { %1941 = vmatpush1.bf16.msra.mxu0 %v4780_v45  ;;  %3121 = vmatpush3.bf16.msra.mxu1 %v4784_v47 }
 0x50a   : > { %1942 = vmatprep.subr.bf16.mxu0 %v4788_v51  ;;  %3122 = vmatprep.subr.bf16.mxu1 %v5176_v60 }
 0x50d   : > { %1943 = vmatpush1.bf16.msra.mxu0 %v4793_v8  ;;  %3123 = vmatpush3.bf16.msra.mxu1 %v4797_v9 }
 0x50e   : > { %1944 = vmatprep.subr.bf16.mxu0 %v4801_v10  ;;  %3124 = vmatprep.subr.bf16.mxu1 %v5176_v60 }
 0x511   : > { %1945 = vmatpush1.bf16.msra.mxu0 %v4806_v11  ;;  %3125 = vmatpush3.bf16.msra.mxu1 %v4810_v12 }
 0x512   : > { %1946 = vmatprep.subr.bf16.mxu0 %v4814_v13  ;;  %3126 = vmatprep.subr.bf16.mxu1 %v5176_v60 }
 0x515   : > { %1947 = vmatpush1.bf16.msra.mxu0 %v4819_v14  ;;  %3127 = vmatpush3.bf16.msra.mxu1 %v4823_v15 }
 0x516   : > { %1948 = vmatprep.subr.bf16.mxu0 %v4827_v40  ;;  %3128 = vmatprep.subr.bf16.mxu1 %v5176_v60 }
 0x519   : > { %1949 = vmatpush1.bf16.msra.mxu0 %v4832_v58  ;;  %3129 = vmatpush3.bf16.msra.mxu1 %v4836_v48 }
 0x51a   : > { %1950 = vmatprep.subr.bf16.mxu0 %v4840_v37  ;;  %3130 = vmatprep.subr.bf16.mxu1 %v5176_v60 }
 0x51d   : > { %1951 = vmatpush1.bf16.msra.mxu0 %v4845_v44  ;;  %3131 = vmatpush3.bf16.msra.mxu1 %v4849_v32 }
 0x51e   : > { %2051 = vmatprep.subr.bf16.mxu0 %v4541_v16  ;;  %3136 = vmatprep.subr.bf16.mxu1 %v5176_v60 }
 0x5b3   : > { %v1773_v59 = vpop.f32.mrb[16].mxu0  ;;  %v1814_v33 = vpop.f32.mrb[36].mxu1 }
 0x5b4   : > { %v3233_v2 = vadd.f32 %v4355_v63, %v1773_v59  ;;  %v1775_v34 = vpop.f32.mrb[17].mxu0  ;;  %v3094_v36 = vpop.f32.mrb[37].mxu1  ;;  %v1815_v14 = vadd.f32 %v1814_v33, %v4361_v61 }
 0x5b5   : > { %v1777_v38 = vpop.f32.mrb[18].mxu0  ;;  %v1817_v39 = vpop.f32.mrb[38].mxu1  ;;  %v3235_v44 = vadd.f32 %v4357_v0, %v1775_v34  ;;  %v1733_v36 = vadd.f32 %v4759_v35, %v4363_v62 }
 0x5b6   : > { %v2728_v41 = vmul.f32 -1.442695, %v3233_v2  ;;  %v1778_v37 = vpop.f32.mrb[19].mxu0  ;;  %v3095_v48 = vpop.f32.mrb[39].mxu1  ;;  %v2737_v39 = vld [vmem:[%s3999_s27 + $0x18] sm:$0xf] }
 0x5b7   : > { %v2729_v58 = vmul.f32 -1.442695, %v3235_v44 }
 0x5b8   : > { %3471 = vpow2.f32 %v2728_v41  ;;  %v5205_v41 = vld [vmem:[#allocation20_spill] sm:$0xff] }
 0x5b9   : > { %3473 = vpow2.f32 %v2729_v58 }
 0x5c2   : > { %v3472_v32 = vpop.eup %3471 }
 0x5c3   : > { %v1824_v16 = vadd.f32 1.0, %v3472_v32  ;;  %v3474_v40 = vpop.eup %3473  ;;  %v1848_v32 = vpop.permute.xlu0 %1847 }
 0x5c4   : > { %v1831_v15 = vadd.f32 1.0, %v3474_v40  ;;  %vm1849_vm14 = vcmp.eq.s32.totalorder %v1848_v32, 1 }
 0x5c5   : > { %3475 = vrcp.f32 %v1824_v16 }
 0x5c6   : > { %3477 = vrcp.f32 %v1831_v15 }
 0x5cf   : > { %v3476_v59 = vpop.eup %3475 }
 0x5d0   : > { %v1834_v38 = vmul.f32 %v3476_v59, %v1815_v14  ;;  %v3478_v48 = vpop.eup %3477  ;;  %v5206_v59 = vld [vmem:[#allocation21_spill] sm:$0xff] }
 0x5d1   : > { %v1837_v2 = vsub.f32 1.0, %v3478_v48  ;;  %v1839_v58 = vmul.f32 %v3478_v48, %v4714_v57  ;;  %v5210_v48 = vld [vmem:[#allocation24_spill] sm:$0xff] }
 0x5d2   : > { %v1835_v37 = vadd.f32 %v1834_v38, %v1733_v36  ;;  %v5207_v36 = vld [vmem:[#allocation22_spill] sm:$0xff]  ;;  %v5208_v38 = vld [vmem:[#allocation27_spill] sm:$0xff] }
 0x5d4   : > { %3479 = vtanh.f32 %v1835_v37  ;;  %v5209_v37 = vld [vmem:[#allocation23_spill] sm:$0xff] }
 0x5de   : > { %v3480_v34 = vpop.eup %3479 }
 0x5df   : > { %v1838_v44 = vmul.f32 %v3480_v34, %v1837_v2  ;;  %v5211_v2 = vld [vmem:[#allocation28_spill] sm:$0xff]  ;;  %v5212_v34 = vld [vmem:[#allocation25_spill] sm:$0xff] }
 0x5e1   : > { %v1840_v16 = vadd.f32 %v1839_v58, %v1838_v44  ;;  %v5213_v58 = vld [vmem:[#allocation19_spill] sm:$0xff] }
 0x5e3   : > { %v4861_v40 = vsel %vm1849_vm14, %v1840_v16, %v4714_v57  ;;  %v1929_v57 = vpop.f32.mrb[40].mxu1 }
 0x5e4   : > { %v1935_v33 = vpack.c.bf16 %v4861_v40, %v4861_v40  ;;  %v3114_v35 = vpop.f32.mrb[41].mxu1 }
 0x5e5   : > { %v1932_v14 = vpop.f32.mrb[42].mxu1 }
 0x5e6   : > { %1969 = vmatmul.mubr.bf16.vlgmr.msra.gmra.mrb[20].mxu0 %v1935_v33  ;;  %3133 = vmatmul.mubr.bf16.vlgmr.msra.gmra.mrb[44].mxu1 %v1935_v33  ;;  %v3115_v15 = vpop.f32.mrb[43].mxu1 }
 0x5e7   : > { %2052 = vmatpush1.bf16.msra.mxu0 %v4557_v3  ;;  %3137 = vmatpush3.bf16.msra.mxu1 %v4561_v4 }
 0x5e8   : > { %2053 = vmatprep.subr.bf16.mxu0 %v4565_v5  ;;  %3138 = vmatprep.subr.bf16.mxu1 %v5176_v60 }
 0x5e9   : > { %2083 = vmatprep.mubr.bf16.mxu0 %v5177_v56  ;;  %3152 = vmatprep.mubr.msk.bf16.mxu1 %vm3746_vm0, %v5176_v60 }
 0x5eb   : > { %2054 = vmatpush1.bf16.msra.mxu0 %v4573_v50  ;;  %3139 = vmatpush3.bf16.msra.mxu1 %v4577_v6 }
 0x5ec   : > { %2055 = vmatprep.subr.bf16.mxu0 %v4581_v7  ;;  %3140 = vmatprep.subr.bf16.mxu1 %v5176_v60 }
 0x5ef   : > { %2056 = vmatpush1.bf16.msra.mxu0 %v4586_v17  ;;  %3141 = vmatpush3.bf16.msra.mxu1 %v4590_v18 }
 0x5f0   : > { %2057 = vmatprep.subr.bf16.mxu0 %v4594_v19  ;;  %3142 = vmatprep.subr.bf16.mxu1 %v5176_v60 }
 0x5f3   : > { %2058 = vmatpush1.bf16.msra.mxu0 %v4599_v20  ;;  %3143 = vmatpush3.bf16.msra.mxu1 %v4603_v21 }
 0x5f4   : > { %2059 = vmatprep.subr.bf16.mxu0 %v4607_v22  ;;  %3144 = vmatprep.subr.bf16.mxu1 %v5176_v60 }
 0x5f7   : > { %2060 = vmatpush1.bf16.msra.mxu0 %v4612_v23  ;;  %3145 = vmatpush3.bf16.msra.mxu1 %v4616_v24 }
 0x5f8   : > { %2061 = vmatprep.subr.bf16.mxu0 %v4620_v26  ;;  %3146 = vmatprep.subr.bf16.mxu1 %v5176_v60 }
 0x5fb   : > { %2062 = vmatpush1.bf16.msra.mxu0 %v4625_v28  ;;  %3147 = vmatpush3.bf16.msra.mxu1 %v4629_v29 }
 0x5fc   : > { %2063 = vmatprep.subr.bf16.mxu0 %v4633_v30  ;;  %3148 = vmatprep.subr.bf16.mxu1 %v5176_v60 }
 0x5ff   : > { %2064 = vmatpush1.bf16.msra.mxu0 %v4638_v46  ;;  %3149 = vmatpush3.bf16.msra.mxu1 %v4747_v52 }
 0x600   : > { %2065 = vmatprep.subr.bf16.mxu0 %v4643_v1  ;;  %3150 = vmatprep.subr.bf16.mxu1 %v5176_v60 }
 0x603   : > { %2066 = vmatpush1.bf16.msra.mxu0 %v4648_v54  ;;  %3151 = vmatpush3.bf16.msra.mxu1 %v4754_v27 }
 0x604   : > { %2133 = vmatprep.subr.bf16.mxu0 %v4653_v53  ;;  %3156 = vmatprep.subr.bf16.mxu1 %v5176_v60 }
 0x606   : > { %2084 = vmatmul.mubr.bf16.vlgmr.msra.gmra.mrb[24].mxu0 %v2737_v39  ;;  %3153 = vmatmul.mubr.bf16.vlgmr.msra.gmra.mrb[48].mxu1 %v2737_v39 }
 0x607   : > { %2134 = vmatpush1.bf16.msra.mxu0 %v4661_v55  ;;  %3157 = vmatpush3.bf16.msra.mxu1 %v4764_v42 }
 0x608   : > { %2135 = vmatprep.subr.bf16.mxu0 %v4666_v31  ;;  %3158 = vmatprep.subr.bf16.mxu1 %v5176_v60 }
 0x609   : > { %2165 = vmatprep.mubr.bf16.mxu0 %v5177_v56  ;;  %3172 = vmatprep.mubr.msk.bf16.mxu1 %vm3746_vm0, %v5176_v60 }
 0x60b   : > { %2136 = vmatpush1.bf16.msra.mxu0 %v4674_v25  ;;  %3159 = vmatpush3.bf16.msra.mxu1 %v4774_v43 }
 0x60c   : > { %2137 = vmatprep.subr.bf16.mxu0 %v4679_v49  ;;  %3160 = vmatprep.subr.bf16.mxu1 %v5176_v60 }
 0x60f   : > { %2138 = vmatpush1.bf16.msra.mxu0 %v4780_v45  ;;  %3161 = vmatpush3.bf16.msra.mxu1 %v4784_v47 }
 0x610   : > { %2139 = vmatprep.subr.bf16.mxu0 %v4788_v51  ;;  %3162 = vmatprep.subr.bf16.mxu1 %v5176_v60 }
 0x613   : > { %2140 = vmatpush1.bf16.msra.mxu0 %v4793_v8  ;;  %3163 = vmatpush3.bf16.msra.mxu1 %v4797_v9 }
 0x614   : > { %2141 = vmatprep.subr.bf16.mxu0 %v4801_v10  ;;  %3164 = vmatprep.subr.bf16.mxu1 %v5176_v60 }
 0x617   : > { %2142 = vmatpush1.bf16.msra.mxu0 %v4806_v11  ;;  %3165 = vmatpush3.bf16.msra.mxu1 %v4810_v12 }
 0x618   : > { %2143 = vmatprep.subr.bf16.mxu0 %v4814_v13  ;;  %3166 = vmatprep.subr.bf16.mxu1 %v5176_v60 }
 0x61b   : > { %2144 = vmatpush1.bf16.msra.mxu0 %v5205_v41  ;;  %3167 = vmatpush3.bf16.msra.mxu1 %v5206_v59 }
 0x61c   : > { %2145 = vmatprep.subr.bf16.mxu0 %v5207_v36  ;;  %3168 = vmatprep.subr.bf16.mxu1 %v5176_v60 }
 0x61f   : > { %2146 = vmatpush1.bf16.msra.mxu0 %v5208_v38  ;;  %3169 = vmatpush3.bf16.msra.mxu1 %v5209_v37 }
 0x620   : > { %2147 = vmatprep.subr.bf16.mxu0 %v5210_v48  ;;  %3170 = vmatprep.subr.bf16.mxu1 %v5176_v60 }
 0x623   : > { %2148 = vmatpush1.bf16.msra.mxu0 %v5211_v2  ;;  %3171 = vmatpush3.bf16.msra.mxu1 %v5212_v34 }
 0x624   : > { %2248 = vmatprep.subr.bf16.mxu0 %v5213_v58  ;;  %3176 = vmatprep.subr.bf16.mxu1 %v5176_v60 }
 0x6b9   : > { %v1970_v44 = vpop.f32.mrb[20].mxu0  ;;  %v2011_v32 = vpop.f32.mrb[44].mxu1 }
 0x6ba   : > { %v3237_v16 = vadd.f32 %v4355_v63, %v1970_v44  ;;  %v1972_v33 = vpop.f32.mrb[21].mxu0  ;;  %v3134_v35 = vpop.f32.mrb[45].mxu1  ;;  %v2012_v41 = vadd.f32 %v2011_v32, %v4361_v61 }
 0x6bb   : > { %v1974_v14 = vpop.f32.mrb[22].mxu0  ;;  %v2014_v15 = vpop.f32.mrb[46].mxu1  ;;  %v3239_v38 = vadd.f32 %v4357_v0, %v1972_v33  ;;  %v1930_v35 = vadd.f32 %v1929_v57, %v4363_v62 }
 0x6bc   : > { %v2733_v39 = vmul.f32 -1.442695, %v3237_v16  ;;  %v1975_v48 = vpop.f32.mrb[23].mxu0  ;;  %v3135_v37 = vpop.f32.mrb[47].mxu1 }
 0x6bd   : > { %v2734_v2 = vmul.f32 -1.442695, %v3239_v38  ;;  %v2045_v15 = vpop.permute.xlu1 %2044 }
 0x6be   : > { %3481 = vpow2.f32 %v2733_v39  ;;  %vm2046_vm15 = vcmp.eq.s32.totalorder %v2045_v15, 1 }
 0x6bf   : > { %3483 = vpow2.f32 %v2734_v2 }
 0x6c8   : > { %v3482_v34 = vpop.eup %3481 }
 0x6c9   : > { %v2021_v58 = vadd.f32 1.0, %v3482_v34  ;;  %v3484_v36 = vpop.eup %3483 }
 0x6ca   : > { %v2028_v59 = vadd.f32 1.0, %v3484_v36 }
 0x6cb   : > { %3485 = vrcp.f32 %v2021_v58 }
 0x6cc   : > { %3487 = vrcp.f32 %v2028_v59 }
 0x6d5   : > { %v3486_v44 = vpop.eup %3485 }
 0x6d6   : > { %v2031_v14 = vmul.f32 %v3486_v44, %v2012_v41  ;;  %v3488_v37 = vpop.eup %3487 }
 0x6d7   : > { %v2034_v48 = vsub.f32 1.0, %v3488_v37  ;;  %v2036_v38 = vmul.f32 %v3488_v37, %v4861_v40 }
 0x6d8   : > { %v2032_v16 = vadd.f32 %v2031_v14, %v1930_v35 }
 0x6da   : > { %3489 = vtanh.f32 %v2032_v16 }
 0x6e4   : > { %v3490_v33 = vpop.eup %3489 }
 0x6e5   : > { %v2035_v2 = vmul.f32 %v3490_v33, %v2034_v48 }
 0x6e7   : > { %v2037_v34 = vadd.f32 %v2036_v38, %v2035_v2 }
 0x6e9   : > { %v4942_v36 = vsel %vm2046_vm15, %v2037_v34, %v4861_v40 }
 0x6ea   : > { %v2132_v32 = vpack.c.bf16 %v4942_v36, %v4942_v36 }
 0x6ec   : > { %2166 = vmatmul.mubr.bf16.vlgmr.msra.gmra.mrb[24].mxu0 %v2132_v32  ;;  %3173 = vmatmul.mubr.bf16.vlgmr.msra.gmra.mrb[52].mxu1 %v2132_v32 }
 0x6ed   : > { %2249 = vmatpush1.bf16.msra.mxu0 %v4557_v3  ;;  %3177 = vmatpush3.bf16.msra.mxu1 %v4561_v4  ;;  %v2126_v3 = vpop.f32.mrb[48].mxu1 }
 0x6ee   : > { %2250 = vmatprep.subr.bf16.mxu0 %v4565_v5  ;;  %3178 = vmatprep.subr.bf16.mxu1 %v5176_v60  ;;  %v3154_v4 = vpop.f32.mrb[49].mxu1 }
 0x6ef   : > { %2280 = vmatprep.mubr.bf16.mxu0 %v5177_v56  ;;  %3192 = vmatprep.mubr.msk.bf16.mxu1 %vm3746_vm0, %v5176_v60  ;;  %v2129_v5 = vpop.f32.mrb[50].mxu1 }
 0x6f1   : > { %2251 = vmatpush1.bf16.msra.mxu0 %v4573_v50  ;;  %3179 = vmatpush3.bf16.msra.mxu1 %v4577_v6  ;;  %v3155_v50 = vpop.f32.mrb[51].mxu1  ;;  %v2742_v6 = vld [vmem:[%s3999_s27 + $0x1c] sm:$0xf]  ;;  %s2656_s27 = sshll.u32 %s3995_s23, 3 }
 0x6f2   : > { %2252 = vmatprep.subr.bf16.mxu0 %v4581_v7  ;;  %3180 = vmatprep.subr.bf16.mxu1 %v5176_v60  ;;  %v5215_v7 = vld [vmem:[#allocation21_spill] sm:$0xff]  ;;  %s481_s11 = scalar_lea.vmem [#allocation9], %s2656_s27 }
 0x6f3   : > { %s2461_s17 = sshll.u32 %s481_s11, 4  ;;  %s5032_s17 = int_to_ptr.vmem [resolvable:$true] %s2461_s17 }
 0x6f4   : > { %s3649_s29 = scalar_lea.vmem %s5032_s17, 128  ;;  %p3656_p4 = scmp.lt.s32.totalorder %s5032_s17, %s3654_s19 }
 0x6f5   : > { %2253 = vmatpush1.bf16.msra.mxu0 %v4586_v17  ;;  %3181 = vmatpush3.bf16.msra.mxu1 %v4590_v18  ;;  %v5216_v17 = vld [vmem:[#allocation22_spill] sm:$0xff]  ;;  %v5217_v18 = vld [vmem:[#allocation27_spill] sm:$0xff]  ;;  %p3650_p6 = scmp.ne.s32.totalorder %s5032_s17, %s3649_s29  ;;  %p3657_p10 = scmp.lt.s32.totalorder %s3655_s10, %s3649_s29 }
 0x6f6   : > { %2254 = vmatprep.subr.bf16.mxu0 %v4594_v19  ;;  %3182 = vmatprep.subr.bf16.mxu1 %v5176_v60  ;;  %v5218_v19 = vld [vmem:[#allocation23_spill] sm:$0xff] }
 0x6f7   : > { %p3651_p9 = pnand %p3650_p6, %p5222_p8  ;;  %p3658_p13 = por %p3657_p10, %p3656_p4 }
 0x6f9   : > { %2255 = vmatpush1.bf16.msra.mxu0 %v4599_v20  ;;  %3183 = vmatpush3.bf16.msra.mxu1 %v4603_v21  ;;  %v5219_v20 = vld [vmem:[#allocation24_spill] sm:$0xff]  ;;  %p3652_p12 = pneg %p3651_p9 }
 0x6fa   : > { %2256 = vmatprep.subr.bf16.mxu0 %v4607_v22  ;;  %3184 = vmatprep.subr.bf16.mxu1 %v5176_v60  ;;  %v5220_v21 = vld [vmem:[#allocation28_spill] sm:$0xff]  ;;  %v5221_v22 = vld [vmem:[#allocation25_spill] sm:$0xff] }
 0x6fb   : > { %p3659_p11 = pnand %p3658_p13, %p3652_p12 }
 0x6fd   : > { %2257 = vmatpush1.bf16.msra.mxu0 %v4612_v23  ;;  %3185 = vmatpush3.bf16.msra.mxu1 %v4616_v24 }
 0x6fe   : > { %2258 = vmatprep.subr.bf16.mxu0 %v4620_v26  ;;  %3186 = vmatprep.subr.bf16.mxu1 %v5176_v60 }
 0x701   : > { %2259 = vmatpush1.bf16.msra.mxu0 %v4625_v28  ;;  %3187 = vmatpush3.bf16.msra.mxu1 %v4629_v29 }
 0x702   : > { %2260 = vmatprep.subr.bf16.mxu0 %v4633_v30  ;;  %3188 = vmatprep.subr.bf16.mxu1 %v5176_v60 }
 0x705   : > { %2261 = vmatpush1.bf16.msra.mxu0 %v4638_v46  ;;  %3189 = vmatpush3.bf16.msra.mxu1 %v4747_v52 }
 0x706   : > { %2262 = vmatprep.subr.bf16.mxu0 %v4643_v1  ;;  %3190 = vmatprep.subr.bf16.mxu1 %v5176_v60 }
 0x709   : > { %2263 = vmatpush1.bf16.msra.mxu0 %v4648_v54  ;;  %3191 = vmatpush3.bf16.msra.mxu1 %v4754_v27 }
 0x70a   : > { %2330 = vmatprep.subr.bf16.mxu0 %v4653_v53  ;;  %3196 = vmatprep.subr.bf16.mxu1 %v5176_v60 }
 0x70c   : > { %2281 = vmatmul.mubr.bf16.vlgmr.msra.gmra.mrb[28].mxu0 %v2742_v6  ;;  %3193 = vmatmul.mubr.bf16.vlgmr.msra.gmra.mrb[56].mxu1 %v2742_v6 }
 0x70d   : > { %2331 = vmatpush1.bf16.msra.mxu0 %v4661_v55  ;;  %3197 = vmatpush3.bf16.msra.mxu1 %v4764_v42 }
 0x70e   : > { %2332 = vmatprep.subr.bf16.mxu0 %v4666_v31  ;;  %3198 = vmatprep.subr.bf16.mxu1 %v5176_v60 }
 0x70f   : > { %2362 = vmatprep.mubr.bf16.mxu0 %v5177_v56  ;;  %3212 = vmatprep.mubr.msk.bf16.mxu1 %vm3746_vm0, %v5176_v60  ;;  %v5214_v56 = vld [vmem:[#allocation20_spill] sm:$0xff] }
 0x711   : > { %2333 = vmatpush1.bf16.msra.mxu0 %v4674_v25  ;;  %3199 = vmatpush3.bf16.msra.mxu1 %v4774_v43  ;;  %v2127_v43 = vadd.f32 %v2126_v3, %v4363_v62 }
 0x712   : > { %2334 = vmatprep.subr.bf16.mxu0 %v4679_v49  ;;  %3200 = vmatprep.subr.bf16.mxu1 %v5176_v60 }
 0x715   : > { %2335 = vmatpush1.bf16.msra.mxu0 %v4780_v45  ;;  %3201 = vmatpush3.bf16.msra.mxu1 %v4784_v47 }
 0x716   : > { %2336 = vmatprep.subr.bf16.mxu0 %v4788_v51  ;;  %3202 = vmatprep.subr.bf16.mxu1 %v5176_v60 }
 0x719   : > { %2337 = vmatpush1.bf16.msra.mxu0 %v4793_v8  ;;  %3203 = vmatpush3.bf16.msra.mxu1 %v4797_v9 }
 0x71a   : > { %2338 = vmatprep.subr.bf16.mxu0 %v4801_v10  ;;  %3204 = vmatprep.subr.bf16.mxu1 %v5176_v60  ;;  %v2242_v10 = vpop.permute.xlu0 %2241 }
 0x71b   : > { %vm2243_vm0 = vcmp.eq.s32.totalorder %v2242_v10, 1 }
 0x71d   : > { %2339 = vmatpush1.bf16.msra.mxu0 %v4806_v11  ;;  %3205 = vmatpush3.bf16.msra.mxu1 %v4810_v12 }
 0x71e   : > { %2340 = vmatprep.subr.bf16.mxu0 %v4814_v13  ;;  %3206 = vmatprep.subr.bf16.mxu1 %v5176_v60 }
 0x721   : > { %2341 = vmatpush1.bf16.msra.mxu0 %v5214_v56  ;;  %3207 = vmatpush3.bf16.msra.mxu1 %v5215_v7 }
 0x722   : > { %2342 = vmatprep.subr.bf16.mxu0 %v5216_v17  ;;  %3208 = vmatprep.subr.bf16.mxu1 %v5176_v60 }
 0x725   : > { %2343 = vmatpush1.bf16.msra.mxu0 %v5217_v18  ;;  %3209 = vmatpush3.bf16.msra.mxu1 %v5218_v19  ;;  %v2439_v19 = vpop.permute.xlu1 %2438 }
 0x726   : > { %2344 = vmatprep.subr.bf16.mxu0 %v5219_v20  ;;  %3210 = vmatprep.subr.bf16.mxu1 %v5176_v60  ;;  %vm2440_vm1 = vcmp.eq.s32.totalorder %v2439_v19, 1 }
 0x729   : > { %2345 = vmatpush1.bf16.msra.mxu0 %v5220_v21  ;;  %3211 = vmatpush3.bf16.msra.mxu1 %v5221_v22 }
 0x7bf   : > { %v2167_v23 = vpop.f32.mrb[24].mxu0  ;;  %v2208_v24 = vpop.f32.mrb[52].mxu1 }
 0x7c0   : > { %v3241_v26 = vadd.f32 %v4355_v63, %v2167_v23  ;;  %v2169_v28 = vpop.f32.mrb[25].mxu0  ;;  %v3174_v29 = vpop.f32.mrb[53].mxu1  ;;  %v2209_v27 = vadd.f32 %v2208_v24, %v4361_v61 }
 0x7c1   : > { %v2171_v30 = vpop.f32.mrb[26].mxu0  ;;  %v2211_v46 = vpop.f32.mrb[54].mxu1  ;;  %v3243_v55 = vadd.f32 %v4357_v0, %v2169_v28 }
 0x7c2   : > { %v2738_v1 = vmul.f32 -1.442695, %v3241_v26  ;;  %v2172_v54 = vpop.f32.mrb[27].mxu0  ;;  %v3175_v53 = vpop.f32.mrb[55].mxu1 }
 0x7c3   : > { %v2739_v31 = vmul.f32 -1.442695, %v3243_v55 }
 0x7c4   : > { %3491 = vpow2.f32 %v2738_v1 }
 0x7c5   : > { %3493 = vpow2.f32 %v2739_v31 }
 0x7ce   : > { %v3492_v60 = vpop.eup %3491 }
 0x7cf   : > { %v2218_v25 = vadd.f32 1.0, %v3492_v60  ;;  %v3494_v49 = vpop.eup %3493 }
 0x7d0   : > { %v2225_v52 = vadd.f32 1.0, %v3494_v49 }
 0x7d1   : > { %3495 = vrcp.f32 %v2218_v25 }
 0x7d2   : > { %3497 = vrcp.f32 %v2225_v52 }
 0x7db   : > { %v3496_v42 = vpop.eup %3495 }
 0x7dc   : > { %v2228_v45 = vmul.f32 %v3496_v42, %v2209_v27  ;;  %v3498_v51 = vpop.eup %3497 }
 0x7dd   : > { %v2231_v8 = vsub.f32 1.0, %v3498_v51  ;;  %v2233_v11 = vmul.f32 %v3498_v51, %v4942_v36 }
 0x7de   : > { %v2229_v47 = vadd.f32 %v2228_v45, %v2127_v43 }
 0x7df   : > { %v2323_v41 = vpop.f32.mrb[56].mxu1 }
 0x7e0   : > { %3499 = vtanh.f32 %v2229_v47  ;;  %v3194_v59 = vpop.f32.mrb[57].mxu1  ;;  %v2324_v6 = vadd.f32 %v2323_v41, %v4363_v62 }
 0x7e1   : > { %v2326_v39 = vpop.f32.mrb[58].mxu1 }
 0x7e2   : > { %v3195_v58 = vpop.f32.mrb[59].mxu1 }
 0x7ea   : > { %v3500_v9 = vpop.eup %3499 }
 0x7eb   : > { %v2232_v12 = vmul.f32 %v3500_v9, %v2231_v8 }
 0x7ed   : > { %v2234_v13 = vadd.f32 %v2233_v11, %v2232_v12 }
 0x7ef   : > { %v2244_v40 = vsel %vm2243_vm0, %v2234_v13, %v4942_v36 }
 0x7f0   : > { %v2329_v57 = vpack.c.bf16 %v2244_v40, %v2244_v40 }
 0x7f2   : > { %2363 = vmatmul.mubr.bf16.vlgmr.msra.gmra.mrb[28].mxu0 %v2329_v57  ;;  %3213 = vmatmul.mubr.bf16.vlgmr.msra.gmra.mrb[60].mxu1 %v2329_v57 }
 0x8c5   : > { %v2364_v44 = vpop.f32.mrb[28].mxu0  ;;  %v2405_v35 = vpop.f32.mrb[60].mxu1 }
 0x8c6   : > { %v3245_v14 = vadd.f32 %v4355_v63, %v2364_v44  ;;  %v2366_v16 = vpop.f32.mrb[29].mxu0  ;;  %v3214_v37 = vpop.f32.mrb[61].mxu1  ;;  %v2406_v63 = vadd.f32 %v2405_v35, %v4361_v61 }
 0x8c7   : > { %v2368_v48 = vpop.f32.mrb[30].mxu0  ;;  %v2408_v33 = vpop.f32.mrb[62].mxu1  ;;  %v3247_v34 = vadd.f32 %v4357_v0, %v2366_v16 }
 0x8c8   : > { %v2743_v38 = vmul.f32 -1.442695, %v3245_v14  ;;  %v2369_v2 = vpop.f32.mrb[31].mxu0  ;;  %v3215_v15 = vpop.f32.mrb[63].mxu1 }
 0x8c9   : > { %v2744_v36 = vmul.f32 -1.442695, %v3247_v34 }
 0x8ca   : > { %3501 = vpow2.f32 %v2743_v38 }
 0x8cb   : > { %3503 = vpow2.f32 %v2744_v36 }
 0x8d4   : > { %v3502_v32 = vpop.eup %3501 }
 0x8d5   : > { %v2415_v3 = vadd.f32 1.0, %v3502_v32  ;;  %v3504_v4 = vpop.eup %3503 }
 0x8d6   : > { %v2422_v5 = vadd.f32 1.0, %v3504_v4 }
 0x8d7   : > { %3505 = vrcp.f32 %v2415_v3 }
 0x8d8   : > { %3507 = vrcp.f32 %v2422_v5 }
 0x8e1   : > { %v3506_v50 = vpop.eup %3505 }
 0x8e2   : > { %v2425_v56 = vmul.f32 %v3506_v50, %v2406_v63  ;;  %v3508_v0 = vpop.eup %3507 }
 0x8e3   : > { %v2428_v17 = vsub.f32 1.0, %v3508_v0  ;;  %v2430_v21 = vmul.f32 %v3508_v0, %v2244_v40 }
 0x8e4   : > { %v2426_v7 = vadd.f32 %v2425_v56, %v2324_v6 }
 0x8e6   : > { %3509 = vtanh.f32 %v2426_v7 }
 0x8f0   : > { %v3510_v18 = vpop.eup %3509 }
 0x8f1   : > { %v2429_v20 = vmul.f32 %v3510_v18, %v2428_v17 }
 0x8f3   : > { %v2431_v61 = vadd.f32 %v2430_v21, %v2429_v20 }
 0x8f5   : > { %v2441_v62 = vsel %vm2440_vm1, %v2431_v61, %v2244_v40 }
 0x8f6   : > { %2446 = vst [vmem:[%s481_s11] sm:$0xff] %v2441_v62 }
 0x8f7   : > { %3662 = shalt.err (!%p3659_p11)
}
 0x8f8   : > { %s3663_s23 = scalar_lea.hbm %s5030_s21, 128  ;;  %s3667_s4 = scalar_lea.hbm %s5087_s8, 256 }
 0x8f9   : > { %p3664_p7 = scmp.ne.s32.totalorder %s5030_s21, %s3663_s23  ;;  %p3668_p2 = scmp.lt.u32.totalorder %s5030_s21, %s5087_s8 }
 0x8fa   : > { %p3669_p1 = scmp.lt.u32.totalorder %s3667_s4, %s3663_s23  ;;  %p3671_p6 = scmp.lt.u32.totalorder %s3663_s23, %s5030_s21 }
 0x8fb   : > { %p3665_p3 = pnand %p3664_p7, %p5222_p8 }
 0x8fc   : > { %p3670_p0 = por %p3669_p1, %p3668_p2 }
 0x8fd   : > { %p3666_p5 = pneg %p3665_p3 }
 0x8fe   : > { %p3672_p9 = por %p3671_p6, %p3670_p0 }
 0x900   : > { %p3673_p12 = pnand %p3672_p9, %p3666_p5 }
 0x902   : > { %3676 = shalt.err (!%p3673_p12)
}
 0x903   : > { %3292 = dma.vmem_to_hbm [thread:$0]  (%p5222_p8), %s5032_s17, 128, %s5030_s21, %s2448_s26  }
 0x904 PF: > { %s5223_s15 = sld [smem:[#allocation13_spill]]  ;;  %s5224_s20 = sld [smem:[#allocation18_spill]] }
 0x905   : > { %s5225_s13 = sld [smem:[#allocation15_spill]] }
 0x90a   : > { %s2473_s27 = sand.u32 1, %s5223_s15   ;;  %p5226_p4 = scmp.ne.s32.totalorder %s5224_s20, 0 }
 0x90b   : > { %p5227_p10 = scmp.ge.s32.totalorder %s5225_s13, 2  ;;  %s2474_s16 = scalar_lea.sflag [#allocation5], %s2473_s27 }
 0x90d   : > { %p3305_p13 = pnand %p5227_p10, %p5226_p4 }
 0x90f   : > { %3710 = dma.done.wait (!%p3305_p13), %s2474_s16, 128  }
 0x910   : > { %3712 = vsyncadd (!%p3305_p13), %s2474_s16, 4294967168  ;;  %s27_s10 = sadd.s32 1, %s5225_s13   ;;  %s5228_s11 = sld [smem:[#allocation14_spill]] }
 0x911   : > { %p24_p11 = scmp.ge.s32.totalorder %s27_s10, 4   ;;  %s5229_s29 = sld [smem:[#allocation17_spill]] }
 0x912   : > { %s5230_s18 = sld [smem:[#allocation16_spill]]  ;;  %s5231_s27 = smov %s3719_s28 }
 0x913   : > { %s5233_s30 = smov %s3731_s9  ;;  %26 = sbr.rel (!%p24_p11) target bundleno = 11 (0xb), region = 151 }
 0x916   : > { %s5232_s28 = smov %s5228_s11 }
 0x918   : > { %s5234_s9 = smov %s5230_s18 }
 0x91a   :  { %2479 = vsyncpa [#allocation4], 1 }
 0x91b   :  { %2481 = vsyncpa [#allocation4 + $0x1], 1 }
 0x91c   :  { %2482 = vsyncpa [#allocation7], 1 }
 0x91d   :  { %2484 = vsyncpa [#allocation7 + $0x1], 1 }
 0x91e   :  { %2485 = vsyncpa [#allocation5], 1 }
 0x91f   :  { %2487 = vsyncpa [#allocation5 + $0x1], 1 }

</bundles_post_ra>
